<compile_context>
chip_gen: v6e
topology: v6e:2x2x1
jax: 0.10.0
libtpu: 0.0.40
codegen_flags: <defaults>
</compile_context>

<pallas_src>
import functools

import jax
import jax.numpy as jnp
from jax import lax
from jax.experimental import pallas as pl
from jax.experimental.pallas import tpu as pltpu

LANES = 128
# Largest streamed tile: 4096 rows x 128 lanes x 4 B = 2 MiB per buffer;
# 2 inputs x 2 pipeline buffers = 8 MiB VMEM (fits every gen's default limit).
_TILES = (4096, 2048, 1024, 512, 256, 128, 64, 32, 16, 8)
_CHUNK_ROWS = 128  # strip-mine granularity inside a tile (64 KiB f32 per temp)


def _min_tile_rows(*dtypes):
    """Minimum tile height given dtype sublane packing (f32:8, bf16:16, i8:32)."""
    rows = 8
    for dt in dtypes:
        rows = max(rows, 32 // max(1, jnp.dtype(dt).itemsize))
    return rows


def _num_tensorcores():
    """Best-effort TensorCores-per-chip (2 on v7x, 1 on v5e/v6e and unknown)."""
    try:
        kind = (getattr(jax.devices()[0], "device_kind", "") or "").lower()
        if "v7" in kind or "7x" in kind or "tpu7" in kind:
            return 2
    except Exception:
        pass
    return 1


def _plan(rows, min_rows, num_tc):
    """Choose (tile_rows, num_cores) for `rows` full 128-lane rows."""
    tiles = [t for t in _TILES if t >= min_rows]
    # Only split the leading grid axis 2-way on multi-TC chips (v7x); on
    # single-TC chips it would just halve the tile for zero parallelism.
    core_order = (2, 1) if num_tc >= 2 else (1,)
    # Prefer an exact fit (no ragged tail), biggest block first.
    for nc in core_order:
        for t in tiles:
            if rows >= nc * t and rows % (nc * t) == 0:
                return t, nc
    # Otherwise take the biggest block that fits; the ragged remainder is
    # reduced in plain JAX by the wrapper (no full-array pad/copy).
    for nc in core_order:
        for t in tiles:
            if rows >= nc * t:
                return t, nc
    return None


def _bcl_kernel(dist_ref, label_ref, acc_ref, *, margin, chunk_rows, num_chunks):
    """Accumulate per-core partial sums (pos, neg, loss1_num, loss2_num).

    acc_ref block: (4, 8, 128) f32, resident across the inner ("arbitrary")
    grid axis. Each chunk contribution is folded to (8, 128) with pure VPU
    vreg adds (no per-tile XLU reduce, no SMEM scalar read-modify-write).
    """
    @pl.when(pl.program_id(1) == 0)
    def _init():
        acc_ref[...] = jnp.zeros_like(acc_ref)

    margin_f = jnp.float32(margin)

    def fold(x):
        if x.shape[0] == 8:
            return x
        return x.reshape(-1, 8, LANES).sum(axis=0)

    def accumulate(lab_raw, dist_raw):
        lab = lab_raw.astype(jnp.float32)
        dist = dist_raw.astype(jnp.float32)
        # PyTorch: label[label == 255] = 1.  After that, mask = (label != 255)
        # is identically 1, so `distance * mask` and the `* mask` factor in
        # loss_2 are no-ops and are dropped (identical result).
        lab = jnp.where(lab == 255.0, jnp.float32(1.0), lab)
        half = 0.5 * lab                       # shared between both weights
        pos = (lab == 1.0).astype(jnp.float32)
        neg = (lab == -1.0).astype(jnp.float32)
        s1 = (0.5 + half) * (dist * dist)
        hinge = jnp.maximum(margin_f - dist, 0.0)
        s2 = (0.5 - half) * (hinge * hinge)
        acc_ref[0] += fold(pos)
        acc_ref[1] += fold(neg)
        acc_ref[2] += fold(s1)
        acc_ref[3] += fold(s2)

    if num_chunks == 1:
        accumulate(label_ref[...], dist_ref[...])
    else:
        # Strip-mine the tile so the elementwise chain never materializes
        # four full-tile f32 temporaries in VMEM.
        def body(c, carry):
            off = pl.multiple_of(c * chunk_rows, chunk_rows)
            accumulate(label_ref[pl.ds(off, chunk_rows), :],
                       dist_ref[pl.ds(off, chunk_rows), :])
            return carry

        lax.fori_loop(0, num_chunks, body, 0, unroll=4)


def _partial_sums_jax(dist, lab, margin):
    """Plain-JAX (pos, neg, s1, s2) partial sums (used for tiny/ragged tails)."""
    dist = dist.astype(jnp.float32)
    lab = lab.astype(jnp.float32)
    lab = jnp.where(lab == 255.0, jnp.float32(1.0), lab)
    pos = jnp.sum((lab == 1.0).astype(jnp.float32))
    neg = jnp.sum((lab == -1.0).astype(jnp.float32))
    s1 = jnp.sum((1.0 + lab) * 0.5 * dist * dist)
    hinge = jnp.maximum(jnp.float32(margin) - dist, 0.0)
    s2 = jnp.sum((1.0 - lab) * 0.5 * hinge * hinge)
    return jnp.stack([pos, neg, s1, s2])


@functools.partial(jax.jit, static_argnames=("margin",))
def bcl_loss(distance, label, *, margin=2.0):
    assert distance.shape == label.shape
    n = distance.size
    dist_flat = distance.reshape(-1)
    label_flat = label.reshape(-1)

    rows = n // LANES
    min_rows = _min_tile_rows(distance.dtype, label.dtype)
    plan = _plan(rows, min_rows, _num_tensorcores())

    if plan is None:
        # Too small for even one minimum-size tile: pure JAX.
        sums = _partial_sums_jax(dist_flat, label_flat, margin)
    else:
        tile_rows, num_cores = plan
        block_rows = num_cores * tile_rows
        inner = rows // block_rows
        main_rows = inner * block_rows
        main_n = main_rows * LANES

        dist3d = dist_flat[:main_n].reshape(num_cores, inner * tile_rows, LANES)
        label3d = label_flat[:main_n].reshape(num_cores, inner * tile_rows, LANES)

        chunk_rows = min(_CHUNK_ROWS, tile_rows)
        kernel = functools.partial(
            _bcl_kernel, margin=float(margin),
            chunk_rows=chunk_rows, num_chunks=tile_rows // chunk_rows)

        acc = pl.pallas_call(
            kernel,
            out_shape=jax.ShapeDtypeStruct((num_cores, 4, 8, LANES), jnp.float32),
            grid_spec=pltpu.PrefetchScalarGridSpec(
                num_scalar_prefetch=0,
                grid=(num_cores, inner),
                in_specs=[
                    pl.BlockSpec((None, tile_rows, LANES), lambda c, i: (c, i, 0)),
                    pl.BlockSpec((None, tile_rows, LANES), lambda c, i: (c, i, 0)),
                ],
                out_specs=pl.BlockSpec((None, 4, 8, LANES),
                                       lambda c, i: (c, 0, 0, 0)),
            ),
            compiler_params=pltpu.CompilerParams(
                dimension_semantics=("parallel", "arbitrary")),
        )(dist3d, label3d)

        sums = jnp.sum(acc, axis=(0, 2, 3))  # tiny (4,) final reduce in XLA
        if main_n < n:
            # Ragged tail: reduce the leftover elements in plain JAX instead of
            # jnp.pad-copying both full arrays through HBM.
            sums = sums + _partial_sums_jax(dist_flat[main_n:],
                                            label_flat[main_n:], margin)

    pos_num = sums[0] + 0.0001
    neg_num = sums[1] + 0.0001
    return sums[2] / pos_num + sums[3] / neg_num


def _bcl_reference(distance, label, margin=2.0):
    # Pure-JAX reference mirroring the PyTorch forward.
    label = jnp.where(label == 255.0, 1.0, label)
    mask = (label != 255.0).astype(jnp.float32)
    distance = distance * mask
    pos_num = jnp.sum((label == 1.0).astype(jnp.float32)) + 0.0001
    neg_num = jnp.sum((label == -1.0).astype(jnp.float32)) + 0.0001
    loss_1 = jnp.sum((1.0 + label) / 2.0 * distance ** 2) / pos_num
    loss_2 = jnp.sum((1.0 - label) / 2.0 * mask
                     * jnp.maximum(margin - distance, 0.0) ** 2) / neg_num
    return loss_1 + loss_2


if __name__ == "__main__":
    key = jax.random.PRNGKey(0)
    k1, k2, k3, k4 = jax.random.split(key, 4)
    choices = jnp.array([-1.0, 1.0, 255.0], dtype=jnp.float32)

    # Shape 1: block-divisible change-detection style (B, H, W).
    # 3*256*256 = 196608 elements = 1536 rows -> exercises inner accumulation
    # (multiple grid steps) plus the strip-mined fori_loop path.
    B, H, W = 3, 256, 256
    distance = jnp.abs(jax.random.normal(k1, (B, H, W), dtype=jnp.float32)) * 1.5
    label = choices[jax.random.randint(k2, (B, H, W), 0, 3)]

    loss = bcl_loss(distance, label, margin=2.0)
    jax.block_until_ready(loss)
    ref = _bcl_reference(distance, label, 2.0)
    assert jnp.allclose(loss, ref, rtol=1e-5, atol=1e-5), (loss, ref)

    # Shape 2: ragged element count -> kernel prefix + plain-JAX tail path.
    B2, H2, W2 = 2, 37, 50
    dist2 = jnp.abs(jax.random.normal(k3, (B2, H2, W2), dtype=jnp.float32)) * 1.5
    label2 = choices[jax.random.randint(k4, (B2, H2, W2), 0, 3)]

    loss2 = bcl_loss(dist2, label2, margin=2.0)
    jax.block_until_ready(loss2)
    ref2 = _bcl_reference(dist2, label2, 2.0)
    assert jnp.allclose(loss2, ref2, rtol=1e-5, atol=1e-5), (loss2, ref2)

    print("KERNEL_OK")
</pallas_src>

<mosaic_0001>
module attributes {stable_mosaic.version = 11 : i64} {
  func.func @_bcl_kernel(%arg0: i32, %arg1: i32, %arg2: memref<1x512x128xf32, #tpu.memory_space<vmem>>, %arg3: memref<1x512x128xf32, #tpu.memory_space<vmem>>, %arg4: memref<1x4x8x128xf32, #tpu.memory_space<vmem>>) attributes {dimension_semantics = [#tpu.dimension_semantics<parallel>, #tpu.dimension_semantics<arbitrary>], iteration_bounds = array<i64: 1, 3>, scalar_prefetch = 0 : i64, scratch_operands = 0 : i64, tpu.core_type = #tpu.core_type<tc>, window_params = [{transform_indices = @transform_0, window_bounds = array<i64: 1, 512, 128>}, {transform_indices = @transform_1, window_bounds = array<i64: 1, 512, 128>}, {transform_indices = @transform_2, window_bounds = array<i64: 1, 4, 8, 128>}]} {
    %c0_i32 = arith.constant 0 : i32
    %0 = arith.cmpi eq, %arg1, %c0_i32 : i32
    %1 = arith.extui %0 : i1 to i32
    %c0_i32_0 = arith.constant 0 : i32
    %2 = arith.cmpi ne, %1, %c0_i32_0 : i32
    scf.if %2 {
      %cst_193 = arith.constant 0.000000e+00 : f32
      %267 = vector.broadcast %cst_193 : f32 to vector<4x8x128xf32>
      %c0_194 = arith.constant 0 : index
      %c0_195 = arith.constant 0 : index
      %c0_196 = arith.constant 0 : index
      %c0_197 = arith.constant 0 : index
      %268 = vector.load %arg4[%c0_194, %c0_195, %c0_196, %c0_197] : memref<1x4x8x128xf32, #tpu.memory_space<vmem>>, vector<1x4x8x128xf32>
      %269 = vector.shape_cast %268 : vector<1x4x8x128xf32> to vector<4x8x128xf32>
      %270 = vector.shape_cast %267 : vector<4x8x128xf32> to vector<1x4x8x128xf32>
      tpu.vector_store %arg4[%c0_194, %c0_195, %c0_196, %c0_197], %270 {strides = array<i32>} : memref<1x4x8x128xf32, #tpu.memory_space<vmem>>, vector<1x4x8x128xf32>,
    } else {
    }
    %cst = arith.constant 2.000000e+00 : f32
    %c0_i32_1 = arith.constant 0 : i32
    %c128_i32 = arith.constant 128 : i32
    %3 = arith.muli %c0_i32_1, %c128_i32 : i32
    %4 = tpu.assume_multiple %3, 128 : i32
    %c0 = arith.constant 0 : index
    %5 = arith.index_cast %4 : i32 to index
    %c0_2 = arith.constant 0 : index
    %6 = vector.load %arg3[%c0, %5, %c0_2] : memref<1x512x128xf32, #tpu.memory_space<vmem>>, vector<1x128x128xf32>
    %7 = vector.shape_cast %6 : vector<1x128x128xf32> to vector<128x128xf32>
    %c0_3 = arith.constant 0 : index
    %8 = arith.index_cast %4 : i32 to index
    %c0_4 = arith.constant 0 : index
    %9 = vector.load %arg2[%c0_3, %8, %c0_4] : memref<1x512x128xf32, #tpu.memory_space<vmem>>, vector<1x128x128xf32>
    %10 = vector.shape_cast %9 : vector<1x128x128xf32> to vector<128x128xf32>
    %cst_5 = arith.constant 2.550000e+02 : f32
    %11 = vector.broadcast %cst_5 : f32 to vector<128x128xf32>
    %12 = arith.cmpf oeq, %7, %11 : vector<128x128xf32>
    %cst_6 = arith.constant 1.000000e+00 : f32
    %13 = vector.broadcast %cst_6 : f32 to vector<128x128xf32>
    %14 = arith.select %12, %13, %7 : vector<128x128xi1>, vector<128x128xf32>
    %cst_7 = arith.constant 5.000000e-01 : f32
    %15 = vector.broadcast %cst_7 : f32 to vector<128x128xf32>
    %16 = arith.mulf %15, %14 : vector<128x128xf32>
    %cst_8 = arith.constant 1.000000e+00 : f32
    %17 = vector.broadcast %cst_8 : f32 to vector<128x128xf32>
    %18 = arith.cmpf oeq, %14, %17 : vector<128x128xf32>
    %19 = arith.extui %18 : vector<128x128xi1> to vector<128x128xi32>
    %20 = arith.sitofp %19 : vector<128x128xi32> to vector<128x128xf32>
    %cst_9 = arith.constant -1.000000e+00 : f32
    %21 = vector.broadcast %cst_9 : f32 to vector<128x128xf32>
    %22 = arith.cmpf oeq, %14, %21 : vector<128x128xf32>
    %23 = arith.extui %22 : vector<128x128xi1> to vector<128x128xi32>
    %24 = arith.sitofp %23 : vector<128x128xi32> to vector<128x128xf32>
    %cst_10 = arith.constant 5.000000e-01 : f32
    %25 = vector.broadcast %cst_10 : f32 to vector<128x128xf32>
    %26 = arith.addf %25, %16 : vector<128x128xf32>
    %27 = arith.mulf %10, %10 : vector<128x128xf32>
    %28 = arith.mulf %26, %27 : vector<128x128xf32>
    %29 = vector.broadcast %cst : f32 to vector<128x128xf32>
    %30 = arith.subf %29, %10 : vector<128x128xf32>
    %cst_11 = arith.constant 0.000000e+00 : f32
    %31 = vector.broadcast %cst_11 : f32 to vector<128x128xf32>
    %32 = arith.maximumf %30, %31 : vector<128x128xf32>
    %cst_12 = arith.constant 5.000000e-01 : f32
    %33 = vector.broadcast %cst_12 : f32 to vector<128x128xf32>
    %34 = arith.subf %33, %16 : vector<128x128xf32>
    %35 = arith.mulf %32, %32 : vector<128x128xf32>
    %36 = arith.mulf %34, %35 : vector<128x128xf32>
    %c0_13 = arith.constant 0 : index
    %c0_14 = arith.constant 0 : index
    %c0_15 = arith.constant 0 : index
    %c0_16 = arith.constant 0 : index
    %37 = vector.load %arg4[%c0_13, %c0_14, %c0_15, %c0_16] : memref<1x4x8x128xf32, #tpu.memory_space<vmem>>, vector<1x1x8x128xf32>
    %38 = vector.shape_cast %37 : vector<1x1x8x128xf32> to vector<8x128xf32>
    %39 = vector.shape_cast %20 : vector<128x128xf32> to vector<16x8x128xf32>
    %cst_17 = arith.constant dense<0.000000e+00> : vector<8x128xf32>
    %40 = vector.multi_reduction <add>, %39, %cst_17 [0] : vector<16x8x128xf32> to vector<8x128xf32>
    %41 = arith.addf %38, %40 : vector<8x128xf32>
    %c0_18 = arith.constant 0 : index
    %c0_19 = arith.constant 0 : index
    %c0_20 = arith.constant 0 : index
    %c0_21 = arith.constant 0 : index
    %42 = vector.load %arg4[%c0_18, %c0_19, %c0_20, %c0_21] : memref<1x4x8x128xf32, #tpu.memory_space<vmem>>, vector<1x1x8x128xf32>
    %43 = vector.shape_cast %42 : vector<1x1x8x128xf32> to vector<8x128xf32>
    %44 = vector.shape_cast %41 : vector<8x128xf32> to vector<1x1x8x128xf32>
    tpu.vector_store %arg4[%c0_18, %c0_19, %c0_20, %c0_21], %44 {strides = array<i32>} : memref<1x4x8x128xf32, #tpu.memory_space<vmem>>, vector<1x1x8x128xf32>,
    %c0_22 = arith.constant 0 : index
    %c1 = arith.constant 1 : index
    %c0_23 = arith.constant 0 : index
    %c0_24 = arith.constant 0 : index
    %45 = vector.load %arg4[%c0_22, %c1, %c0_23, %c0_24] : memref<1x4x8x128xf32, #tpu.memory_space<vmem>>, vector<1x1x8x128xf32>
    %46 = vector.shape_cast %45 : vector<1x1x8x128xf32> to vector<8x128xf32>
    %47 = vector.shape_cast %24 : vector<128x128xf32> to vector<16x8x128xf32>
    %cst_25 = arith.constant dense<0.000000e+00> : vector<8x128xf32>
    %48 = vector.multi_reduction <add>, %47, %cst_25 [0] : vector<16x8x128xf32> to vector<8x128xf32>
    %49 = arith.addf %46, %48 : vector<8x128xf32>
    %c0_26 = arith.constant 0 : index
    %c1_27 = arith.constant 1 : index
    %c0_28 = arith.constant 0 : index
    %c0_29 = arith.constant 0 : index
    %50 = vector.load %arg4[%c0_26, %c1_27, %c0_28, %c0_29] : memref<1x4x8x128xf32, #tpu.memory_space<vmem>>, vector<1x1x8x128xf32>
    %51 = vector.shape_cast %50 : vector<1x1x8x128xf32> to vector<8x128xf32>
    %52 = vector.shape_cast %49 : vector<8x128xf32> to vector<1x1x8x128xf32>
    tpu.vector_store %arg4[%c0_26, %c1_27, %c0_28, %c0_29], %52 {strides = array<i32>} : memref<1x4x8x128xf32, #tpu.memory_space<vmem>>, vector<1x1x8x128xf32>,
    %c0_30 = arith.constant 0 : index
    %c2 = arith.constant 2 : index
    %c0_31 = arith.constant 0 : index
    %c0_32 = arith.constant 0 : index
    %53 = vector.load %arg4[%c0_30, %c2, %c0_31, %c0_32] : memref<1x4x8x128xf32, #tpu.memory_space<vmem>>, vector<1x1x8x128xf32>
    %54 = vector.shape_cast %53 : vector<1x1x8x128xf32> to vector<8x128xf32>
    %55 = vector.shape_cast %28 : vector<128x128xf32> to vector<16x8x128xf32>
    %cst_33 = arith.constant dense<0.000000e+00> : vector<8x128xf32>
    %56 = vector.multi_reduction <add>, %55, %cst_33 [0] : vector<16x8x128xf32> to vector<8x128xf32>
    %57 = arith.addf %54, %56 : vector<8x128xf32>
    %c0_34 = arith.constant 0 : index
    %c2_35 = arith.constant 2 : index
    %c0_36 = arith.constant 0 : index
    %c0_37 = arith.constant 0 : index
    %58 = vector.load %arg4[%c0_34, %c2_35, %c0_36, %c0_37] : memref<1x4x8x128xf32, #tpu.memory_space<vmem>>, vector<1x1x8x128xf32>
    %59 = vector.shape_cast %58 : vector<1x1x8x128xf32> to vector<8x128xf32>
    %60 = vector.shape_cast %57 : vector<8x128xf32> to vector<1x1x8x128xf32>
    tpu.vector_store %arg4[%c0_34, %c2_35, %c0_36, %c0_37], %60 {strides = array<i32>} : memref<1x4x8x128xf32, #tpu.memory_space<vmem>>, vector<1x1x8x128xf32>,
    %c0_38 = arith.constant 0 : index
    %c3 = arith.constant 3 : index
    %c0_39 = arith.constant 0 : index
    %c0_40 = arith.constant 0 : index
    %61 = vector.load %arg4[%c0_38, %c3, %c0_39, %c0_40] : memref<1x4x8x128xf32, #tpu.memory_space<vmem>>, vector<1x1x8x128xf32>
    %62 = vector.shape_cast %61 : vector<1x1x8x128xf32> to vector<8x128xf32>
    %63 = vector.shape_cast %36 : vector<128x128xf32> to vector<16x8x128xf32>
    %cst_41 = arith.constant dense<0.000000e+00> : vector<8x128xf32>
    %64 = vector.multi_reduction <add>, %63, %cst_41 [0] : vector<16x8x128xf32> to vector<8x128xf32>
    %65 = arith.addf %62, %64 : vector<8x128xf32>
    %c0_42 = arith.constant 0 : index
    %c3_43 = arith.constant 3 : index
    %c0_44 = arith.constant 0 : index
    %c0_45 = arith.constant 0 : index
    %66 = vector.load %arg4[%c0_42, %c3_43, %c0_44, %c0_45] : memref<1x4x8x128xf32, #tpu.memory_space<vmem>>, vector<1x1x8x128xf32>
    %67 = vector.shape_cast %66 : vector<1x1x8x128xf32> to vector<8x128xf32>
    %68 = vector.shape_cast %65 : vector<8x128xf32> to vector<1x1x8x128xf32>
    tpu.vector_store %arg4[%c0_42, %c3_43, %c0_44, %c0_45], %68 {strides = array<i32>} : memref<1x4x8x128xf32, #tpu.memory_space<vmem>>, vector<1x1x8x128xf32>,
    %c1_i32 = arith.constant 1 : i32
    %c128_i32_46 = arith.constant 128 : i32
    %69 = arith.muli %c1_i32, %c128_i32_46 : i32
    %70 = tpu.assume_multiple %69, 128 : i32
    %c0_47 = arith.constant 0 : index
    %71 = arith.index_cast %70 : i32 to index
    %c0_48 = arith.constant 0 : index
    %72 = vector.load %arg3[%c0_47, %71, %c0_48] : memref<1x512x128xf32, #tpu.memory_space<vmem>>, vector<1x128x128xf32>
    %73 = vector.shape_cast %72 : vector<1x128x128xf32> to vector<128x128xf32>
    %c0_49 = arith.constant 0 : index
    %74 = arith.index_cast %70 : i32 to index
    %c0_50 = arith.constant 0 : index
    %75 = vector.load %arg2[%c0_49, %74, %c0_50] : memref<1x512x128xf32, #tpu.memory_space<vmem>>, vector<1x128x128xf32>
    %76 = vector.shape_cast %75 : vector<1x128x128xf32> to vector<128x128xf32>
    %cst_51 = arith.constant 2.550000e+02 : f32
    %77 = vector.broadcast %cst_51 : f32 to vector<128x128xf32>
    %78 = arith.cmpf oeq, %73, %77 : vector<128x128xf32>
    %cst_52 = arith.constant 1.000000e+00 : f32
    %79 = vector.broadcast %cst_52 : f32 to vector<128x128xf32>
    %80 = arith.select %78, %79, %73 : vector<128x128xi1>, vector<128x128xf32>
    %cst_53 = arith.constant 5.000000e-01 : f32
    %81 = vector.broadcast %cst_53 : f32 to vector<128x128xf32>
    %82 = arith.mulf %81, %80 : vector<128x128xf32>
    %cst_54 = arith.constant 1.000000e+00 : f32
    %83 = vector.broadcast %cst_54 : f32 to vector<128x128xf32>
    %84 = arith.cmpf oeq, %80, %83 : vector<128x128xf32>
    %85 = arith.extui %84 : vector<128x128xi1> to vector<128x128xi32>
    %86 = arith.sitofp %85 : vector<128x128xi32> to vector<128x128xf32>
    %cst_55 = arith.constant -1.000000e+00 : f32
    %87 = vector.broadcast %cst_55 : f32 to vector<128x128xf32>
    %88 = arith.cmpf oeq, %80, %87 : vector<128x128xf32>
    %89 = arith.extui %88 : vector<128x128xi1> to vector<128x128xi32>
    %90 = arith.sitofp %89 : vector<128x128xi32> to vector<128x128xf32>
    %cst_56 = arith.constant 5.000000e-01 : f32
    %91 = vector.broadcast %cst_56 : f32 to vector<128x128xf32>
    %92 = arith.addf %91, %82 : vector<128x128xf32>
    %93 = arith.mulf %76, %76 : vector<128x128xf32>
    %94 = arith.mulf %92, %93 : vector<128x128xf32>
    %95 = vector.broadcast %cst : f32 to vector<128x128xf32>
    %96 = arith.subf %95, %76 : vector<128x128xf32>
    %cst_57 = arith.constant 0.000000e+00 : f32
    %97 = vector.broadcast %cst_57 : f32 to vector<128x128xf32>
    %98 = arith.maximumf %96, %97 : vector<128x128xf32>
    %cst_58 = arith.constant 5.000000e-01 : f32
    %99 = vector.broadcast %cst_58 : f32 to vector<128x128xf32>
    %100 = arith.subf %99, %82 : vector<128x128xf32>
    %101 = arith.mulf %98, %98 : vector<128x128xf32>
    %102 = arith.mulf %100, %101 : vector<128x128xf32>
    %c0_59 = arith.constant 0 : index
    %c0_60 = arith.constant 0 : index
    %c0_61 = arith.constant 0 : index
    %c0_62 = arith.constant 0 : index
    %103 = vector.load %arg4[%c0_59, %c0_60, %c0_61, %c0_62] : memref<1x4x8x128xf32, #tpu.memory_space<vmem>>, vector<1x1x8x128xf32>
    %104 = vector.shape_cast %103 : vector<1x1x8x128xf32> to vector<8x128xf32>
    %105 = vector.shape_cast %86 : vector<128x128xf32> to vector<16x8x128xf32>
    %cst_63 = arith.constant dense<0.000000e+00> : vector<8x128xf32>
    %106 = vector.multi_reduction <add>, %105, %cst_63 [0] : vector<16x8x128xf32> to vector<8x128xf32>
    %107 = arith.addf %104, %106 : vector<8x128xf32>
    %c0_64 = arith.constant 0 : index
    %c0_65 = arith.constant 0 : index
    %c0_66 = arith.constant 0 : index
    %c0_67 = arith.constant 0 : index
    %108 = vector.load %arg4[%c0_64, %c0_65, %c0_66, %c0_67] : memref<1x4x8x128xf32, #tpu.memory_space<vmem>>, vector<1x1x8x128xf32>
    %109 = vector.shape_cast %108 : vector<1x1x8x128xf32> to vector<8x128xf32>
    %110 = vector.shape_cast %107 : vector<8x128xf32> to vector<1x1x8x128xf32>
    tpu.vector_store %arg4[%c0_64, %c0_65, %c0_66, %c0_67], %110 {strides = array<i32>} : memref<1x4x8x128xf32, #tpu.memory_space<vmem>>, vector<1x1x8x128xf32>,
    %c0_68 = arith.constant 0 : index
    %c1_69 = arith.constant 1 : index
    %c0_70 = arith.constant 0 : index
    %c0_71 = arith.constant 0 : index
    %111 = vector.load %arg4[%c0_68, %c1_69, %c0_70, %c0_71] : memref<1x4x8x128xf32, #tpu.memory_space<vmem>>, vector<1x1x8x128xf32>
    %112 = vector.shape_cast %111 : vector<1x1x8x128xf32> to vector<8x128xf32>
    %113 = vector.shape_cast %90 : vector<128x128xf32> to vector<16x8x128xf32>
    %cst_72 = arith.constant dense<0.000000e+00> : vector<8x128xf32>
    %114 = vector.multi_reduction <add>, %113, %cst_72 [0] : vector<16x8x128xf32> to vector<8x128xf32>
    %115 = arith.addf %112, %114 : vector<8x128xf32>
    %c0_73 = arith.constant 0 : index
    %c1_74 = arith.constant 1 : index
    %c0_75 = arith.constant 0 : index
    %c0_76 = arith.constant 0 : index
    %116 = vector.load %arg4[%c0_73, %c1_74, %c0_75, %c0_76] : memref<1x4x8x128xf32, #tpu.memory_space<vmem>>, vector<1x1x8x128xf32>
    %117 = vector.shape_cast %116 : vector<1x1x8x128xf32> to vector<8x128xf32>
    %118 = vector.shape_cast %115 : vector<8x128xf32> to vector<1x1x8x128xf32>
    tpu.vector_store %arg4[%c0_73, %c1_74, %c0_75, %c0_76], %118 {strides = array<i32>} : memref<1x4x8x128xf32, #tpu.memory_space<vmem>>, vector<1x1x8x128xf32>,
    %c0_77 = arith.constant 0 : index
    %c2_78 = arith.constant 2 : index
    %c0_79 = arith.constant 0 : index
    %c0_80 = arith.constant 0 : index
    %119 = vector.load %arg4[%c0_77, %c2_78, %c0_79, %c0_80] : memref<1x4x8x128xf32, #tpu.memory_space<vmem>>, vector<1x1x8x128xf32>
    %120 = vector.shape_cast %119 : vector<1x1x8x128xf32> to vector<8x128xf32>
    %121 = vector.shape_cast %94 : vector<128x128xf32> to vector<16x8x128xf32>
    %cst_81 = arith.constant dense<0.000000e+00> : vector<8x128xf32>
    %122 = vector.multi_reduction <add>, %121, %cst_81 [0] : vector<16x8x128xf32> to vector<8x128xf32>
    %123 = arith.addf %120, %122 : vector<8x128xf32>
    %c0_82 = arith.constant 0 : index
    %c2_83 = arith.constant 2 : index
    %c0_84 = arith.constant 0 : index
    %c0_85 = arith.constant 0 : index
    %124 = vector.load %arg4[%c0_82, %c2_83, %c0_84, %c0_85] : memref<1x4x8x128xf32, #tpu.memory_space<vmem>>, vector<1x1x8x128xf32>
    %125 = vector.shape_cast %124 : vector<1x1x8x128xf32> to vector<8x128xf32>
    %126 = vector.shape_cast %123 : vector<8x128xf32> to vector<1x1x8x128xf32>
    tpu.vector_store %arg4[%c0_82, %c2_83, %c0_84, %c0_85], %126 {strides = array<i32>} : memref<1x4x8x128xf32, #tpu.memory_space<vmem>>, vector<1x1x8x128xf32>,
    %c0_86 = arith.constant 0 : index
    %c3_87 = arith.constant 3 : index
    %c0_88 = arith.constant 0 : index
    %c0_89 = arith.constant 0 : index
    %127 = vector.load %arg4[%c0_86, %c3_87, %c0_88, %c0_89] : memref<1x4x8x128xf32, #tpu.memory_space<vmem>>, vector<1x1x8x128xf32>
    %128 = vector.shape_cast %127 : vector<1x1x8x128xf32> to vector<8x128xf32>
    %129 = vector.shape_cast %102 : vector<128x128xf32> to vector<16x8x128xf32>
    %cst_90 = arith.constant dense<0.000000e+00> : vector<8x128xf32>
    %130 = vector.multi_reduction <add>, %129, %cst_90 [0] : vector<16x8x128xf32> to vector<8x128xf32>
    %131 = arith.addf %128, %130 : vector<8x128xf32>
    %c0_91 = arith.constant 0 : index
    %c3_92 = arith.constant 3 : index
    %c0_93 = arith.constant 0 : index
    %c0_94 = arith.constant 0 : index
    %132 = vector.load %arg4[%c0_91, %c3_92, %c0_93, %c0_94] : memref<1x4x8x128xf32, #tpu.memory_space<vmem>>, vector<1x1x8x128xf32>
    %133 = vector.shape_cast %132 : vector<1x1x8x128xf32> to vector<8x128xf32>
    %134 = vector.shape_cast %131 : vector<8x128xf32> to vector<1x1x8x128xf32>
    tpu.vector_store %arg4[%c0_91, %c3_92, %c0_93, %c0_94], %134 {strides = array<i32>} : memref<1x4x8x128xf32, #tpu.memory_space<vmem>>, vector<1x1x8x128xf32>,
    %c2_i32 = arith.constant 2 : i32
    %c128_i32_95 = arith.constant 128 : i32
    %135 = arith.muli %c2_i32, %c128_i32_95 : i32
    %136 = tpu.assume_multiple %135, 128 : i32
    %c0_96 = arith.constant 0 : index
    %137 = arith.index_cast %136 : i32 to index
    %c0_97 = arith.constant 0 : index
    %138 = vector.load %arg3[%c0_96, %137, %c0_97] : memref<1x512x128xf32, #tpu.memory_space<vmem>>, vector<1x128x128xf32>
    %139 = vector.shape_cast %138 : vector<1x128x128xf32> to vector<128x128xf32>
    %c0_98 = arith.constant 0 : index
    %140 = arith.index_cast %136 : i32 to index
    %c0_99 = arith.constant 0 : index
    %141 = vector.load %arg2[%c0_98, %140, %c0_99] : memref<1x512x128xf32, #tpu.memory_space<vmem>>, vector<1x128x128xf32>
    %142 = vector.shape_cast %141 : vector<1x128x128xf32> to vector<128x128xf32>
    %cst_100 = arith.constant 2.550000e+02 : f32
    %143 = vector.broadcast %cst_100 : f32 to vector<128x128xf32>
    %144 = arith.cmpf oeq, %139, %143 : vector<128x128xf32>
    %cst_101 = arith.constant 1.000000e+00 : f32
    %145 = vector.broadcast %cst_101 : f32 to vector<128x128xf32>
    %146 = arith.select %144, %145, %139 : vector<128x128xi1>, vector<128x128xf32>
    %cst_102 = arith.constant 5.000000e-01 : f32
    %147 = vector.broadcast %cst_102 : f32 to vector<128x128xf32>
    %148 = arith.mulf %147, %146 : vector<128x128xf32>
    %cst_103 = arith.constant 1.000000e+00 : f32
    %149 = vector.broadcast %cst_103 : f32 to vector<128x128xf32>
    %150 = arith.cmpf oeq, %146, %149 : vector<128x128xf32>
    %151 = arith.extui %150 : vector<128x128xi1> to vector<128x128xi32>
    %152 = arith.sitofp %151 : vector<128x128xi32> to vector<128x128xf32>
    %cst_104 = arith.constant -1.000000e+00 : f32
    %153 = vector.broadcast %cst_104 : f32 to vector<128x128xf32>
    %154 = arith.cmpf oeq, %146, %153 : vector<128x128xf32>
    %155 = arith.extui %154 : vector<128x128xi1> to vector<128x128xi32>
    %156 = arith.sitofp %155 : vector<128x128xi32> to vector<128x128xf32>
    %cst_105 = arith.constant 5.000000e-01 : f32
    %157 = vector.broadcast %cst_105 : f32 to vector<128x128xf32>
    %158 = arith.addf %157, %148 : vector<128x128xf32>
    %159 = arith.mulf %142, %142 : vector<128x128xf32>
    %160 = arith.mulf %158, %159 : vector<128x128xf32>
    %161 = vector.broadcast %cst : f32 to vector<128x128xf32>
    %162 = arith.subf %161, %142 : vector<128x128xf32>
    %cst_106 = arith.constant 0.000000e+00 : f32
    %163 = vector.broadcast %cst_106 : f32 to vector<128x128xf32>
    %164 = arith.maximumf %162, %163 : vector<128x128xf32>
    %cst_107 = arith.constant 5.000000e-01 : f32
    %165 = vector.broadcast %cst_107 : f32 to vector<128x128xf32>
    %166 = arith.subf %165, %148 : vector<128x128xf32>
    %167 = arith.mulf %164, %164 : vector<128x128xf32>
    %168 = arith.mulf %166, %167 : vector<128x128xf32>
    %c0_108 = arith.constant 0 : index
    %c0_109 = arith.constant 0 : index
    %c0_110 = arith.constant 0 : index
    %c0_111 = arith.constant 0 : index
    %169 = vector.load %arg4[%c0_108, %c0_109, %c0_110, %c0_111] : memref<1x4x8x128xf32, #tpu.memory_space<vmem>>, vector<1x1x8x128xf32>
    %170 = vector.shape_cast %169 : vector<1x1x8x128xf32> to vector<8x128xf32>
    %171 = vector.shape_cast %152 : vector<128x128xf32> to vector<16x8x128xf32>
    %cst_112 = arith.constant dense<0.000000e+00> : vector<8x128xf32>
    %172 = vector.multi_reduction <add>, %171, %cst_112 [0] : vector<16x8x128xf32> to vector<8x128xf32>
    %173 = arith.addf %170, %172 : vector<8x128xf32>
    %c0_113 = arith.constant 0 : index
    %c0_114 = arith.constant 0 : index
    %c0_115 = arith.constant 0 : index
    %c0_116 = arith.constant 0 : index
    %174 = vector.load %arg4[%c0_113, %c0_114, %c0_115, %c0_116] : memref<1x4x8x128xf32, #tpu.memory_space<vmem>>, vector<1x1x8x128xf32>
    %175 = vector.shape_cast %174 : vector<1x1x8x128xf32> to vector<8x128xf32>
    %176 = vector.shape_cast %173 : vector<8x128xf32> to vector<1x1x8x128xf32>
    tpu.vector_store %arg4[%c0_113, %c0_114, %c0_115, %c0_116], %176 {strides = array<i32>} : memref<1x4x8x128xf32, #tpu.memory_space<vmem>>, vector<1x1x8x128xf32>,
    %c0_117 = arith.constant 0 : index
    %c1_118 = arith.constant 1 : index
    %c0_119 = arith.constant 0 : index
    %c0_120 = arith.constant 0 : index
    %177 = vector.load %arg4[%c0_117, %c1_118, %c0_119, %c0_120] : memref<1x4x8x128xf32, #tpu.memory_space<vmem>>, vector<1x1x8x128xf32>
    %178 = vector.shape_cast %177 : vector<1x1x8x128xf32> to vector<8x128xf32>
    %179 = vector.shape_cast %156 : vector<128x128xf32> to vector<16x8x128xf32>
    %cst_121 = arith.constant dense<0.000000e+00> : vector<8x128xf32>
    %180 = vector.multi_reduction <add>, %179, %cst_121 [0] : vector<16x8x128xf32> to vector<8x128xf32>
    %181 = arith.addf %178, %180 : vector<8x128xf32>
    %c0_122 = arith.constant 0 : index
    %c1_123 = arith.constant 1 : index
    %c0_124 = arith.constant 0 : index
    %c0_125 = arith.constant 0 : index
    %182 = vector.load %arg4[%c0_122, %c1_123, %c0_124, %c0_125] : memref<1x4x8x128xf32, #tpu.memory_space<vmem>>, vector<1x1x8x128xf32>
    %183 = vector.shape_cast %182 : vector<1x1x8x128xf32> to vector<8x128xf32>
    %184 = vector.shape_cast %181 : vector<8x128xf32> to vector<1x1x8x128xf32>
    tpu.vector_store %arg4[%c0_122, %c1_123, %c0_124, %c0_125], %184 {strides = array<i32>} : memref<1x4x8x128xf32, #tpu.memory_space<vmem>>, vector<1x1x8x128xf32>,
    %c0_126 = arith.constant 0 : index
    %c2_127 = arith.constant 2 : index
    %c0_128 = arith.constant 0 : index
    %c0_129 = arith.constant 0 : index
    %185 = vector.load %arg4[%c0_126, %c2_127, %c0_128, %c0_129] : memref<1x4x8x128xf32, #tpu.memory_space<vmem>>, vector<1x1x8x128xf32>
    %186 = vector.shape_cast %185 : vector<1x1x8x128xf32> to vector<8x128xf32>
    %187 = vector.shape_cast %160 : vector<128x128xf32> to vector<16x8x128xf32>
    %cst_130 = arith.constant dense<0.000000e+00> : vector<8x128xf32>
    %188 = vector.multi_reduction <add>, %187, %cst_130 [0] : vector<16x8x128xf32> to vector<8x128xf32>
    %189 = arith.addf %186, %188 : vector<8x128xf32>
    %c0_131 = arith.constant 0 : index
    %c2_132 = arith.constant 2 : index
    %c0_133 = arith.constant 0 : index
    %c0_134 = arith.constant 0 : index
    %190 = vector.load %arg4[%c0_131, %c2_132, %c0_133, %c0_134] : memref<1x4x8x128xf32, #tpu.memory_space<vmem>>, vector<1x1x8x128xf32>
    %191 = vector.shape_cast %190 : vector<1x1x8x128xf32> to vector<8x128xf32>
    %192 = vector.shape_cast %189 : vector<8x128xf32> to vector<1x1x8x128xf32>
    tpu.vector_store %arg4[%c0_131, %c2_132, %c0_133, %c0_134], %192 {strides = array<i32>} : memref<1x4x8x128xf32, #tpu.memory_space<vmem>>, vector<1x1x8x128xf32>,
    %c0_135 = arith.constant 0 : index
    %c3_136 = arith.constant 3 : index
    %c0_137 = arith.constant 0 : index
    %c0_138 = arith.constant 0 : index
    %193 = vector.load %arg4[%c0_135, %c3_136, %c0_137, %c0_138] : memref<1x4x8x128xf32, #tpu.memory_space<vmem>>, vector<1x1x8x128xf32>
    %194 = vector.shape_cast %193 : vector<1x1x8x128xf32> to vector<8x128xf32>
    %195 = vector.shape_cast %168 : vector<128x128xf32> to vector<16x8x128xf32>
    %cst_139 = arith.constant dense<0.000000e+00> : vector<8x128xf32>
    %196 = vector.multi_reduction <add>, %195, %cst_139 [0] : vector<16x8x128xf32> to vector<8x128xf32>
    %197 = arith.addf %194, %196 : vector<8x128xf32>
    %c0_140 = arith.constant 0 : index
    %c3_141 = arith.constant 3 : index
    %c0_142 = arith.constant 0 : index
    %c0_143 = arith.constant 0 : index
    %198 = vector.load %arg4[%c0_140, %c3_141, %c0_142, %c0_143] : memref<1x4x8x128xf32, #tpu.memory_space<vmem>>, vector<1x1x8x128xf32>
    %199 = vector.shape_cast %198 : vector<1x1x8x128xf32> to vector<8x128xf32>
    %200 = vector.shape_cast %197 : vector<8x128xf32> to vector<1x1x8x128xf32>
    tpu.vector_store %arg4[%c0_140, %c3_141, %c0_142, %c0_143], %200 {strides = array<i32>} : memref<1x4x8x128xf32, #tpu.memory_space<vmem>>, vector<1x1x8x128xf32>,
    %c3_i32 = arith.constant 3 : i32
    %c128_i32_144 = arith.constant 128 : i32
    %201 = arith.muli %c3_i32, %c128_i32_144 : i32
    %202 = tpu.assume_multiple %201, 128 : i32
    %c0_145 = arith.constant 0 : index
    %203 = arith.index_cast %202 : i32 to index
    %c0_146 = arith.constant 0 : index
    %204 = vector.load %arg3[%c0_145, %203, %c0_146] : memref<1x512x128xf32, #tpu.memory_space<vmem>>, vector<1x128x128xf32>
    %205 = vector.shape_cast %204 : vector<1x128x128xf32> to vector<128x128xf32>
    %c0_147 = arith.constant 0 : index
    %206 = arith.index_cast %202 : i32 to index
    %c0_148 = arith.constant 0 : index
    %207 = vector.load %arg2[%c0_147, %206, %c0_148] : memref<1x512x128xf32, #tpu.memory_space<vmem>>, vector<1x128x128xf32>
    %208 = vector.shape_cast %207 : vector<1x128x128xf32> to vector<128x128xf32>
    %cst_149 = arith.constant 2.550000e+02 : f32
    %209 = vector.broadcast %cst_149 : f32 to vector<128x128xf32>
    %210 = arith.cmpf oeq, %205, %209 : vector<128x128xf32>
    %cst_150 = arith.constant 1.000000e+00 : f32
    %211 = vector.broadcast %cst_150 : f32 to vector<128x128xf32>
    %212 = arith.select %210, %211, %205 : vector<128x128xi1>, vector<128x128xf32>
    %cst_151 = arith.constant 5.000000e-01 : f32
    %213 = vector.broadcast %cst_151 : f32 to vector<128x128xf32>
    %214 = arith.mulf %213, %212 : vector<128x128xf32>
    %cst_152 = arith.constant 1.000000e+00 : f32
    %215 = vector.broadcast %cst_152 : f32 to vector<128x128xf32>
    %216 = arith.cmpf oeq, %212, %215 : vector<128x128xf32>
    %217 = arith.extui %216 : vector<128x128xi1> to vector<128x128xi32>
    %218 = arith.sitofp %217 : vector<128x128xi32> to vector<128x128xf32>
    %cst_153 = arith.constant -1.000000e+00 : f32
    %219 = vector.broadcast %cst_153 : f32 to vector<128x128xf32>
    %220 = arith.cmpf oeq, %212, %219 : vector<128x128xf32>
    %221 = arith.extui %220 : vector<128x128xi1> to vector<128x128xi32>
    %222 = arith.sitofp %221 : vector<128x128xi32> to vector<128x128xf32>
    %cst_154 = arith.constant 5.000000e-01 : f32
    %223 = vector.broadcast %cst_154 : f32 to vector<128x128xf32>
    %224 = arith.addf %223, %214 : vector<128x128xf32>
    %225 = arith.mulf %208, %208 : vector<128x128xf32>
    %226 = arith.mulf %224, %225 : vector<128x128xf32>
    %227 = vector.broadcast %cst : f32 to vector<128x128xf32>
    %228 = arith.subf %227, %208 : vector<128x128xf32>
    %cst_155 = arith.constant 0.000000e+00 : f32
    %229 = vector.broadcast %cst_155 : f32 to vector<128x128xf32>
    %230 = arith.maximumf %228, %229 : vector<128x128xf32>
    %cst_156 = arith.constant 5.000000e-01 : f32
    %231 = vector.broadcast %cst_156 : f32 to vector<128x128xf32>
    %232 = arith.subf %231, %214 : vector<128x128xf32>
    %233 = arith.mulf %230, %230 : vector<128x128xf32>
    %234 = arith.mulf %232, %233 : vector<128x128xf32>
    %c0_157 = arith.constant 0 : index
    %c0_158 = arith.constant 0 : index
    %c0_159 = arith.constant 0 : index
    %c0_160 = arith.constant 0 : index
    %235 = vector.load %arg4[%c0_157, %c0_158, %c0_159, %c0_160] : memref<1x4x8x128xf32, #tpu.memory_space<vmem>>, vector<1x1x8x128xf32>
    %236 = vector.shape_cast %235 : vector<1x1x8x128xf32> to vector<8x128xf32>
    %237 = vector.shape_cast %218 : vector<128x128xf32> to vector<16x8x128xf32>
    %cst_161 = arith.constant dense<0.000000e+00> : vector<8x128xf32>
    %238 = vector.multi_reduction <add>, %237, %cst_161 [0] : vector<16x8x128xf32> to vector<8x128xf32>
    %239 = arith.addf %236, %238 : vector<8x128xf32>
    %c0_162 = arith.constant 0 : index
    %c0_163 = arith.constant 0 : index
    %c0_164 = arith.constant 0 : index
    %c0_165 = arith.constant 0 : index
    %240 = vector.load %arg4[%c0_162, %c0_163, %c0_164, %c0_165] : memref<1x4x8x128xf32, #tpu.memory_space<vmem>>, vector<1x1x8x128xf32>
    %241 = vector.shape_cast %240 : vector<1x1x8x128xf32> to vector<8x128xf32>
    %242 = vector.shape_cast %239 : vector<8x128xf32> to vector<1x1x8x128xf32>
    tpu.vector_store %arg4[%c0_162, %c0_163, %c0_164, %c0_165], %242 {strides = array<i32>} : memref<1x4x8x128xf32, #tpu.memory_space<vmem>>, vector<1x1x8x128xf32>,
    %c0_166 = arith.constant 0 : index
    %c1_167 = arith.constant 1 : index
    %c0_168 = arith.constant 0 : index
    %c0_169 = arith.constant 0 : index
    %243 = vector.load %arg4[%c0_166, %c1_167, %c0_168, %c0_169] : memref<1x4x8x128xf32, #tpu.memory_space<vmem>>, vector<1x1x8x128xf32>
    %244 = vector.shape_cast %243 : vector<1x1x8x128xf32> to vector<8x128xf32>
    %245 = vector.shape_cast %222 : vector<128x128xf32> to vector<16x8x128xf32>
    %cst_170 = arith.constant dense<0.000000e+00> : vector<8x128xf32>
    %246 = vector.multi_reduction <add>, %245, %cst_170 [0] : vector<16x8x128xf32> to vector<8x128xf32>
    %247 = arith.addf %244, %246 : vector<8x128xf32>
    %c0_171 = arith.constant 0 : index
    %c1_172 = arith.constant 1 : index
    %c0_173 = arith.constant 0 : index
    %c0_174 = arith.constant 0 : index
    %248 = vector.load %arg4[%c0_171, %c1_172, %c0_173, %c0_174] : memref<1x4x8x128xf32, #tpu.memory_space<vmem>>, vector<1x1x8x128xf32>
    %249 = vector.shape_cast %248 : vector<1x1x8x128xf32> to vector<8x128xf32>
    %250 = vector.shape_cast %247 : vector<8x128xf32> to vector<1x1x8x128xf32>
    tpu.vector_store %arg4[%c0_171, %c1_172, %c0_173, %c0_174], %250 {strides = array<i32>} : memref<1x4x8x128xf32, #tpu.memory_space<vmem>>, vector<1x1x8x128xf32>,
    %c0_175 = arith.constant 0 : index
    %c2_176 = arith.constant 2 : index
    %c0_177 = arith.constant 0 : index
    %c0_178 = arith.constant 0 : index
    %251 = vector.load %arg4[%c0_175, %c2_176, %c0_177, %c0_178] : memref<1x4x8x128xf32, #tpu.memory_space<vmem>>, vector<1x1x8x128xf32>
    %252 = vector.shape_cast %251 : vector<1x1x8x128xf32> to vector<8x128xf32>
    %253 = vector.shape_cast %226 : vector<128x128xf32> to vector<16x8x128xf32>
    %cst_179 = arith.constant dense<0.000000e+00> : vector<8x128xf32>
    %254 = vector.multi_reduction <add>, %253, %cst_179 [0] : vector<16x8x128xf32> to vector<8x128xf32>
    %255 = arith.addf %252, %254 : vector<8x128xf32>
    %c0_180 = arith.constant 0 : index
    %c2_181 = arith.constant 2 : index
    %c0_182 = arith.constant 0 : index
    %c0_183 = arith.constant 0 : index
    %256 = vector.load %arg4[%c0_180, %c2_181, %c0_182, %c0_183] : memref<1x4x8x128xf32, #tpu.memory_space<vmem>>, vector<1x1x8x128xf32>
    %257 = vector.shape_cast %256 : vector<1x1x8x128xf32> to vector<8x128xf32>
    %258 = vector.shape_cast %255 : vector<8x128xf32> to vector<1x1x8x128xf32>
    tpu.vector_store %arg4[%c0_180, %c2_181, %c0_182, %c0_183], %258 {strides = array<i32>} : memref<1x4x8x128xf32, #tpu.memory_space<vmem>>, vector<1x1x8x128xf32>,
    %c0_184 = arith.constant 0 : index
    %c3_185 = arith.constant 3 : index
    %c0_186 = arith.constant 0 : index
    %c0_187 = arith.constant 0 : index
    %259 = vector.load %arg4[%c0_184, %c3_185, %c0_186, %c0_187] : memref<1x4x8x128xf32, #tpu.memory_space<vmem>>, vector<1x1x8x128xf32>
    %260 = vector.shape_cast %259 : vector<1x1x8x128xf32> to vector<8x128xf32>
    %261 = vector.shape_cast %234 : vector<128x128xf32> to vector<16x8x128xf32>
    %cst_188 = arith.constant dense<0.000000e+00> : vector<8x128xf32>
    %262 = vector.multi_reduction <add>, %261, %cst_188 [0] : vector<16x8x128xf32> to vector<8x128xf32>
    %263 = arith.addf %260, %262 : vector<8x128xf32>
    %c0_189 = arith.constant 0 : index
    %c3_190 = arith.constant 3 : index
    %c0_191 = arith.constant 0 : index
    %c0_192 = arith.constant 0 : index
    %264 = vector.load %arg4[%c0_189, %c3_190, %c0_191, %c0_192] : memref<1x4x8x128xf32, #tpu.memory_space<vmem>>, vector<1x1x8x128xf32>
    %265 = vector.shape_cast %264 : vector<1x1x8x128xf32> to vector<8x128xf32>
    %266 = vector.shape_cast %263 : vector<8x128xf32> to vector<1x1x8x128xf32>
    tpu.vector_store %arg4[%c0_189, %c3_190, %c0_191, %c0_192], %266 {strides = array<i32>} : memref<1x4x8x128xf32, #tpu.memory_space<vmem>>, vector<1x1x8x128xf32>,
    %c4_i32 = arith.constant 4 : i32
    return
  }
  func.func @transform_0(%arg0: i32, %arg1: i32) -> (i32, i32, i32) {
    %c0_i32 = arith.constant 0 : i32
    %c0_i32_0 = arith.constant 0 : i32
    return %arg0, %arg1, %c0_i32 : i32, i32, i32
  }
  func.func @transform_1(%arg0: i32, %arg1: i32) -> (i32, i32, i32) {
    %c0_i32 = arith.constant 0 : i32
    %c0_i32_0 = arith.constant 0 : i32
    return %arg0, %arg1, %c0_i32 : i32, i32, i32
  }
  func.func @transform_2(%arg0: i32, %arg1: i32) -> (i32, i32, i32, i32) {
    %c0_i32 = arith.constant 0 : i32
    %c0_i32_0 = arith.constant 0 : i32
    %c0_i32_1 = arith.constant 0 : i32
    %c0_i32_2 = arith.constant 0 : i32
    return %arg0, %c0_i32, %c0_i32_0, %c0_i32_1 : i32, i32, i32, i32
  }
}

</mosaic_0001>

<bundles_post_ra>
// kernel: bcl_loss.1
= control target key start
LH: loop header
LB: loop body
LE: loop exit
PB: predicated region body
PF: predicated region fallthrough
CT: control target
= control target key end

     0   :  { %s2141_s9 = smov 0   ;;  %s2143_s10 = smov 0   ;;  %s4026_s0 = inlined_call_operand.vmem [shape: f32[1,1536,128], index: 0, kind: input, shape index: {}]   ;;  %s4027_s1 = inlined_call_operand.vmem [shape: f32[1,1536,128], index: 1, kind: input, shape index: {}]   ;;  %s4028_s2 = inlined_call_operand.vmem [shape: f32[1,4,8,128], index: 2, kind: output, shape index: {}]  }
   0x1   :  { %s2145_s11 = smov 0  }
   0x2 LB: > { %s21_s12 = sadd.s32 1, %s2118_s10  ;;  %p1817_p0 = scmp.ge.s32.totalorder %s2122_s11, 1  ;;  %s2122_s11 = sphi %s2145_s11, %s12_s11   ;;  %s2118_s10 = sphi %s2143_s10, %s4478_s10   ;;  %s2114_s9 = sphi %s2141_s9, %s4477_s9  }
   0x3   : > { %p22_p1 = scmp.ge.s32.totalorder %s21_s12, 3  ;;  %p148_p2 = scmp.lt.s32.totalorder %s2122_s11, 4 }
   0x5   : > { %s4480_s12 = smov (%p22_p1, %s21_s12), 0  ;;  %p149_p3 = pnand %p1817_p0, %p148_p2 }
   0x7   : > { %152 = sbr.rel (%p149_p3) target bundleno = 334 (0x14e), region = 28 }
   0xc   : > { %s1818_s13 = sshll.u32 %s2114_s9, 6  ;;  %p1822_p5 = scmp.ne.s32.totalorder %s2114_s9, 0 }
   0xd   : > { %p186_p4 = scmp.lt.s32.totalorder %s1818_s13, 191 }
   0xe   : > { %211 = sbr.rel (%p1822_p5) target bundleno = 22 (0x16), region = 32 }
   0xf   : > { %s4482_s13 = smov (!%p186_p4, %s1818_s13), 191 }
  0x10   : > { %s1819_s14 = sshll.u32 %s4482_s13, 3 }
  0x11   : > { %s2162_s17 = scalar_lea.vmem %s4026_s0, %s1819_s14  ;;  %s2167_s20 = scalar_lea.vmem %s4027_s1, %s1819_s14 }
  0x13   : > { %v2124_v0 = vmov 0.0  }
  0x14   : > { %212 = vst [vmem:[%s4028_s2] sm:$0xff] %v2124_v0  ;;  %213 = vst [vmem:[%s4028_s2 + $0x8] sm:$0xff] %v2124_v0 }
  0x15   : > { %214 = vst [vmem:[%s4028_s2 + $0x10] sm:$0xff] %v2124_v0  ;;  %215 = vst [vmem:[%s4028_s2 + $0x18] sm:$0xff] %v2124_v0 }
  0x16 PF: > { %v216_v1 = vld [vmem:[%s2167_s20] sm:$0xff]  ;;  %v217_v2 = vld [vmem:[%s2167_s20 + $0x8] sm:$0xff]  ;;  %v218_v3 = vld [vmem:[%s2167_s20 + $0x10] sm:$0xff]  ;;  %v4029_v57 = vmov 0.0  }
  0x17   : > { %v219_v4 = vld [vmem:[%s2167_s20 + $0x18] sm:$0xff]  ;;  %v220_v5 = vld [vmem:[%s2167_s20 + $0x20] sm:$0xff]  ;;  %v221_v6 = vld [vmem:[%s2167_s20 + $0x28] sm:$0xff]  ;;  %vm248_vm0 = vcmp.eq.f32.partialorder %v216_v1, 255.0  ;;  %vm249_vm1 = vcmp.eq.f32.partialorder %v217_v2, 255.0  ;;  %vm250_vm2 = vcmp.eq.f32.partialorder %v218_v3, 255.0 }
  0x18   : > { %v222_v7 = vld [vmem:[%s2167_s20 + $0x30] sm:$0xff]  ;;  %v223_v8 = vld [vmem:[%s2167_s20 + $0x38] sm:$0xff]  ;;  %v224_v9 = vld [vmem:[%s2167_s20 + $0x40] sm:$0xff]  ;;  %vm251_vm3 = vcmp.eq.f32.partialorder %v219_v4, 255.0  ;;  %vm252_vm4 = vcmp.eq.f32.partialorder %v220_v5, 255.0  ;;  %vm253_vm5 = vcmp.eq.f32.partialorder %v221_v6, 255.0 }
  0x19   : > { %v225_v10 = vld [vmem:[%s2167_s20 + $0x48] sm:$0xff]  ;;  %v226_v11 = vld [vmem:[%s2167_s20 + $0x50] sm:$0xff]  ;;  %v227_v12 = vld [vmem:[%s2167_s20 + $0x58] sm:$0xff]  ;;  %vm254_vm6 = vcmp.eq.f32.partialorder %v222_v7, 255.0  ;;  %vm255_vm7 = vcmp.eq.f32.partialorder %v223_v8, 255.0  ;;  %vm256_vm8 = vcmp.eq.f32.partialorder %v224_v9, 255.0 }
  0x1a   : > { %v228_v13 = vld [vmem:[%s2167_s20 + $0x60] sm:$0xff]  ;;  %v229_v14 = vld [vmem:[%s2167_s20 + $0x68] sm:$0xff]  ;;  %v230_v15 = vld [vmem:[%s2167_s20 + $0x70] sm:$0xff]  ;;  %vm257_vm9 = vcmp.eq.f32.partialorder %v225_v10, 255.0  ;;  %vm258_vm10 = vcmp.eq.f32.partialorder %v226_v11, 255.0  ;;  %vm259_vm11 = vcmp.eq.f32.partialorder %v227_v12, 255.0 }
  0x1b   : > { %v231_v16 = vld [vmem:[%s2167_s20 + $0x78] sm:$0xff]  ;;  %v2198_v17 = vld [vmem:[%s2162_s17] sm:$0xff]  ;;  %vm260_vm12 = vcmp.eq.f32.partialorder %v228_v13, 255.0  ;;  %vm261_vm13 = vcmp.eq.f32.partialorder %v229_v14, 255.0  ;;  %vm262_vm14 = vcmp.eq.f32.partialorder %v230_v15, 255.0  ;;  %v2201_v18 = vld [vmem:[%s2162_s17 + $0x8] sm:$0xff] }
  0x1c   : > { %vm263_vm15 = vcmp.eq.f32.partialorder %v231_v16, 255.0  ;;  %v2204_v19 = vsel %vm248_vm0, 1.0, %v216_v1  ;;  %v2207_v20 = vsel %vm249_vm1, 1.0, %v217_v2  ;;  %v2210_v21 = vsel %vm250_vm2, 1.0, %v218_v3  ;;  %v2217_v23 = vld [vmem:[%s2162_s17 + $0x10] sm:$0xff]  ;;  %v2233_v28 = vld [vmem:[%s2162_s17 + $0x18] sm:$0xff] }
  0x1d   : > { %v2214_v22 = vmul.f32 %v2198_v17, %v2198_v17  ;;  %v2220_v24 = vsel %vm251_vm3, 1.0, %v219_v4  ;;  %v2223_v25 = vsel %vm252_vm4, 1.0, %v220_v5  ;;  %v2226_v26 = vsel %vm253_vm5, 1.0, %v221_v6 }
  0x1e   : > { %v2230_v27 = vmul.f32 %v2201_v18, %v2201_v18  ;;  %v2236_v29 = vsel %vm254_vm6, 1.0, %v222_v7  ;;  %v2239_v30 = vsel %vm255_vm7, 1.0, %v223_v8  ;;  %v2242_v31 = vsel %vm256_vm8, 1.0, %v224_v9 }
  0x1f   : > { %v2246_v32 = vmul.f32 %v2217_v23, %v2217_v23  ;;  %v2249_v33 = vsel %vm257_vm9, 1.0, %v225_v10  ;;  %v2252_v34 = vsel %vm258_vm10, 1.0, %v226_v11  ;;  %v2255_v35 = vsel %vm259_vm11, 1.0, %v227_v12 }
  0x20   : > { %v2259_v36 = vmul.f32 %v2233_v28, %v2233_v28  ;;  %v2262_v37 = vsel %vm260_vm12, 1.0, %v228_v13  ;;  %v2265_v38 = vsel %vm261_vm13, 1.0, %v229_v14  ;;  %v2268_v39 = vsel %vm262_vm14, 1.0, %v230_v15 }
  0x21   : > { %4099 = vst [vmem:[#allocation2_spill] sm:$0xff] %v2262_v37  ;;  %4100 = vst [vmem:[#allocation3_spill] sm:$0xff] %v2265_v38  ;;  %v2271_v40 = vsel %vm263_vm15, 1.0, %v231_v16  ;;  %v2274_v41 = vmul.f32 0.5, %v2204_v19  ;;  %v2277_v42 = vmul.f32 0.5, %v2207_v20  ;;  %v2280_v43 = vmul.f32 0.5, %v2210_v21 }
  0x22   : > { %4101 = vst [vmem:[#allocation4_spill] sm:$0xff] %v2268_v39  ;;  %4102 = vst [vmem:[#allocation5_spill] sm:$0xff] %v2271_v40  ;;  %v2283_v44 = vmul.f32 0.5, %v2220_v24  ;;  %v2286_v45 = vmul.f32 0.5, %v2223_v25  ;;  %v2289_v46 = vmul.f32 0.5, %v2226_v26  ;;  %v2292_v47 = vmul.f32 0.5, %v2236_v29 }
  0x23   : > { %v2295_v48 = vmul.f32 0.5, %v2239_v30  ;;  %v2298_v49 = vmul.f32 0.5, %v2242_v31  ;;  %v2301_v50 = vmul.f32 0.5, %v2249_v33  ;;  %v2304_v51 = vmul.f32 0.5, %v2252_v34 }
  0x24   : > { %v2307_v52 = vmul.f32 0.5, %v2255_v35  ;;  %v2310_v53 = vmul.f32 0.5, %v2262_v37  ;;  %v2313_v54 = vmul.f32 0.5, %v2265_v38  ;;  %v2316_v55 = vmul.f32 0.5, %v2268_v39 }
  0x25   : > { %4103 = vst [vmem:[#allocation6_spill] sm:$0xff] %v2298_v49  ;;  %4104 = vst [vmem:[#allocation7_spill] sm:$0xff] %v2301_v50  ;;  %v2319_v56 = vmul.f32 0.5, %v2271_v40  ;;  %vm296_vm0 = vcmp.eq.f32.partialorder %v2204_v19, 1.0  ;;  %vm297_vm1 = vcmp.eq.f32.partialorder %v2207_v20, 1.0  ;;  %vm298_vm2 = vcmp.eq.f32.partialorder %v2210_v21, 1.0 }
  0x26   : > { %4105 = vst [vmem:[#allocation8_spill] sm:$0xff] %v2304_v51  ;;  %4106 = vst [vmem:[#allocation9_spill] sm:$0xff] %v2307_v52  ;;  %vm299_vm3 = vcmp.eq.f32.partialorder %v2220_v24, 1.0  ;;  %vm300_vm4 = vcmp.eq.f32.partialorder %v2223_v25, 1.0  ;;  %vm301_vm5 = vcmp.eq.f32.partialorder %v2226_v26, 1.0  ;;  %vm302_vm6 = vcmp.eq.f32.partialorder %v2236_v29, 1.0 }
  0x27   : > { %4107 = vst [vmem:[#allocation10_spill] sm:$0xff] %v2310_v53  ;;  %4108 = vst [vmem:[#allocation11_spill] sm:$0xff] %v2313_v54  ;;  %vm303_vm7 = vcmp.eq.f32.partialorder %v2239_v30, 1.0  ;;  %vm304_vm8 = vcmp.eq.f32.partialorder %v2242_v31, 1.0  ;;  %vm305_vm9 = vcmp.eq.f32.partialorder %v2249_v33, 1.0  ;;  %vm306_vm10 = vcmp.eq.f32.partialorder %v2252_v34, 1.0 }
  0x28   : > { %4109 = vst [vmem:[#allocation12_spill] sm:$0xff] %v2316_v55  ;;  %4110 = vst [vmem:[#allocation13_spill] sm:$0xff] %v2319_v56  ;;  %vm307_vm11 = vcmp.eq.f32.partialorder %v2255_v35, 1.0  ;;  %vm308_vm12 = vcmp.eq.f32.partialorder %v2262_v37, 1.0  ;;  %vm309_vm13 = vcmp.eq.f32.partialorder %v2265_v38, 1.0  ;;  %vm310_vm14 = vcmp.eq.f32.partialorder %v2268_v39, 1.0 }
  0x29   : > { %vm311_vm15 = vcmp.eq.f32.partialorder %v2271_v40, 1.0  ;;  %v2340_v58 = vsel %vm296_vm0, 1.0, %v4029_v57  ;;  %v2345_v59 = vsel %vm297_vm1, 1.0, %v4029_v57  ;;  %v2350_v60 = vsel %vm298_vm2, 1.0, %v4029_v57 }
  0x2a   : > { %v2355_v61 = vsel %vm299_vm3, 1.0, %v4029_v57  ;;  %v2360_v62 = vsel %vm300_vm4, 1.0, %v4029_v57  ;;  %v2365_v63 = vsel %vm301_vm5, 1.0, %v4029_v57  ;;  %v2370_v0 = vsel %vm302_vm6, 1.0, %v4029_v57 }
  0x2b   : > { %4111 = vst [vmem:[#allocation14_spill] sm:$0xff] %v2365_v63  ;;  %4112 = vst [vmem:[#allocation15_spill] sm:$0xff] %v2370_v0  ;;  %v2375_v1 = vsel %vm303_vm7, 1.0, %v4029_v57  ;;  %v2380_v2 = vsel %vm304_vm8, 1.0, %v4029_v57  ;;  %v2385_v3 = vsel %vm305_vm9, 1.0, %v4029_v57  ;;  %v2390_v4 = vsel %vm306_vm10, 1.0, %v4029_v57 }
  0x2c   : > { %4113 = vst [vmem:[#allocation16_spill] sm:$0xff] %v2375_v1  ;;  %4114 = vst [vmem:[#allocation17_spill] sm:$0xff] %v2380_v2  ;;  %v2395_v5 = vsel %vm307_vm11, 1.0, %v4029_v57  ;;  %v2400_v6 = vsel %vm308_vm12, 1.0, %v4029_v57  ;;  %v2405_v7 = vsel %vm309_vm13, 1.0, %v4029_v57  ;;  %v2410_v8 = vsel %vm310_vm14, 1.0, %v4029_v57 }
  0x2d   : > { %4115 = vst [vmem:[#allocation18_spill] sm:$0xff] %v2385_v3  ;;  %4116 = vst [vmem:[#allocation19_spill] sm:$0xff] %v2390_v4  ;;  %v2415_v9 = vsel %vm311_vm15, 1.0, %v4029_v57  ;;  %vm344_vm0 = vcmp.eq.f32.partialorder %v2204_v19, -1.0  ;;  %vm345_vm1 = vcmp.eq.f32.partialorder %v2207_v20, -1.0  ;;  %vm346_vm2 = vcmp.eq.f32.partialorder %v2210_v21, -1.0 }
  0x2e   : > { %4117 = vst [vmem:[#allocation20_spill] sm:$0xff] %v2395_v5  ;;  %4118 = vst [vmem:[#allocation21_spill] sm:$0xff] %v2400_v6  ;;  %vm347_vm3 = vcmp.eq.f32.partialorder %v2220_v24, -1.0  ;;  %vm348_vm4 = vcmp.eq.f32.partialorder %v2223_v25, -1.0  ;;  %vm349_vm5 = vcmp.eq.f32.partialorder %v2226_v26, -1.0  ;;  %vm350_vm6 = vcmp.eq.f32.partialorder %v2236_v29, -1.0 }
  0x2f   : > { %4119 = vst [vmem:[#allocation22_spill] sm:$0xff] %v2405_v7  ;;  %4120 = vst [vmem:[#allocation23_spill] sm:$0xff] %v2410_v8  ;;  %vm351_vm7 = vcmp.eq.f32.partialorder %v2239_v30, -1.0  ;;  %vm352_vm8 = vcmp.eq.f32.partialorder %v2242_v31, -1.0  ;;  %vm353_vm9 = vcmp.eq.f32.partialorder %v2249_v33, -1.0  ;;  %vm354_vm10 = vcmp.eq.f32.partialorder %v2252_v34, -1.0 }
  0x30   : > { %4121 = vst [vmem:[#allocation24_spill] sm:$0xff] %v2415_v9  ;;  %vm355_vm11 = vcmp.eq.f32.partialorder %v2255_v35, -1.0  ;;  %v2430_v10 = vsel %vm344_vm0, 1.0, %v4029_v57  ;;  %v2433_v11 = vsel %vm345_vm1, 1.0, %v4029_v57  ;;  %v2436_v12 = vsel %vm346_vm2, 1.0, %v4029_v57  ;;  %v237_v4 = vld [vmem:[%s2162_s17 + $0x28] sm:$0xff] }
  0x31   : > { %v2439_v13 = vsel %vm347_vm3, 1.0, %v4029_v57  ;;  %v2442_v14 = vsel %vm348_vm4, 1.0, %v4029_v57  ;;  %v2445_v15 = vsel %vm349_vm5, 1.0, %v4029_v57  ;;  %v2448_v16 = vsel %vm350_vm6, 1.0, %v4029_v57  ;;  %v2506_v1 = vld [vmem:[%s2162_s17 + $0x50] sm:$0xff] }
  0x32   : > { %4122 = vst [vmem:[#allocation25_spill] sm:$0xff] %v2445_v15  ;;  %4123 = vst [vmem:[#allocation26_spill] sm:$0xff] %v2448_v16  ;;  %v2451_v19 = vsel %vm351_vm7, 1.0, %v4029_v57  ;;  %v2454_v20 = vsel %vm352_vm8, 1.0, %v4029_v57  ;;  %v2457_v21 = vsel %vm353_vm9, 1.0, %v4029_v57  ;;  %v2460_v24 = vsel %vm354_vm10, 1.0, %v4029_v57 }
  0x33   : > { %4124 = vst [vmem:[#allocation27_spill] sm:$0xff] %v2451_v19  ;;  %4125 = vst [vmem:[#allocation28_spill] sm:$0xff] %v2454_v20  ;;  %v2463_v25 = vsel %vm355_vm11, 1.0, %v4029_v57  ;;  %v392_v26 = vadd.f32 0.5, %v2274_v41  ;;  %v393_v29 = vadd.f32 0.5, %v2277_v42  ;;  %v394_v30 = vadd.f32 0.5, %v2280_v43 }
  0x34   : > { %4126 = vst [vmem:[#allocation29_spill] sm:$0xff] %v2457_v21  ;;  %4127 = vst [vmem:[#allocation30_spill] sm:$0xff] %v2460_v24  ;;  %v395_v31 = vadd.f32 0.5, %v2283_v44  ;;  %v396_v33 = vadd.f32 0.5, %v2286_v45  ;;  %v397_v34 = vadd.f32 0.5, %v2289_v46  ;;  %v440_v35 = vsub.f32 2.0, %v2198_v17 }
  0x35   : > { %4128 = vst [vmem:[#allocation31_spill] sm:$0xff] %v2463_v25  ;;  %v441_v9 = vsub.f32 2.0, %v2201_v18  ;;  %v398_v57 = vadd.f32 0.5, %v2292_v47  ;;  %v399_v8 = vadd.f32 0.5, %v2295_v48  ;;  %v400_v7 = vadd.f32 0.5, %v2298_v49  ;;  %v236_v25 = vld [vmem:[%s2162_s17 + $0x20] sm:$0xff] }
  0x36   : > { %v401_v6 = vadd.f32 0.5, %v2301_v50  ;;  %v2479_v5 = vadd.f32 0.5, %v2304_v51  ;;  %v2482_v24 = vadd.f32 0.5, %v2307_v52  ;;  %v2485_v17 = vadd.f32 0.5, %v2310_v53  ;;  %v238_v21 = vld [vmem:[%s2162_s17 + $0x30] sm:$0xff]  ;;  %v2503_v51 = vld [vmem:[%s2162_s17 + $0x48] sm:$0xff] }
  0x37   : > { %v442_v18 = vsub.f32 2.0, %v2217_v23  ;;  %v2491_v3 = vadd.f32 0.5, %v2313_v54  ;;  %v2494_v20 = vadd.f32 0.5, %v2316_v55  ;;  %v2497_v2 = vadd.f32 0.5, %v2319_v56 }
  0x38   : > { %4129 = vst [vmem:[#allocation32_spill] sm:$0xff] %v2479_v5  ;;  %4130 = vst [vmem:[#allocation33_spill] sm:$0xff] %v2482_v24  ;;  %v443_v52 = vsub.f32 2.0, %v2233_v28  ;;  %v239_v24 = vld [vmem:[%s2162_s17 + $0x38] sm:$0xff]  ;;  %v240_v5 = vld [vmem:[%s2162_s17 + $0x40] sm:$0xff]  ;;  %v413_v53 = vmul.f32 %v237_v4, %v237_v4  ;;  %v456_v23 = vmax.f32 %v440_v35, 0.0  ;;  %v414_v54 = vmul.f32 %v238_v21, %v238_v21 }
  0x39   : > { %4131 = vst [vmem:[#allocation34_spill] sm:$0xff] %v2485_v17  ;;  %4132 = vst [vmem:[#allocation35_spill] sm:$0xff] %v2491_v3  ;;  %v412_v17 = vmul.f32 %v236_v25, %v236_v25  ;;  %v457_v19 = vmax.f32 %v441_v9, 0.0  ;;  %v415_v3 = vmul.f32 %v239_v24, %v239_v24  ;;  %v416_v40 = vmul.f32 %v240_v5, %v240_v5 }
  0x3a   : > { %4133 = vst [vmem:[#allocation36_spill] sm:$0xff] %v2494_v20  ;;  %4134 = vst [vmem:[#allocation37_spill] sm:$0xff] %v2497_v2  ;;  %v417_v20 = vmul.f32 %v2503_v51, %v2503_v51  ;;  %v2512_v2 = vmul.f32 %v2506_v1, %v2506_v1  ;;  %v424_v28 = vmul.f32 %v2214_v22, %v392_v26  ;;  %v444_v56 = vsub.f32 2.0, %v236_v25 }
  0x3b   : > { %v458_v55 = vmax.f32 %v442_v18, 0.0  ;;  %v425_v39 = vmul.f32 %v2230_v27, %v393_v29  ;;  %v426_v9 = vmul.f32 %v2246_v32, %v394_v30  ;;  %v445_v35 = vsub.f32 2.0, %v237_v4  ;;  %v4136_v18 = vld [vmem:[#allocation6_spill] sm:$0xff] }
  0x3c   : > { %4135 = vst [vmem:[#allocation38_spill] sm:$0xff] %v2512_v2  ;;  %v459_v38 = vmax.f32 %v443_v52, 0.0  ;;  %v472_v37 = vsub.f32 0.5, %v2274_v41  ;;  %v473_v16 = vsub.f32 0.5, %v2277_v42  ;;  %v488_v0 = vmul.f32 %v456_v23, %v456_v23 }
  0x3d   : > { %v489_v50 = vmul.f32 %v457_v19, %v457_v19  ;;  %v427_v15 = vmul.f32 %v2259_v36, %v395_v31  ;;  %v428_v63 = vmul.f32 %v412_v17, %v396_v33  ;;  %v429_v2 = vmul.f32 %v413_v53, %v397_v34 }
  0x3e   : > { %v2520_v49 = vmul.f32 %v414_v54, %v398_v57  ;;  %v446_v22 = vsub.f32 2.0, %v238_v21  ;;  %v460_v25 = vmax.f32 %v444_v56, 0.0  ;;  %v474_v27 = vsub.f32 0.5, %v2280_v43 }
  0x3f   : > { %v490_v26 = vmul.f32 %v458_v55, %v458_v55  ;;  %v2523_v32 = vmul.f32 %v415_v3, %v399_v8  ;;  %v2525_v52 = vmul.f32 %v416_v40, %v400_v7  ;;  %v447_v41 = vsub.f32 2.0, %v239_v24  ;;  %v244_v24 = vld [vmem:[%s2162_s17 + $0x60] sm:$0xff] }
  0x40   : > { %v461_v4 = vmax.f32 %v445_v35, 0.0  ;;  %v475_v42 = vsub.f32 0.5, %v2283_v44  ;;  %v491_v19 = vmul.f32 %v459_v38, %v459_v38  ;;  %v504_v36 = vmul.f32 %v488_v0, %v472_v37 }
  0x41   : > { %v505_v29 = vmul.f32 %v489_v50, %v473_v16  ;;  %v2528_v53 = vmul.f32 %v417_v20, %v401_v6  ;;  %v448_v54 = vsub.f32 2.0, %v240_v5  ;;  %v449_v56 = vsub.f32 2.0, %v2503_v51  ;;  %v2538_v50 = vld [vmem:[%s2162_s17 + $0x58] sm:$0xff] }
  0x42   : > { %v450_v43 = vsub.f32 2.0, %v2506_v1  ;;  %v462_v55 = vmax.f32 %v446_v22, 0.0  ;;  %v476_v57 = vsub.f32 0.5, %v2286_v45  ;;  %v492_v40 = vmul.f32 %v460_v25, %v460_v25  ;;  %v4137_v22 = vld [vmem:[#allocation14_spill] sm:$0xff]  ;;  %v4138_v25 = vld [vmem:[#allocation25_spill] sm:$0xff] }
  0x43   : > { %v506_v3 = vmul.f32 %v490_v26, %v474_v27  ;;  %v463_v7 = vmax.f32 %v447_v41, 0.0  ;;  %v521_v44 = vadd.f32 %v2345_v59, %v2340_v58  ;;  %v540_v37 = vadd.f32 %v2433_v11, %v2430_v10  ;;  %v247_v41 = vld [vmem:[%s2162_s17 + $0x78] sm:$0xff] }
  0x44   : > { %v559_v38 = vadd.f32 %v425_v39, %v424_v28  ;;  %v477_v0 = vsub.f32 0.5, %v2289_v46  ;;  %v493_v51 = vmul.f32 %v461_v4, %v461_v4  ;;  %v507_v1 = vmul.f32 %v491_v19, %v475_v42  ;;  %v4139_v42 = vld [vmem:[#allocation7_spill] sm:$0xff] }
  0x45   : > { %v578_v5 = vadd.f32 %v505_v29, %v504_v36  ;;  %v464_v6 = vmax.f32 %v448_v54, 0.0  ;;  %v522_v45 = vadd.f32 %v2350_v60, %v521_v44  ;;  %v541_v8 = vadd.f32 %v2436_v12, %v540_v37  ;;  %v4140_v36 = vld [vmem:[#allocation15_spill] sm:$0xff]  ;;  %v4141_v54 = vld [vmem:[#allocation26_spill] sm:$0xff]  ;;  %v4145_v37 = vld [vmem:[#allocation5_spill] sm:$0xff] }
  0x46   : > { %v560_v16 = vadd.f32 %v559_v38, %v426_v9  ;;  %v478_v58 = vsub.f32 0.5, %v2292_v47  ;;  %v494_v59 = vmul.f32 %v462_v55, %v462_v55  ;;  %v508_v20 = vmul.f32 %v492_v40, %v476_v57  ;;  %v245_v9 = vld [vmem:[%s2162_s17 + $0x68] sm:$0xff]  ;;  %v4142_v44 = vld [vmem:[#allocation2_spill] sm:$0xff] }
  0x47   : > { %v579_v10 = vadd.f32 %v578_v5, %v506_v3  ;;  %v451_v39 = vsub.f32 2.0, %v2538_v50  ;;  %v523_v11 = vadd.f32 %v2355_v61, %v522_v45  ;;  %v542_v46 = vadd.f32 %v2439_v13, %v541_v8  ;;  %v4148_v45 = vld [vmem:[#allocation8_spill] sm:$0xff] }
  0x48   : > { %v561_v21 = vadd.f32 %v560_v16, %v427_v15  ;;  %v479_v60 = vsub.f32 0.5, %v2295_v48  ;;  %v495_v30 = vmul.f32 %v463_v7, %v463_v7  ;;  %v509_v12 = vmul.f32 %v493_v51, %v477_v0  ;;  %v246_v15 = vld [vmem:[%s2162_s17 + $0x70] sm:$0xff] }
  0x49   : > { %v580_v31 = vadd.f32 %v579_v10, %v507_v1  ;;  %v465_v47 = vmax.f32 %v449_v56, 0.0  ;;  %v524_v33 = vadd.f32 %v2360_v62, %v523_v11  ;;  %v543_v34 = vadd.f32 %v2442_v14, %v542_v46  ;;  %v4146_v0 = vld [vmem:[#allocation16_spill] sm:$0xff]  ;;  %v4147_v1 = vld [vmem:[#allocation27_spill] sm:$0xff] }
  0x4a   : > { %v562_v17 = vadd.f32 %v561_v21, %v428_v63  ;;  %v480_v61 = vsub.f32 0.5, %v4136_v18  ;;  %v496_v23 = vmul.f32 %v464_v6, %v464_v6  ;;  %v510_v28 = vmul.f32 %v494_v59, %v478_v58  ;;  %v4150_v11 = vld [vmem:[#allocation28_spill] sm:$0xff] }
  0x4b   : > { %v581_v13 = vadd.f32 %v580_v31, %v508_v20  ;;  %v452_v35 = vsub.f32 2.0, %v244_v24  ;;  %v525_v48 = vadd.f32 %v4137_v22, %v524_v33  ;;  %v544_v27 = vadd.f32 %v4138_v25, %v543_v34  ;;  %v4149_v20 = vld [vmem:[#allocation17_spill] sm:$0xff] }
  0x4c   : > { %v563_v26 = vadd.f32 %v562_v17, %v429_v2  ;;  %v466_v4 = vmax.f32 %v450_v43, 0.0  ;;  %v481_v62 = vsub.f32 0.5, %v4139_v42  ;;  %v511_v19 = vmul.f32 %v495_v30, %v479_v60  ;;  %v4143_v2 = vld [vmem:[#allocation3_spill] sm:$0xff]  ;;  %v4144_v43 = vld [vmem:[#allocation4_spill] sm:$0xff] }
  0x4d   : > { %v582_v14 = vadd.f32 %v581_v13, %v509_v12  ;;  %v497_v63 = vmul.f32 %v465_v47, %v465_v47  ;;  %v526_v29 = vadd.f32 %v4140_v36, %v525_v48  ;;  %v545_v56 = vadd.f32 %v4141_v54, %v544_v27  ;;  %v4151_v47 = vld [vmem:[#allocation32_spill] sm:$0xff]  ;;  %v4154_v13 = vld [vmem:[#allocation18_spill] sm:$0xff]  ;;  %v4160_v36 = vld [vmem:[#allocation13_spill] sm:$0xff] }
  0x4e   : > { %v564_v55 = vadd.f32 %v563_v26, %v2520_v49  ;;  %v453_v57 = vsub.f32 2.0, %v245_v9  ;;  %v454_v40 = vsub.f32 2.0, %v246_v15  ;;  %v512_v3 = vmul.f32 %v496_v23, %v480_v61  ;;  %v4153_v61 = vld [vmem:[#allocation9_spill] sm:$0xff] }
  0x4f   : > { %v583_v7 = vadd.f32 %v582_v14, %v510_v28  ;;  %vm356_vm12 = vcmp.eq.f32.partialorder %v4142_v44, -1.0  ;;  %vm357_vm13 = vcmp.eq.f32.partialorder %v4143_v2, -1.0  ;;  %vm358_vm14 = vcmp.eq.f32.partialorder %v4144_v43, -1.0  ;;  %v4156_v26 = vld [vmem:[#allocation33_spill] sm:$0xff]  ;;  %v4159_v14 = vld [vmem:[#allocation12_spill] sm:$0xff] }
  0x50   : > { %vm359_vm15 = vcmp.eq.f32.partialorder %v4145_v37, -1.0  ;;  %v455_v38 = vsub.f32 2.0, %v247_v41  ;;  %v527_v51 = vadd.f32 %v4146_v0, %v526_v29  ;;  %v546_v5 = vadd.f32 %v4147_v1, %v545_v56  ;;  %v1861_v0 = vld [vmem:[%s2167_s20 + $0x80] sm:$0xff]  ;;  %v1863_v44 = vld [vmem:[%s2167_s20 + $0x90] sm:$0xff]  ;;  %v4167_v43 = vld [vmem:[#allocation37_spill] sm:$0xff] }
  0x51   : > { %v565_v6 = vadd.f32 %v564_v55, %v2523_v32  ;;  %v467_v49 = vmax.f32 %v451_v39, 0.0  ;;  %v482_v8 = vsub.f32 0.5, %v4148_v45  ;;  %v498_v16 = vmul.f32 %v466_v4, %v466_v4  ;;  %v4152_v32 = vld [vmem:[#allocation38_spill] sm:$0xff]  ;;  %v1862_v45 = vld [vmem:[%s2167_s20 + $0x88] sm:$0xff] }
  0x52   : > { %v584_v58 = vadd.f32 %v583_v7, %v511_v19  ;;  %v513_v59 = vmul.f32 %v497_v63, %v481_v62  ;;  %v528_v10 = vadd.f32 %v4149_v20, %v527_v51  ;;  %v547_v46 = vadd.f32 %v4150_v11, %v546_v5  ;;  %v4158_v62 = vld [vmem:[#allocation11_spill] sm:$0xff]  ;;  %v1864_v11 = vld [vmem:[%s2167_s20 + $0x98] sm:$0xff]  ;;  %v1865_v37 = vld [vmem:[%s2167_s20 + $0xa0] sm:$0xff] }
  0x53   : > { %v566_v21 = vadd.f32 %v565_v6, %v2525_v52  ;;  %v419_v60 = vmul.f32 %v2538_v50, %v2538_v50  ;;  %v420_v30 = vmul.f32 %v244_v24, %v244_v24  ;;  %v421_v12 = vmul.f32 %v245_v9, %v245_v9  ;;  %v4155_v52 = vld [vmem:[#allocation29_spill] sm:$0xff] }
  0x54   : > { %v585_v31 = vadd.f32 %v584_v58, %v512_v3  ;;  %v434_v39 = vmul.f32 %v4152_v32, %v4151_v47  ;;  %v468_v33 = vmax.f32 %v452_v35, 0.0  ;;  %v469_v34 = vmax.f32 %v453_v57, 0.0  ;;  %v4157_v35 = vld [vmem:[#allocation10_spill] sm:$0xff]  ;;  %v4161_v57 = vld [vmem:[#allocation19_spill] sm:$0xff]  ;;  %v1868_v32 = vld [vmem:[%s2167_s20 + $0xb8] sm:$0xff] }
  0x55   : > { %v470_v17 = vmax.f32 %v454_v40, 0.0  ;;  %v471_v18 = vmax.f32 %v455_v38, 0.0  ;;  %v483_v23 = vsub.f32 0.5, %v4153_v61  ;;  %v499_v28 = vmul.f32 %v467_v49, %v467_v49  ;;  %v4162_v40 = vld [vmem:[#allocation30_spill] sm:$0xff]  ;;  %v4165_v58 = vld [vmem:[#allocation35_spill] sm:$0xff] }
  0x56   : > { %v529_v22 = vadd.f32 %v4154_v13, %v528_v10  ;;  %v514_v48 = vmul.f32 %v498_v16, %v482_v8  ;;  %v548_v25 = vadd.f32 %v4155_v52, %v547_v46  ;;  %v567_v50 = vadd.f32 %v566_v21, %v2528_v53  ;;  %v4164_v8 = vld [vmem:[#allocation34_spill] sm:$0xff]  ;;  %v1866_v46 = vld [vmem:[%s2167_s20 + $0xa8] sm:$0xff]  ;;  %v1872_v13 = vld [vmem:[%s2167_s20 + $0xd8] sm:$0xff] }
  0x57   : > { %v586_v24 = vadd.f32 %v585_v31, %v513_v59  ;;  %v422_v9 = vmul.f32 %v246_v15, %v246_v15  ;;  %v423_v27 = vmul.f32 %v247_v41, %v247_v41  ;;  %v435_v4 = vmul.f32 %v419_v60, %v4156_v26  ;;  %v4166_v59 = vld [vmem:[#allocation36_spill] sm:$0xff] }
  0x58   : > { %v484_v42 = vsub.f32 0.5, %v4157_v35  ;;  %v485_v19 = vsub.f32 0.5, %v4158_v62  ;;  %v486_v63 = vsub.f32 0.5, %v4159_v14  ;;  %v487_v29 = vsub.f32 0.5, %v4160_v36  ;;  %v1875_v52 = vld [vmem:[%s2167_s20 + $0xf0] sm:$0xff] }
  0x59   : > { %v500_v54 = vmul.f32 %v468_v33, %v468_v33  ;;  %v501_v56 = vmul.f32 %v469_v34, %v469_v34  ;;  %v502_v55 = vmul.f32 %v470_v17, %v470_v17  ;;  %v503_v53 = vmul.f32 %v471_v18, %v471_v18  ;;  %v4169_v34 = vld [vmem:[#allocation31_spill] sm:$0xff] }
  0x5a   : > { %v530_v15 = vadd.f32 %v4161_v57, %v529_v22  ;;  %v515_v41 = vmul.f32 %v499_v28, %v483_v23  ;;  %v549_v3 = vadd.f32 %v4162_v40, %v548_v25  ;;  %v568_v7 = vadd.f32 %v567_v50, %v434_v39  ;;  %v1869_v39 = vld [vmem:[%s2167_s20 + $0xc0] sm:$0xff]  ;;  %v1870_v23 = vld [vmem:[%s2167_s20 + $0xc8] sm:$0xff]  ;;  %v1871_v28 = vld [vmem:[%s2167_s20 + $0xd0] sm:$0xff] }
  0x5b   : > { %v587_v38 = vadd.f32 %v586_v24, %v514_v48  ;;  %v4163_v51 = vmov 0.0   ;;  %v436_v16 = vmul.f32 %v420_v30, %v4164_v8  ;;  %v437_v2 = vmul.f32 %v421_v12, %v4165_v58  ;;  %v4168_v30 = vld [vmem:[#allocation20_spill] sm:$0xff]  ;;  %v1873_v22 = vld [vmem:[%s2167_s20 + $0xe0] sm:$0xff]  ;;  %v1874_v48 = vld [vmem:[%s2167_s20 + $0xe8] sm:$0xff] }
  0x5c   : > { %v1851_v1 = vsel %vm356_vm12, 1.0, %v4163_v51  ;;  %v1852_v5 = vsel %vm357_vm13, 1.0, %v4163_v51  ;;  %v2597_v6 = vsel %vm358_vm14, 1.0, %v4163_v51  ;;  %v2602_v49 = vsel %vm359_vm15, 1.0, %v4163_v51  ;;  %v1867_v12 = vld [vmem:[%s2167_s20 + $0xb0] sm:$0xff]  ;;  %v1876_v25 = vld [vmem:[%s2167_s20 + $0xf8] sm:$0xff] }
  0x5d   : > { %v2609_v20 = vmul.f32 %v422_v9, %v4166_v59  ;;  %v2612_v10 = vmul.f32 %v423_v27, %v4167_v43  ;;  %v516_v21 = vmul.f32 %v500_v54, %v484_v42  ;;  %v517_v60 = vmul.f32 %v501_v56, %v485_v19  ;;  %v4170_v50 = vld [vmem:[#allocation21_spill] sm:$0xff]  ;;  %v4171_v19 = vld [vmem:[#allocation22_spill] sm:$0xff] }
  0x5e   : > { %v518_v31 = vmul.f32 %v502_v55, %v486_v63  ;;  %v531_v47 = vadd.f32 %v4168_v30, %v530_v15  ;;  %v2621_v33 = vmul.f32 %v503_v53, %v487_v29  ;;  %v550_v17 = vadd.f32 %v4169_v34, %v549_v3  ;;  %v1855_v34 = vld [vmem:[%s4028_s2 + $0x8] sm:$0xff] }
  0x5f   : > { %v569_v18 = vadd.f32 %v568_v7, %v435_v4  ;;  %v588_v61 = vadd.f32 %v587_v38, %v515_v41  ;;  %vm629_vm0 = vcmp.eq.f32.partialorder %v1861_v0, 255.0  ;;  %vm630_vm1 = vcmp.eq.f32.partialorder %v1862_v45, 255.0 }
  0x60   : > { %vm631_vm2 = vcmp.eq.f32.partialorder %v1863_v44, 255.0  ;;  %vm632_vm3 = vcmp.eq.f32.partialorder %v1864_v11, 255.0  ;;  %vm633_vm4 = vcmp.eq.f32.partialorder %v1865_v37, 255.0  ;;  %vm634_vm5 = vcmp.eq.f32.partialorder %v1866_v46, 255.0 }
  0x61   : > { %vm635_vm6 = vcmp.eq.f32.partialorder %v1867_v12, 255.0  ;;  %vm636_vm7 = vcmp.eq.f32.partialorder %v1868_v32, 255.0  ;;  %v532_v24 = vadd.f32 %v4170_v50, %v531_v47  ;;  %vm637_vm8 = vcmp.eq.f32.partialorder %v1869_v39, 255.0 }
  0x62   : > { %vm638_vm9 = vcmp.eq.f32.partialorder %v1870_v23, 255.0  ;;  %vm639_vm10 = vcmp.eq.f32.partialorder %v1871_v28, 255.0  ;;  %v551_v9 = vadd.f32 %v1851_v1, %v550_v17  ;;  %v570_v27 = vadd.f32 %v569_v18, %v436_v16  ;;  %v4176_v1 = vld [vmem:[#allocation23_spill] sm:$0xff] }
  0x63   : > { %v589_v26 = vadd.f32 %v588_v61, %v516_v21  ;;  %vm640_vm11 = vcmp.eq.f32.partialorder %v1872_v13, 255.0  ;;  %vm641_vm12 = vcmp.eq.f32.partialorder %v1873_v22, 255.0  ;;  %vm642_vm13 = vcmp.eq.f32.partialorder %v1874_v48, 255.0 }
  0x64   : > { %vm643_vm14 = vcmp.eq.f32.partialorder %v1875_v52, 255.0  ;;  %vm644_vm15 = vcmp.eq.f32.partialorder %v1876_v25, 255.0  ;;  %v2633_v4 = vsel %vm629_vm0, 1.0, %v1861_v0  ;;  %v2636_v35 = vsel %vm630_vm1, 1.0, %v1862_v45 }
  0x65   : > { %v2639_v42 = vsel %vm631_vm2, 1.0, %v1863_v44  ;;  %v2642_v62 = vsel %vm632_vm3, 1.0, %v1864_v11  ;;  %v533_v14 = vadd.f32 %v4171_v19, %v532_v24  ;;  %v2646_v63 = vsel %vm633_vm4, 1.0, %v1865_v37 }
  0x66   : > { %v2649_v36 = vsel %vm634_vm5, 1.0, %v1866_v46  ;;  %v2652_v29 = vsel %vm635_vm6, 1.0, %v1867_v12  ;;  %v552_v54 = vadd.f32 %v1852_v5, %v551_v9  ;;  %v571_v56 = vadd.f32 %v570_v27, %v437_v2 }
  0x67   : > { %v590_v55 = vadd.f32 %v589_v26, %v517_v60  ;;  %v2655_v53 = vsel %vm636_vm7, 1.0, %v1868_v32  ;;  %v2658_v57 = vsel %vm637_vm8, 1.0, %v1869_v39  ;;  %v2661_v15 = vsel %vm638_vm9, 1.0, %v1870_v23  ;;  %v520_v39 = vld [vmem:[%s4028_s2] sm:$0xff] }
  0x68   : > { %v2664_v41 = vsel %vm639_vm10, 1.0, %v1871_v28  ;;  %v2667_v40 = vsel %vm640_vm11, 1.0, %v1872_v13  ;;  %v2670_v3 = vsel %vm641_vm12, 1.0, %v1873_v22  ;;  %v2673_v7 = vsel %vm642_vm13, 1.0, %v1874_v48  ;;  %v1857_v28 = vld [vmem:[%s4028_s2 + $0x10] sm:$0xff]  ;;  %v1859_v13 = vld [vmem:[%s4028_s2 + $0x18] sm:$0xff] }
  0x69   : > { %4172 = vst [vmem:[#allocation6_spill] sm:$0xff] %v2670_v3  ;;  %4173 = vst [vmem:[#allocation14_spill] sm:$0xff] %v2673_v7  ;;  %v2676_v38 = vsel %vm643_vm14, 1.0, %v1875_v52  ;;  %v2679_v0 = vsel %vm644_vm15, 1.0, %v1876_v25  ;;  %v534_v5 = vadd.f32 %v4176_v1, %v533_v14  ;;  %v2683_v45 = vmul.f32 0.5, %v2633_v4 }
  0x6a   : > { %4174 = vst [vmem:[#allocation25_spill] sm:$0xff] %v2676_v38  ;;  %4175 = vst [vmem:[#allocation7_spill] sm:$0xff] %v2679_v0  ;;  %v2686_v44 = vmul.f32 0.5, %v2636_v35  ;;  %v2689_v8 = vmul.f32 0.5, %v2639_v42  ;;  %v553_v16 = vadd.f32 %v2597_v6, %v552_v54  ;;  %v572_v58 = vadd.f32 %v571_v56, %v2609_v20 }
  0x6b   : > { %v591_v2 = vadd.f32 %v590_v55, %v518_v31  ;;  %v2694_v59 = vmul.f32 0.5, %v2642_v62  ;;  %v2697_v43 = vmul.f32 0.5, %v2646_v63  ;;  %v2700_v11 = vmul.f32 0.5, %v2649_v36  ;;  %v4182_v31 = vld [vmem:[#allocation24_spill] sm:$0xff] }
  0x6c   : > { %v2703_v37 = vmul.f32 0.5, %v2652_v29  ;;  %v2706_v46 = vmul.f32 0.5, %v2655_v53  ;;  %v2709_v6 = vmul.f32 0.5, %v2658_v57  ;;  %v2712_v20 = vmul.f32 0.5, %v2661_v15 }
  0x6d   : > { %v2715_v21 = vmul.f32 0.5, %v2664_v41  ;;  %v2718_v60 = vmul.f32 0.5, %v2667_v40  ;;  %v535_v30 = vadd.f32 %v4182_v31, %v534_v5  ;;  %v2722_v47 = vmul.f32 0.5, %v2670_v3 }
  0x6e   : > { %4177 = vst [vmem:[#allocation15_spill] sm:$0xff] %v2706_v46  ;;  %4178 = vst [vmem:[#allocation26_spill] sm:$0xff] %v2709_v6  ;;  %v2725_v12 = vmul.f32 0.5, %v2673_v7  ;;  %v2728_v32 = vmul.f32 0.5, %v2676_v38  ;;  %v554_v17 = vadd.f32 %v2602_v49, %v553_v16  ;;  %v573_v18 = vadd.f32 %v572_v58, %v2612_v10  ;;  %v1877_v58 = vld [vmem:[%s2162_s17 + $0x80] sm:$0xff] }
  0x6f   : > { %4179 = vst [vmem:[#allocation2_spill] sm:$0xff] %v2712_v20  ;;  %4180 = vst [vmem:[#allocation3_spill] sm:$0xff] %v2715_v21  ;;  %v592_v61 = vadd.f32 %v591_v2, %v2621_v33  ;;  %v2740_v23 = vmul.f32 0.5, %v2679_v0  ;;  %vm677_vm0 = vcmp.eq.f32.partialorder %v2633_v4, 1.0  ;;  %vm678_vm1 = vcmp.eq.f32.partialorder %v2636_v35, 1.0  ;;  %v1878_v2 = vld [vmem:[%s2162_s17 + $0x88] sm:$0xff] }
  0x70   : > { %4181 = vst [vmem:[#allocation4_spill] sm:$0xff] %v2718_v60  ;;  %4183 = vst [vmem:[#allocation5_spill] sm:$0xff] %v2722_v47  ;;  %vm679_vm2 = vcmp.eq.f32.partialorder %v2639_v42, 1.0  ;;  %vm680_vm3 = vcmp.eq.f32.partialorder %v2642_v62, 1.0  ;;  %vm681_vm4 = vcmp.eq.f32.partialorder %v2646_v63, 1.0  ;;  %vm682_vm5 = vcmp.eq.f32.partialorder %v2649_v36, 1.0 }
  0x71   : > { %4184 = vst [vmem:[#allocation16_spill] sm:$0xff] %v2725_v12  ;;  %4185 = vst [vmem:[#allocation27_spill] sm:$0xff] %v2728_v32  ;;  %vm683_vm6 = vcmp.eq.f32.partialorder %v2652_v29, 1.0  ;;  %vm684_vm7 = vcmp.eq.f32.partialorder %v2655_v53, 1.0  ;;  %v2756_v49 = vadd.f32 %v535_v30, %v520_v39  ;;  %vm685_vm8 = vcmp.eq.f32.partialorder %v2658_v57, 1.0 }
  0x72   : > { %4186 = vst [vmem:[#allocation8_spill] sm:$0xff] %v2740_v23  ;;  %vm686_vm9 = vcmp.eq.f32.partialorder %v2661_v15, 1.0  ;;  %vm687_vm10 = vcmp.eq.f32.partialorder %v2664_v41, 1.0  ;;  %v2761_v10 = vadd.f32 %v1855_v34, %v554_v17  ;;  %v2763_v33 = vadd.f32 %v1857_v28, %v573_v18 }
  0x73   : > { %4187 = vst [vmem:[#allocation17_spill] sm:$0xff] %v2756_v49  ;;  %v2765_v22 = vadd.f32 %v1859_v13, %v592_v61  ;;  %vm688_vm11 = vcmp.eq.f32.partialorder %v2667_v40, 1.0  ;;  %vm689_vm12 = vcmp.eq.f32.partialorder %v2670_v3, 1.0  ;;  %vm690_vm13 = vcmp.eq.f32.partialorder %v2673_v7, 1.0  ;;  %v1879_v13 = vld [vmem:[%s2162_s17 + $0x90] sm:$0xff] }
  0x74   : > { %4188 = vst [vmem:[#allocation28_spill] sm:$0xff] %v2761_v10  ;;  %4189 = vst [vmem:[#allocation32_spill] sm:$0xff] %v2763_v33  ;;  %vm691_vm14 = vcmp.eq.f32.partialorder %v2676_v38, 1.0  ;;  %vm692_vm15 = vcmp.eq.f32.partialorder %v2679_v0, 1.0  ;;  %v2775_v48 = vsel %vm677_vm0, 1.0, %v4163_v51  ;;  %v2780_v52 = vsel %vm678_vm1, 1.0, %v4163_v51 }
  0x75   : > { %4190 = vst [vmem:[#allocation38_spill] sm:$0xff] %v2765_v22  ;;  %v2785_v25 = vsel %vm679_vm2, 1.0, %v4163_v51  ;;  %v2790_v50 = vsel %vm680_vm3, 1.0, %v4163_v51  ;;  %v2795_v24 = vsel %vm681_vm4, 1.0, %v4163_v51  ;;  %v2800_v9 = vsel %vm682_vm5, 1.0, %v4163_v51 }
  0x76   : > { %4191 = vst [vmem:[#allocation9_spill] sm:$0xff] %v2795_v24  ;;  %4192 = vst [vmem:[#allocation18_spill] sm:$0xff] %v2800_v9  ;;  %v2805_v27 = vsel %vm683_vm6, 1.0, %v4163_v51  ;;  %v2810_v26 = vsel %vm684_vm7, 1.0, %v4163_v51  ;;  %v2815_v19 = vsel %vm685_vm8, 1.0, %v4163_v51  ;;  %v2820_v14 = vsel %vm686_vm9, 1.0, %v4163_v51 }
  0x77   : > { %4193 = vst [vmem:[#allocation29_spill] sm:$0xff] %v2805_v27  ;;  %4194 = vst [vmem:[#allocation33_spill] sm:$0xff] %v2810_v26  ;;  %v2825_v54 = vsel %vm687_vm10, 1.0, %v4163_v51  ;;  %v2830_v56 = vsel %vm688_vm11, 1.0, %v4163_v51  ;;  %v2835_v55 = vsel %vm689_vm12, 1.0, %v4163_v51  ;;  %v2840_v1 = vsel %vm690_vm13, 1.0, %v4163_v51 }
  0x78   : > { %4195 = vst [vmem:[#allocation10_spill] sm:$0xff] %v2815_v19  ;;  %4196 = vst [vmem:[#allocation11_spill] sm:$0xff] %v2820_v14  ;;  %v2845_v5 = vsel %vm691_vm14, 1.0, %v4163_v51  ;;  %v2850_v16 = vsel %vm692_vm15, 1.0, %v4163_v51  ;;  %vm725_vm0 = vcmp.eq.f32.partialorder %v2633_v4, -1.0  ;;  %vm726_vm1 = vcmp.eq.f32.partialorder %v2636_v35, -1.0 }
  0x79   : > { %4197 = vst [vmem:[#allocation12_spill] sm:$0xff] %v2825_v54  ;;  %4198 = vst [vmem:[#allocation13_spill] sm:$0xff] %v2830_v56  ;;  %vm727_vm2 = vcmp.eq.f32.partialorder %v2639_v42, -1.0  ;;  %vm728_vm3 = vcmp.eq.f32.partialorder %v2642_v62, -1.0  ;;  %vm729_vm4 = vcmp.eq.f32.partialorder %v2646_v63, -1.0  ;;  %vm730_vm5 = vcmp.eq.f32.partialorder %v2649_v36, -1.0 }
  0x7a   : > { %4199 = vst [vmem:[#allocation19_spill] sm:$0xff] %v2835_v55  ;;  %4200 = vst [vmem:[#allocation30_spill] sm:$0xff] %v2840_v1  ;;  %vm731_vm6 = vcmp.eq.f32.partialorder %v2652_v29, -1.0  ;;  %vm732_vm7 = vcmp.eq.f32.partialorder %v2655_v53, -1.0  ;;  %vm733_vm8 = vcmp.eq.f32.partialorder %v2658_v57, -1.0  ;;  %vm734_vm9 = vcmp.eq.f32.partialorder %v2661_v15, -1.0 }
  0x7b   : > { %4201 = vst [vmem:[#allocation34_spill] sm:$0xff] %v2845_v5  ;;  %4202 = vst [vmem:[#allocation35_spill] sm:$0xff] %v2850_v16  ;;  %vm735_vm10 = vcmp.eq.f32.partialorder %v2664_v41, -1.0  ;;  %vm736_vm11 = vcmp.eq.f32.partialorder %v2667_v40, -1.0  ;;  %v2865_v4 = vsel %vm725_vm0, 1.0, %v4163_v51  ;;  %v2868_v35 = vsel %vm726_vm1, 1.0, %v4163_v51 }
  0x7c   : > { %v2871_v42 = vsel %vm727_vm2, 1.0, %v4163_v51  ;;  %v2874_v62 = vsel %vm728_vm3, 1.0, %v4163_v51  ;;  %v2877_v63 = vsel %vm729_vm4, 1.0, %v4163_v51  ;;  %v2880_v36 = vsel %vm730_vm5, 1.0, %v4163_v51  ;;  %v1880_v16 = vld [vmem:[%s2162_s17 + $0x98] sm:$0xff]  ;;  %v1881_v56 = vld [vmem:[%s2162_s17 + $0xa0] sm:$0xff] }
  0x7d   : > { %4203 = vst [vmem:[#allocation36_spill] sm:$0xff] %v2877_v63  ;;  %4204 = vst [vmem:[#allocation37_spill] sm:$0xff] %v2880_v36  ;;  %v2883_v29 = vsel %vm731_vm6, 1.0, %v4163_v51  ;;  %v2886_v53 = vsel %vm732_vm7, 1.0, %v4163_v51  ;;  %v2889_v57 = vsel %vm733_vm8, 1.0, %v4163_v51  ;;  %v2892_v15 = vsel %vm734_vm9, 1.0, %v4163_v51 }
  0x7e   : > { %4205 = vst [vmem:[#allocation20_spill] sm:$0xff] %v2883_v29  ;;  %4206 = vst [vmem:[#allocation31_spill] sm:$0xff] %v2886_v53  ;;  %v2895_v41 = vsel %vm735_vm10, 1.0, %v4163_v51  ;;  %v2898_v40 = vsel %vm736_vm11, 1.0, %v4163_v51  ;;  %v773_v31 = vadd.f32 0.5, %v2683_v45  ;;  %v774_v30 = vadd.f32 0.5, %v2686_v44 }
  0x7f   : > { %4207 = vst [vmem:[#allocation21_spill] sm:$0xff] %v2889_v57  ;;  %4208 = vst [vmem:[#allocation22_spill] sm:$0xff] %v2892_v15  ;;  %v775_v39 = vadd.f32 0.5, %v2689_v8  ;;  %v776_v34 = vadd.f32 0.5, %v2694_v59  ;;  %v777_v17 = vadd.f32 0.5, %v2697_v43  ;;  %v778_v18 = vadd.f32 0.5, %v2700_v11 }
  0x80   : > { %4209 = vst [vmem:[#allocation23_spill] sm:$0xff] %v2895_v41  ;;  %4210 = vst [vmem:[#allocation24_spill] sm:$0xff] %v2898_v40  ;;  %v779_v61 = vadd.f32 0.5, %v2703_v37  ;;  %v780_v28 = vadd.f32 0.5, %v2706_v46  ;;  %v781_v22 = vadd.f32 0.5, %v2709_v6  ;;  %v782_v33 = vadd.f32 0.5, %v2712_v20 }
  0x81   : > { %v2914_v10 = vadd.f32 0.5, %v2715_v21  ;;  %v2917_v49 = vadd.f32 0.5, %v2718_v60  ;;  %v2921_v5 = vadd.f32 0.5, %v2722_v47  ;;  %v2924_v1 = vadd.f32 0.5, %v2725_v12  ;;  %v1883_v47 = vld [vmem:[%s2162_s17 + $0xb0] sm:$0xff]  ;;  %v1884_v12 = vld [vmem:[%s2162_s17 + $0xb8] sm:$0xff] }
  0x82   : > { %v821_v55 = vsub.f32 2.0, %v1877_v58  ;;  %v822_v40 = vsub.f32 2.0, %v1878_v2  ;;  %v2928_v51 = vadd.f32 0.5, %v2728_v32  ;;  %v2931_v41 = vadd.f32 0.5, %v2740_v23  ;;  %v1885_v57 = vld [vmem:[%s2162_s17 + $0xc0] sm:$0xff]  ;;  %v2938_v19 = vld [vmem:[%s2162_s17 + $0xc8] sm:$0xff] }
  0x83   : > { %4211 = vst [vmem:[#allocation39_spill] sm:$0xff] %v2914_v10  ;;  %4212 = vst [vmem:[#allocation40_spill] sm:$0xff] %v2917_v49  ;;  %v789_v54 = vmul.f32 %v1877_v58, %v1877_v58  ;;  %v790_v49 = vmul.f32 %v1878_v2, %v1878_v2  ;;  %v792_v15 = vmul.f32 %v1880_v16, %v1880_v16  ;;  %v823_v60 = vsub.f32 2.0, %v1879_v13  ;;  %v2941_v32 = vld [vmem:[%s2162_s17 + $0xd0] sm:$0xff]  ;;  %v2944_v10 = vld [vmem:[%s2162_s17 + $0xd8] sm:$0xff] }
  0x84   : > { %4213 = vst [vmem:[#allocation41_spill] sm:$0xff] %v2921_v5  ;;  %4214 = vst [vmem:[#allocation42_spill] sm:$0xff] %v2924_v1  ;;  %v1882_v5 = vld [vmem:[%s2162_s17 + $0xa8] sm:$0xff]  ;;  %v791_v1 = vmul.f32 %v1879_v13, %v1879_v13  ;;  %v793_v14 = vmul.f32 %v1881_v56, %v1881_v56  ;;  %v795_v23 = vmul.f32 %v1883_v47, %v1883_v47  ;;  %v824_v58 = vsub.f32 2.0, %v1880_v16  ;;  %v2947_v2 = vld [vmem:[%s2162_s17 + $0xe0] sm:$0xff] }
  0x85   : > { %4215 = vst [vmem:[#allocation43_spill] sm:$0xff] %v2928_v51  ;;  %4216 = vst [vmem:[#allocation44_spill] sm:$0xff] %v2931_v41  ;;  %v794_v51 = vmul.f32 %v1882_v5, %v1882_v5  ;;  %v796_v41 = vmul.f32 %v1884_v12, %v1884_v12  ;;  %v2950_v21 = vld [vmem:[%s2162_s17 + $0xe8] sm:$0xff]  ;;  %v797_v53 = vmul.f32 %v1885_v57, %v1885_v57  ;;  %v837_v13 = vmax.f32 %v821_v55, 0.0 }
  0x86   : > { %4217 = vst [vmem:[#allocation45_spill] sm:$0xff] %v2947_v2  ;;  %4218 = vst [vmem:[#allocation46_spill] sm:$0xff] %v2950_v21  ;;  %v798_v26 = vmul.f32 %v2938_v19, %v2938_v19  ;;  %v838_v0 = vmax.f32 %v822_v40, 0.0  ;;  %v2956_v38 = vmul.f32 %v2941_v32, %v2941_v32  ;;  %v2960_v7 = vmul.f32 %v2944_v10, %v2944_v10 }
  0x87   : > { %v2964_v16 = vmul.f32 %v2947_v2, %v2947_v2  ;;  %v2968_v3 = vmul.f32 %v2950_v21, %v2950_v21  ;;  %v805_v29 = vmul.f32 %v789_v54, %v773_v31  ;;  %v806_v27 = vmul.f32 %v790_v49, %v774_v30 }
  0x88   : > { %4219 = vst [vmem:[#allocation47_spill] sm:$0xff] %v2956_v38  ;;  %4220 = vst [vmem:[#allocation48_spill] sm:$0xff] %v2960_v7  ;;  %v825_v55 = vsub.f32 2.0, %v1881_v56  ;;  %v839_v40 = vmax.f32 %v823_v60, 0.0  ;;  %v807_v20 = vmul.f32 %v791_v1, %v775_v39  ;;  %v808_v36 = vmul.f32 %v792_v15, %v776_v34 }
  0x89   : > { %4221 = vst [vmem:[#allocation49_spill] sm:$0xff] %v2964_v16  ;;  %v826_v9 = vsub.f32 2.0, %v1882_v5  ;;  %v840_v38 = vmax.f32 %v824_v58, 0.0  ;;  %v853_v6 = vsub.f32 0.5, %v2683_v45  ;;  %v854_v7 = vsub.f32 0.5, %v2686_v44  ;;  %v4226_v58 = vld [vmem:[#allocation26_spill] sm:$0xff] }
  0x8a   : > { %v869_v63 = vmul.f32 %v837_v13, %v837_v13  ;;  %v870_v24 = vmul.f32 %v838_v0, %v838_v0  ;;  %v809_v2 = vmul.f32 %v793_v14, %v777_v17  ;;  %v810_v16 = vmul.f32 %v794_v51, %v778_v18  ;;  %v4224_v17 = vld [vmem:[#allocation9_spill] sm:$0xff]  ;;  %v4225_v18 = vld [vmem:[#allocation36_spill] sm:$0xff] }
  0x8b   : > { %v2972_v46 = vmul.f32 %v795_v23, %v779_v61  ;;  %v2974_v21 = vmul.f32 %v796_v41, %v780_v28  ;;  %v827_v54 = vsub.f32 2.0, %v1883_v47  ;;  %v841_v49 = vmax.f32 %v825_v55, 0.0 }
  0x8c   : > { %v855_v60 = vsub.f32 0.5, %v2689_v8  ;;  %v871_v56 = vmul.f32 %v839_v40, %v839_v40  ;;  %v2977_v1 = vmul.f32 %v797_v53, %v781_v22  ;;  %v2979_v5 = vmul.f32 %v798_v26, %v782_v33 }
  0x8d   : > { %v828_v45 = vsub.f32 2.0, %v1884_v12  ;;  %v842_v15 = vmax.f32 %v826_v9, 0.0  ;;  %v856_v44 = vsub.f32 0.5, %v2694_v59  ;;  %v872_v0 = vmul.f32 %v840_v38, %v840_v38 }
  0x8e   : > { %v885_v14 = vmul.f32 %v869_v63, %v853_v6  ;;  %v886_v51 = vmul.f32 %v870_v24, %v854_v7  ;;  %v829_v23 = vsub.f32 2.0, %v1885_v57  ;;  %v830_v41 = vsub.f32 2.0, %v2938_v19 }
  0x8f   : > { %v831_v47 = vsub.f32 2.0, %v2941_v32  ;;  %v832_v31 = vsub.f32 2.0, %v2944_v10  ;;  %v843_v8 = vmax.f32 %v827_v54, 0.0  ;;  %v857_v22 = vsub.f32 0.5, %v2697_v43  ;;  %v1891_v54 = vld [vmem:[%s2162_s17 + $0xf0] sm:$0xff] }
  0x90   : > { %v873_v53 = vmul.f32 %v841_v49, %v841_v49  ;;  %v887_v33 = vmul.f32 %v871_v56, %v855_v60  ;;  %v844_v26 = vmax.f32 %v828_v45, 0.0  ;;  %v902_v12 = vadd.f32 %v2780_v52, %v2775_v48  ;;  %v4227_v49 = vld [vmem:[#allocation18_spill] sm:$0xff]  ;;  %v4228_v56 = vld [vmem:[#allocation37_spill] sm:$0xff] }
  0x91   : > { %v920_v38 = vadd.f32 %v2868_v35, %v2865_v4  ;;  %v938_v7 = vadd.f32 %v806_v27, %v805_v29  ;;  %v858_v59 = vsub.f32 0.5, %v2700_v11  ;;  %v874_v6 = vmul.f32 %v842_v15, %v842_v15  ;;  %v4222_v35 = vld [vmem:[#allocation15_spill] sm:$0xff] }
  0x92   : > { %v888_v24 = vmul.f32 %v872_v0, %v856_v44  ;;  %v956_v32 = vadd.f32 %v886_v51, %v885_v14  ;;  %v845_v9 = vmax.f32 %v829_v23, 0.0  ;;  %v903_v10 = vadd.f32 %v2785_v25, %v902_v12  ;;  %v4229_v44 = vld [vmem:[#allocation2_spill] sm:$0xff] }
  0x93   : > { %v921_v43 = vadd.f32 %v2871_v42, %v920_v38  ;;  %v939_v19 = vadd.f32 %v938_v7, %v807_v20  ;;  %v859_v63 = vsub.f32 0.5, %v2703_v37  ;;  %v875_v57 = vmul.f32 %v843_v8, %v843_v8  ;;  %v4223_v42 = vld [vmem:[#allocation45_spill] sm:$0xff]  ;;  %v4233_v12 = vld [vmem:[#allocation6_spill] sm:$0xff] }
  0x94   : > { %v889_v30 = vmul.f32 %v873_v53, %v857_v22  ;;  %v957_v48 = vadd.f32 %v956_v32, %v887_v33  ;;  %v846_v52 = vmax.f32 %v830_v41, 0.0  ;;  %v904_v27 = vadd.f32 %v2790_v50, %v903_v10  ;;  %v4230_v41 = vld [vmem:[#allocation46_spill] sm:$0xff]  ;;  %v4231_v8 = vld [vmem:[#allocation29_spill] sm:$0xff]  ;;  %v4232_v53 = vld [vmem:[#allocation20_spill] sm:$0xff] }
  0x95   : > { %v922_v11 = vadd.f32 %v2874_v62, %v921_v43  ;;  %v940_v4 = vadd.f32 %v939_v19, %v808_v36  ;;  %v860_v29 = vsub.f32 0.5, %v4222_v35  ;;  %v876_v39 = vmul.f32 %v844_v26, %v844_v26  ;;  %v1892_v62 = vld [vmem:[%s2162_s17 + $0xf8] sm:$0xff]  ;;  %v4238_v43 = vld [vmem:[#allocation31_spill] sm:$0xff]  ;;  %v4242_v35 = vld [vmem:[#allocation10_spill] sm:$0xff] }
  0x96   : > { %v890_v25 = vmul.f32 %v874_v6, %v858_v59  ;;  %v958_v34 = vadd.f32 %v957_v48, %v888_v24  ;;  %v833_v20 = vsub.f32 2.0, %v4223_v42  ;;  %v905_v37 = vadd.f32 %v4224_v17, %v904_v27  ;;  %v4235_v38 = vld [vmem:[#allocation25_spill] sm:$0xff]  ;;  %v4240_v27 = vld [vmem:[#allocation39_spill] sm:$0xff] }
  0x97   : > { %v923_v61 = vadd.f32 %v4225_v18, %v922_v11  ;;  %v941_v28 = vadd.f32 %v940_v4, %v809_v2  ;;  %v861_v13 = vsub.f32 0.5, %v4226_v58  ;;  %v877_v55 = vmul.f32 %v845_v9, %v845_v9  ;;  %v4237_v9 = vld [vmem:[#allocation33_spill] sm:$0xff]  ;;  %v4241_v11 = vld [vmem:[#allocation47_spill] sm:$0xff] }
  0x98   : > { %v891_v50 = vmul.f32 %v875_v57, %v859_v63  ;;  %v959_v40 = vadd.f32 %v958_v34, %v889_v30  ;;  %v847_v36 = vmax.f32 %v831_v47, 0.0  ;;  %v906_v60 = vadd.f32 %v4227_v49, %v905_v37  ;;  %v4234_v47 = vld [vmem:[#allocation14_spill] sm:$0xff]  ;;  %v4245_v58 = vld [vmem:[#allocation11_spill] sm:$0xff] }
  0x99   : > { %v924_v45 = vadd.f32 %v4228_v56, %v923_v61  ;;  %v942_v15 = vadd.f32 %v941_v28, %v810_v16  ;;  %v862_v0 = vsub.f32 0.5, %v4229_v44  ;;  %v878_v14 = vmul.f32 %v846_v52, %v846_v52  ;;  %v4236_v16 = vld [vmem:[#allocation7_spill] sm:$0xff] }
  0x9a   : > { %v892_v51 = vmul.f32 %v876_v39, %v860_v29  ;;  %v960_v23 = vadd.f32 %v959_v40, %v890_v25  ;;  %v834_v2 = vsub.f32 2.0, %v4230_v41  ;;  %v907_v22 = vadd.f32 %v4231_v8, %v906_v60  ;;  %v4243_v39 = vld [vmem:[#allocation21_spill] sm:$0xff]  ;;  %v4252_v41 = vld [vmem:[#allocation8_spill] sm:$0xff] }
  0x9b   : > { %v925_v33 = vadd.f32 %v4232_v53, %v924_v45  ;;  %v943_v26 = vadd.f32 %v942_v15, %v2972_v46  ;;  %vm737_vm12 = vcmp.eq.f32.partialorder %v4233_v12, -1.0  ;;  %vm738_vm13 = vcmp.eq.f32.partialorder %v4234_v47, -1.0  ;;  %v4239_v46 = vld [vmem:[#allocation3_spill] sm:$0xff]  ;;  %v4249_v15 = vld [vmem:[#allocation5_spill] sm:$0xff]  ;;  %v1933_v12 = vld [vmem:[%s2167_s20 + $0x110] sm:$0xff] }
  0x9c   : > { %vm739_vm14 = vcmp.eq.f32.partialorder %v4235_v38, -1.0  ;;  %vm740_vm15 = vcmp.eq.f32.partialorder %v4236_v16, -1.0  ;;  %v835_v7 = vsub.f32 2.0, %v1891_v54  ;;  %v836_v59 = vsub.f32 2.0, %v1892_v62  ;;  %v4258_v47 = vld [vmem:[#allocation42_spill] sm:$0xff]  ;;  %v1934_v16 = vld [vmem:[%s2167_s20 + $0x118] sm:$0xff] }
  0x9d   : > { %v893_v6 = vmul.f32 %v877_v55, %v861_v13  ;;  %v961_v24 = vadd.f32 %v960_v23, %v891_v50  ;;  %v848_v32 = vmax.f32 %v832_v31, 0.0  ;;  %v908_v10 = vadd.f32 %v4237_v9, %v907_v22  ;;  %v4246_v50 = vld [vmem:[#allocation22_spill] sm:$0xff] }
  0x9e   : > { %v926_v19 = vadd.f32 %v4238_v43, %v925_v33  ;;  %v944_v63 = vadd.f32 %v943_v26, %v2974_v21  ;;  %v863_v57 = vsub.f32 0.5, %v4239_v46  ;;  %v879_v30 = vmul.f32 %v847_v36, %v847_v36  ;;  %v4244_v21 = vld [vmem:[#allocation4_spill] sm:$0xff]  ;;  %v4254_v26 = vld [vmem:[#allocation23_spill] sm:$0xff]  ;;  %v4256_v46 = vld [vmem:[#allocation41_spill] sm:$0xff] }
  0x9f   : > { %v894_v48 = vmul.f32 %v878_v14, %v862_v0  ;;  %v962_v52 = vadd.f32 %v961_v24, %v892_v51  ;;  %v815_v4 = vmul.f32 %v4241_v11, %v4240_v27  ;;  %v909_v29 = vadd.f32 %v4242_v35, %v908_v10  ;;  %v4250_v0 = vld [vmem:[#allocation16_spill] sm:$0xff]  ;;  %v4251_v51 = vld [vmem:[#allocation27_spill] sm:$0xff]  ;;  %v1931_v24 = vld [vmem:[%s2167_s20 + $0x100] sm:$0xff] }
  0xa0   : > { %v927_v25 = vadd.f32 %v4243_v39, %v926_v19  ;;  %v945_v31 = vadd.f32 %v944_v63, %v2977_v1  ;;  %v849_v34 = vmax.f32 %v833_v20, 0.0  ;;  %v850_v42 = vmax.f32 %v834_v2, 0.0  ;;  %v4247_v1 = vld [vmem:[#allocation40_spill] sm:$0xff]  ;;  %v1932_v63 = vld [vmem:[%s2167_s20 + $0x108] sm:$0xff] }
  0xa1   : > { %v851_v17 = vmax.f32 %v835_v7, 0.0  ;;  %v963_v37 = vadd.f32 %v962_v52, %v893_v6  ;;  %v852_v18 = vmax.f32 %v836_v59, 0.0  ;;  %v864_v61 = vsub.f32 0.5, %v4244_v21  ;;  %v4248_v20 = vld [vmem:[#allocation48_spill] sm:$0xff]  ;;  %v4259_v52 = vld [vmem:[#allocation43_spill] sm:$0xff] }
  0xa2   : > { %v880_v28 = vmul.f32 %v848_v32, %v848_v32  ;;  %v910_v13 = vadd.f32 %v4245_v58, %v909_v29  ;;  %v895_v55 = vmul.f32 %v879_v30, %v863_v57  ;;  %v928_v40 = vadd.f32 %v4246_v50, %v927_v25  ;;  %v4257_v57 = vld [vmem:[#allocation49_spill] sm:$0xff]  ;;  %v4260_v27 = vld [vmem:[#allocation44_spill] sm:$0xff]  ;;  %v1936_v35 = vld [vmem:[%s2167_s20 + $0x128] sm:$0xff] }
  0xa3   : > { %v946_v36 = vadd.f32 %v945_v31, %v2979_v5  ;;  %v964_v49 = vadd.f32 %v963_v37, %v894_v48  ;;  %v803_v60 = vmul.f32 %v1891_v54, %v1891_v54  ;;  %v804_v56 = vmul.f32 %v1892_v62, %v1892_v62  ;;  %v4253_v54 = vld [vmem:[#allocation12_spill] sm:$0xff]  ;;  %v4261_v31 = vld [vmem:[#allocation13_spill] sm:$0xff]  ;;  %v1940_v58 = vld [vmem:[%s2167_s20 + $0x148] sm:$0xff] }
  0xa4   : > { %v816_v45 = vmul.f32 %v4248_v20, %v4247_v1  ;;  %v865_v44 = vsub.f32 0.5, %v4249_v15  ;;  %v866_v14 = vsub.f32 0.5, %v4250_v0  ;;  %v867_v23 = vsub.f32 0.5, %v4251_v51  ;;  %v1943_v50 = vld [vmem:[%s2167_s20 + $0x160] sm:$0xff] }
  0xa5   : > { %v868_v2 = vsub.f32 0.5, %v4252_v41  ;;  %v881_v8 = vmul.f32 %v849_v34, %v849_v34  ;;  %v882_v22 = vmul.f32 %v850_v42, %v850_v42  ;;  %v883_v5 = vmul.f32 %v851_v17, %v851_v17  ;;  %v1938_v42 = vld [vmem:[%s2167_s20 + $0x138] sm:$0xff]  ;;  %v1939_v17 = vld [vmem:[%s2167_s20 + $0x140] sm:$0xff] }
  0xa6   : > { %v884_v53 = vmul.f32 %v852_v18, %v852_v18  ;;  %v911_v33 = vadd.f32 %v4253_v54, %v910_v13  ;;  %v896_v62 = vmul.f32 %v880_v28, %v864_v61  ;;  %v929_v7 = vadd.f32 %v4254_v26, %v928_v40  ;;  %v4262_v18 = vld [vmem:[#allocation24_spill] sm:$0xff]  ;;  %v1944_v40 = vld [vmem:[%s2167_s20 + $0x168] sm:$0xff]  ;;  %v4264_v51 = vld [vmem:[#allocation30_spill] sm:$0xff] }
  0xa7   : > { %v947_v59 = vadd.f32 %v946_v36, %v815_v4  ;;  %v965_v6 = vadd.f32 %v964_v49, %v895_v55  ;;  %v4255_v32 = vmov 0.0   ;;  %v817_v30 = vmul.f32 %v4257_v57, %v4256_v46  ;;  %v1935_v4 = vld [vmem:[%s2167_s20 + $0x120] sm:$0xff]  ;;  %v1941_v13 = vld [vmem:[%s2167_s20 + $0x150] sm:$0xff]  ;;  %v1942_v55 = vld [vmem:[%s2167_s20 + $0x158] sm:$0xff] }
  0xa8   : > { %v1921_v9 = vsel %vm737_vm12, 1.0, %v4255_v32  ;;  %v1922_v10 = vsel %vm738_vm13, 1.0, %v4255_v32  ;;  %v3045_v43 = vsel %vm739_vm14, 1.0, %v4255_v32  ;;  %v3050_v19 = vsel %vm740_vm15, 1.0, %v4255_v32  ;;  %v1945_v36 = vld [vmem:[%s2167_s20 + $0x170] sm:$0xff]  ;;  %v1946_v49 = vld [vmem:[%s2167_s20 + $0x178] sm:$0xff] }
  0xa9   : > { %v818_v48 = vmul.f32 %v2968_v3, %v4258_v47  ;;  %v3059_v38 = vmul.f32 %v803_v60, %v4259_v52  ;;  %v3062_v11 = vmul.f32 %v804_v56, %v4260_v27  ;;  %v897_v29 = vmul.f32 %v881_v8, %v865_v44  ;;  %v1937_v3 = vld [vmem:[%s2167_s20 + $0x130] sm:$0xff]  ;;  %v4263_v60 = vld [vmem:[#allocation19_spill] sm:$0xff] }
  0xaa   : > { %v898_v39 = vmul.f32 %v882_v22, %v866_v14  ;;  %v899_v25 = vmul.f32 %v883_v5, %v867_v23  ;;  %v912_v34 = vadd.f32 %v4261_v31, %v911_v33  ;;  %v3071_v37 = vmul.f32 %v884_v53, %v868_v2 }
  0xab   : > { %v930_v21 = vadd.f32 %v4262_v18, %v929_v7  ;;  %v948_v61 = vadd.f32 %v947_v59, %v816_v45  ;;  %v966_v28 = vadd.f32 %v965_v6, %v896_v62  ;;  %vm1007_vm0 = vcmp.eq.f32.partialorder %v1931_v24, 255.0 }
  0xac   : > { %vm1008_vm1 = vcmp.eq.f32.partialorder %v1932_v63, 255.0  ;;  %vm1009_vm2 = vcmp.eq.f32.partialorder %v1933_v12, 255.0  ;;  %vm1010_vm3 = vcmp.eq.f32.partialorder %v1934_v16, 255.0  ;;  %vm1011_vm4 = vcmp.eq.f32.partialorder %v1935_v4, 255.0 }
  0xad   : > { %vm1012_vm5 = vcmp.eq.f32.partialorder %v1936_v35, 255.0  ;;  %vm1013_vm6 = vcmp.eq.f32.partialorder %v1937_v3, 255.0  ;;  %vm1014_vm7 = vcmp.eq.f32.partialorder %v1938_v42, 255.0  ;;  %v913_v56 = vadd.f32 %v4263_v60, %v912_v34 }
  0xae   : > { %vm1015_vm8 = vcmp.eq.f32.partialorder %v1939_v17, 255.0  ;;  %vm1016_vm9 = vcmp.eq.f32.partialorder %v1940_v58, 255.0  ;;  %vm1017_vm10 = vcmp.eq.f32.partialorder %v1941_v13, 255.0  ;;  %v931_v1 = vadd.f32 %v1921_v9, %v930_v21 }
  0xaf   : > { %v949_v20 = vadd.f32 %v948_v61, %v817_v30  ;;  %v967_v45 = vadd.f32 %v966_v28, %v897_v29  ;;  %vm1018_vm11 = vcmp.eq.f32.partialorder %v1942_v55, 255.0  ;;  %vm1019_vm12 = vcmp.eq.f32.partialorder %v1943_v50, 255.0 }
  0xb0   : > { %vm1020_vm13 = vcmp.eq.f32.partialorder %v1944_v40, 255.0  ;;  %vm1021_vm14 = vcmp.eq.f32.partialorder %v1945_v36, 255.0  ;;  %vm1022_vm15 = vcmp.eq.f32.partialorder %v1946_v49, 255.0  ;;  %v3083_v15 = vsel %vm1007_vm0, 1.0, %v1931_v24 }
  0xb1   : > { %v3086_v44 = vsel %vm1008_vm1, 1.0, %v1932_v63  ;;  %v3089_v0 = vsel %vm1009_vm2, 1.0, %v1933_v12  ;;  %v3092_v14 = vsel %vm1010_vm3, 1.0, %v1934_v16  ;;  %v914_v23 = vadd.f32 %v4264_v51, %v913_v56 }
  0xb2   : > { %v3096_v41 = vsel %vm1011_vm4, 1.0, %v1935_v4  ;;  %v3099_v2 = vsel %vm1012_vm5, 1.0, %v1936_v35  ;;  %v3102_v8 = vsel %vm1013_vm6, 1.0, %v1937_v3  ;;  %v932_v22 = vadd.f32 %v1922_v10, %v931_v1  ;;  %v4267_v10 = vld [vmem:[#allocation34_spill] sm:$0xff] }
  0xb3   : > { %v950_v5 = vadd.f32 %v949_v20, %v818_v48  ;;  %v968_v53 = vadd.f32 %v967_v45, %v898_v39  ;;  %v3105_v54 = vsel %vm1014_vm7, 1.0, %v1938_v42  ;;  %v3108_v33 = vsel %vm1015_vm8, 1.0, %v1939_v17 }
  0xb4   : > { %v3111_v62 = vsel %vm1016_vm9, 1.0, %v1940_v58  ;;  %v3114_v26 = vsel %vm1017_vm10, 1.0, %v1941_v13  ;;  %v3117_v7 = vsel %vm1018_vm11, 1.0, %v1942_v55  ;;  %v3120_v59 = vsel %vm1019_vm12, 1.0, %v1943_v50  ;;  %v4281_v58 = vld [vmem:[#allocation32_spill] sm:$0xff]  ;;  %v4283_v55 = vld [vmem:[#allocation38_spill] sm:$0xff] }
  0xb5   : > { %v3123_v6 = vsel %vm1020_vm13, 1.0, %v1944_v40  ;;  %v3126_v24 = vsel %vm1021_vm14, 1.0, %v1945_v36  ;;  %v3129_v9 = vsel %vm1022_vm15, 1.0, %v1946_v49  ;;  %v915_v63 = vadd.f32 %v4267_v10, %v914_v23 }
  0xb6   : > { %4265 = vst [vmem:[#allocation15_spill] sm:$0xff] %v3126_v24  ;;  %4266 = vst [vmem:[#allocation45_spill] sm:$0xff] %v3129_v9  ;;  %v3133_v12 = vmul.f32 0.5, %v3083_v15  ;;  %v3136_v46 = vmul.f32 0.5, %v3086_v44  ;;  %v3139_v57 = vmul.f32 0.5, %v3089_v0  ;;  %v933_v30 = vadd.f32 %v3045_v43, %v932_v22 }
  0xb7   : > { %v951_v47 = vadd.f32 %v950_v5, %v3059_v38  ;;  %v969_v48 = vadd.f32 %v968_v53, %v899_v25  ;;  %v3144_v52 = vmul.f32 0.5, %v3092_v14  ;;  %v3147_v27 = vmul.f32 0.5, %v3096_v41  ;;  %v4272_v25 = vld [vmem:[#allocation35_spill] sm:$0xff] }
  0xb8   : > { %v3150_v16 = vmul.f32 0.5, %v3099_v2  ;;  %v3153_v4 = vmul.f32 0.5, %v3102_v8  ;;  %v3156_v35 = vmul.f32 0.5, %v3105_v54  ;;  %v3159_v43 = vmul.f32 0.5, %v3108_v33 }
  0xb9   : > { %v3162_v38 = vmul.f32 0.5, %v3111_v62  ;;  %v3165_v29 = vmul.f32 0.5, %v3114_v26  ;;  %v3168_v39 = vmul.f32 0.5, %v3117_v7  ;;  %v916_v31 = vadd.f32 %v4272_v25, %v915_v63 }
  0xba   : > { %4268 = vst [vmem:[#allocation9_spill] sm:$0xff] %v3159_v43  ;;  %v3172_v34 = vmul.f32 0.5, %v3120_v59  ;;  %v3175_v3 = vmul.f32 0.5, %v3123_v6  ;;  %v3178_v42 = vmul.f32 0.5, %v3126_v24  ;;  %v934_v17 = vadd.f32 %v3050_v19, %v933_v30  ;;  %v4277_v19 = vld [vmem:[#allocation17_spill] sm:$0xff] }
  0xbb   : > { %4269 = vst [vmem:[#allocation36_spill] sm:$0xff] %v3162_v38  ;;  %4270 = vst [vmem:[#allocation26_spill] sm:$0xff] %v3165_v29  ;;  %v952_v18 = vadd.f32 %v951_v47, %v3062_v11  ;;  %v970_v21 = vadd.f32 %v969_v48, %v3071_v37  ;;  %v3184_v61 = vmul.f32 0.5, %v3129_v9  ;;  %vm1055_vm0 = vcmp.eq.f32.partialorder %v3083_v15, 1.0  ;;  %v4279_v37 = vld [vmem:[#allocation28_spill] sm:$0xff]  ;;  %v1947_v47 = vld [vmem:[%s2162_s17 + $0x100] sm:$0xff] }
  0xbc   : > { %4271 = vst [vmem:[#allocation18_spill] sm:$0xff] %v3168_v39  ;;  %4273 = vst [vmem:[#allocation37_spill] sm:$0xff] %v3172_v34  ;;  %vm1056_vm1 = vcmp.eq.f32.partialorder %v3086_v44, 1.0  ;;  %vm1057_vm2 = vcmp.eq.f32.partialorder %v3089_v0, 1.0  ;;  %vm1058_vm3 = vcmp.eq.f32.partialorder %v3092_v14, 1.0  ;;  %vm1059_vm4 = vcmp.eq.f32.partialorder %v3096_v41, 1.0 }
  0xbd   : > { %4274 = vst [vmem:[#allocation2_spill] sm:$0xff] %v3175_v3  ;;  %4275 = vst [vmem:[#allocation46_spill] sm:$0xff] %v3178_v42  ;;  %vm1060_vm5 = vcmp.eq.f32.partialorder %v3099_v2, 1.0  ;;  %vm1061_vm6 = vcmp.eq.f32.partialorder %v3102_v8, 1.0  ;;  %vm1062_vm7 = vcmp.eq.f32.partialorder %v3105_v54, 1.0  ;;  %v3195_v11 = vadd.f32 %v916_v31, %v4277_v19  ;;  %v1948_v48 = vld [vmem:[%s2162_s17 + $0x108] sm:$0xff] }
  0xbe   : > { %4276 = vst [vmem:[#allocation29_spill] sm:$0xff] %v3184_v61  ;;  %vm1063_vm8 = vcmp.eq.f32.partialorder %v3108_v33, 1.0  ;;  %vm1064_vm9 = vcmp.eq.f32.partialorder %v3111_v62, 1.0  ;;  %vm1065_vm10 = vcmp.eq.f32.partialorder %v3114_v26, 1.0  ;;  %v3201_v28 = vadd.f32 %v934_v17, %v4279_v37 }
  0xbf   : > { %4278 = vst [vmem:[#allocation20_spill] sm:$0xff] %v3195_v11  ;;  %v3204_v13 = vadd.f32 %v952_v18, %v4281_v58  ;;  %v3207_v50 = vadd.f32 %v970_v21, %v4283_v55  ;;  %vm1066_vm11 = vcmp.eq.f32.partialorder %v3117_v7, 1.0  ;;  %vm1067_vm12 = vcmp.eq.f32.partialorder %v3120_v59, 1.0  ;;  %v1949_v55 = vld [vmem:[%s2162_s17 + $0x110] sm:$0xff] }
  0xc0   : > { %4280 = vst [vmem:[#allocation6_spill] sm:$0xff] %v3201_v28  ;;  %vm1068_vm13 = vcmp.eq.f32.partialorder %v3123_v6, 1.0  ;;  %vm1069_vm14 = vcmp.eq.f32.partialorder %v3126_v24, 1.0  ;;  %vm1070_vm15 = vcmp.eq.f32.partialorder %v3129_v9, 1.0  ;;  %v3217_v40 = vsel %vm1055_vm0, 1.0, %v4255_v32 }
  0xc1   : > { %4282 = vst [vmem:[#allocation14_spill] sm:$0xff] %v3204_v13  ;;  %4284 = vst [vmem:[#allocation25_spill] sm:$0xff] %v3207_v50  ;;  %v3222_v36 = vsel %vm1056_vm1, 1.0, %v4255_v32  ;;  %v3227_v49 = vsel %vm1057_vm2, 1.0, %v4255_v32  ;;  %v3232_v60 = vsel %vm1058_vm3, 1.0, %v4255_v32  ;;  %v3237_v56 = vsel %vm1059_vm4, 1.0, %v4255_v32 }
  0xc2   : > { %4285 = vst [vmem:[#allocation7_spill] sm:$0xff] %v3237_v56  ;;  %v3242_v1 = vsel %vm1060_vm5, 1.0, %v4255_v32  ;;  %v3247_v20 = vsel %vm1061_vm6, 1.0, %v4255_v32  ;;  %v3252_v45 = vsel %vm1062_vm7, 1.0, %v4255_v32  ;;  %v3257_v51 = vsel %vm1063_vm8, 1.0, %v4255_v32 }
  0xc3   : > { %4286 = vst [vmem:[#allocation33_spill] sm:$0xff] %v3242_v1  ;;  %4287 = vst [vmem:[#allocation31_spill] sm:$0xff] %v3247_v20  ;;  %v3262_v23 = vsel %vm1064_vm9, 1.0, %v4255_v32  ;;  %v3267_v22 = vsel %vm1065_vm10, 1.0, %v4255_v32  ;;  %v3272_v5 = vsel %vm1066_vm11, 1.0, %v4255_v32  ;;  %v3277_v53 = vsel %vm1067_vm12, 1.0, %v4255_v32 }
  0xc4   : > { %4288 = vst [vmem:[#allocation3_spill] sm:$0xff] %v3252_v45  ;;  %4289 = vst [vmem:[#allocation39_spill] sm:$0xff] %v3257_v51  ;;  %v3282_v10 = vsel %vm1068_vm13, 1.0, %v4255_v32  ;;  %v3287_v63 = vsel %vm1069_vm14, 1.0, %v4255_v32  ;;  %v3292_v30 = vsel %vm1070_vm15, 1.0, %v4255_v32  ;;  %vm1103_vm0 = vcmp.eq.f32.partialorder %v3083_v15, -1.0 }
  0xc5   : > { %4290 = vst [vmem:[#allocation47_spill] sm:$0xff] %v3262_v23  ;;  %4291 = vst [vmem:[#allocation10_spill] sm:$0xff] %v3267_v22  ;;  %vm1104_vm1 = vcmp.eq.f32.partialorder %v3086_v44, -1.0  ;;  %vm1105_vm2 = vcmp.eq.f32.partialorder %v3089_v0, -1.0  ;;  %vm1106_vm3 = vcmp.eq.f32.partialorder %v3092_v14, -1.0  ;;  %vm1107_vm4 = vcmp.eq.f32.partialorder %v3096_v41, -1.0 }
  0xc6   : > { %4292 = vst [vmem:[#allocation21_spill] sm:$0xff] %v3272_v5  ;;  %4293 = vst [vmem:[#allocation4_spill] sm:$0xff] %v3277_v53  ;;  %vm1108_vm5 = vcmp.eq.f32.partialorder %v3099_v2, -1.0  ;;  %vm1109_vm6 = vcmp.eq.f32.partialorder %v3102_v8, -1.0  ;;  %vm1110_vm7 = vcmp.eq.f32.partialorder %v3105_v54, -1.0  ;;  %vm1111_vm8 = vcmp.eq.f32.partialorder %v3108_v33, -1.0 }
  0xc7   : > { %4294 = vst [vmem:[#allocation11_spill] sm:$0xff] %v3282_v10  ;;  %4295 = vst [vmem:[#allocation22_spill] sm:$0xff] %v3287_v63  ;;  %vm1112_vm9 = vcmp.eq.f32.partialorder %v3111_v62, -1.0  ;;  %vm1113_vm10 = vcmp.eq.f32.partialorder %v3114_v26, -1.0  ;;  %vm1114_vm11 = vcmp.eq.f32.partialorder %v3117_v7, -1.0  ;;  %vm1115_vm12 = vcmp.eq.f32.partialorder %v3120_v59, -1.0 }
  0xc8   : > { %4296 = vst [vmem:[#allocation40_spill] sm:$0xff] %v3292_v30  ;;  %vm1116_vm13 = vcmp.eq.f32.partialorder %v3123_v6, -1.0  ;;  %v3309_v15 = vsel %vm1103_vm0, 1.0, %v4255_v32  ;;  %v3312_v44 = vsel %vm1104_vm1, 1.0, %v4255_v32  ;;  %v3315_v0 = vsel %vm1105_vm2, 1.0, %v4255_v32  ;;  %v1950_v30 = vld [vmem:[%s2162_s17 + $0x118] sm:$0xff] }
  0xc9   : > { %v3318_v14 = vsel %vm1106_vm3, 1.0, %v4255_v32  ;;  %v3321_v41 = vsel %vm1107_vm4, 1.0, %v4255_v32  ;;  %v3324_v2 = vsel %vm1108_vm5, 1.0, %v4255_v32  ;;  %v3327_v8 = vsel %vm1109_vm6, 1.0, %v4255_v32  ;;  %v1951_v53 = vld [vmem:[%s2162_s17 + $0x120] sm:$0xff]  ;;  %v1954_v22 = vld [vmem:[%s2162_s17 + $0x138] sm:$0xff] }
  0xca   : > { %4297 = vst [vmem:[#allocation48_spill] sm:$0xff] %v3321_v41  ;;  %4298 = vst [vmem:[#allocation5_spill] sm:$0xff] %v3324_v2  ;;  %v3330_v54 = vsel %vm1110_vm7, 1.0, %v4255_v32  ;;  %v3333_v33 = vsel %vm1111_vm8, 1.0, %v4255_v32  ;;  %v3336_v62 = vsel %vm1112_vm9, 1.0, %v4255_v32  ;;  %v3339_v26 = vsel %vm1113_vm10, 1.0, %v4255_v32 }
  0xcb   : > { %4299 = vst [vmem:[#allocation16_spill] sm:$0xff] %v3327_v8  ;;  %4300 = vst [vmem:[#allocation27_spill] sm:$0xff] %v3330_v54  ;;  %v3342_v7 = vsel %vm1114_vm11, 1.0, %v4255_v32  ;;  %v3345_v59 = vsel %vm1115_vm12, 1.0, %v4255_v32  ;;  %v3348_v6 = vsel %vm1116_vm13, 1.0, %v4255_v32  ;;  %v1151_v25 = vadd.f32 0.5, %v3133_v12 }
  0xcc   : > { %4301 = vst [vmem:[#allocation8_spill] sm:$0xff] %v3333_v33  ;;  %4302 = vst [vmem:[#allocation12_spill] sm:$0xff] %v3336_v62  ;;  %v1152_v31 = vadd.f32 0.5, %v3136_v46  ;;  %v1153_v17 = vadd.f32 0.5, %v3139_v57  ;;  %v1154_v18 = vadd.f32 0.5, %v3144_v52  ;;  %v1155_v21 = vadd.f32 0.5, %v3147_v27 }
  0xcd   : > { %4303 = vst [vmem:[#allocation23_spill] sm:$0xff] %v3339_v26  ;;  %4304 = vst [vmem:[#allocation41_spill] sm:$0xff] %v3342_v7  ;;  %v1156_v19 = vadd.f32 0.5, %v3150_v16  ;;  %v3359_v37 = vadd.f32 0.5, %v3153_v4  ;;  %v3362_v58 = vadd.f32 0.5, %v3156_v35  ;;  %v3366_v50 = vadd.f32 0.5, %v3159_v43 }
  0xce   : > { %4305 = vst [vmem:[#allocation49_spill] sm:$0xff] %v3345_v59  ;;  %4306 = vst [vmem:[#allocation42_spill] sm:$0xff] %v3348_v6  ;;  %v3369_v13 = vadd.f32 0.5, %v3162_v38  ;;  %v3372_v28 = vadd.f32 0.5, %v3165_v29  ;;  %v3375_v11 = vadd.f32 0.5, %v3168_v39  ;;  %v3379_v63 = vadd.f32 0.5, %v3172_v34 }
  0xcf   : > { %v3382_v6 = vadd.f32 0.5, %v3175_v3  ;;  %v1199_v10 = vsub.f32 2.0, %v1947_v47  ;;  %v1200_v59 = vsub.f32 2.0, %v1948_v48  ;;  %v3386_v7 = vadd.f32 0.5, %v3178_v42  ;;  %v1953_v26 = vld [vmem:[%s2162_s17 + $0x130] sm:$0xff]  ;;  %v3404_v62 = vld [vmem:[%s2162_s17 + $0x158] sm:$0xff] }
  0xd0   : > { %4307 = vst [vmem:[#allocation43_spill] sm:$0xff] %v3369_v13  ;;  %4308 = vst [vmem:[#allocation44_spill] sm:$0xff] %v3372_v28  ;;  %v3389_v5 = vadd.f32 0.5, %v3184_v61  ;;  %v1168_v32 = vmul.f32 %v1948_v48, %v1948_v48  ;;  %v1170_v3 = vmul.f32 %v1950_v30, %v1950_v30  ;;  %v1171_v34 = vmul.f32 %v1951_v53, %v1951_v53  ;;  %v3395_v28 = vld [vmem:[%s2162_s17 + $0x140] sm:$0xff]  ;;  %v3401_v61 = vld [vmem:[%s2162_s17 + $0x150] sm:$0xff] }
  0xd1   : > { %4309 = vst [vmem:[#allocation13_spill] sm:$0xff] %v3375_v11  ;;  %4310 = vst [vmem:[#allocation24_spill] sm:$0xff] %v3379_v63  ;;  %v1167_v11 = vmul.f32 %v1947_v47, %v1947_v47  ;;  %v1952_v63 = vld [vmem:[%s2162_s17 + $0x128] sm:$0xff]  ;;  %v1201_v39 = vsub.f32 2.0, %v1949_v55  ;;  %v1174_v48 = vmul.f32 %v1954_v22, %v1954_v22  ;;  %v1202_v42 = vsub.f32 2.0, %v1950_v30  ;;  %v3407_v23 = vld [vmem:[%s2162_s17 + $0x160] sm:$0xff] }
  0xd2   : > { %4311 = vst [vmem:[#allocation19_spill] sm:$0xff] %v3382_v6  ;;  %4312 = vst [vmem:[#allocation30_spill] sm:$0xff] %v3386_v7  ;;  %v1169_v6 = vmul.f32 %v1949_v55, %v1949_v55  ;;  %v3398_v7 = vld [vmem:[%s2162_s17 + $0x148] sm:$0xff]  ;;  %v1172_v47 = vmul.f32 %v1952_v63, %v1952_v63  ;;  %v1175_v55 = vmul.f32 %v3395_v28, %v3395_v28  ;;  %v1215_v51 = vmax.f32 %v1199_v10, 0.0  ;;  %v3419_v54 = vld [vmem:[%s2162_s17 + $0x170] sm:$0xff] }
  0xd3   : > { %4313 = vst [vmem:[#allocation34_spill] sm:$0xff] %v3389_v5  ;;  %v1173_v5 = vmul.f32 %v1953_v26, %v1953_v26  ;;  %4314 = vst [vmem:[#allocation35_spill] sm:$0xff] %v3407_v23  ;;  %v3410_v29 = vld [vmem:[%s2162_s17 + $0x168] sm:$0xff]  ;;  %v3416_v33 = vmul.f32 %v3398_v7, %v3398_v7  ;;  %v1216_v13 = vmax.f32 %v1200_v59, 0.0  ;;  %v3422_v45 = vld [vmem:[%s2162_s17 + $0x178] sm:$0xff]  ;;  %v3426_v30 = vmul.f32 %v3401_v61, %v3401_v61 }
  0xd4   : > { %4315 = vst [vmem:[#allocation17_spill] sm:$0xff] %v3410_v29  ;;  %4317 = vst [vmem:[#allocation32_spill] sm:$0xff] %v3419_v54  ;;  %v3430_v38 = vmul.f32 %v3404_v62, %v3404_v62  ;;  %v3434_v8 = vmul.f32 %v3407_v23, %v3407_v23  ;;  %v3438_v10 = vmul.f32 %v3410_v29, %v3410_v29  ;;  %v1217_v20 = vmax.f32 %v1201_v39, 0.0 }
  0xd5   : > { %4316 = vst [vmem:[#allocation28_spill] sm:$0xff] %v3416_v33  ;;  %4318 = vst [vmem:[#allocation38_spill] sm:$0xff] %v3426_v30  ;;  %v3442_v59 = vmul.f32 %v3419_v54, %v3419_v54  ;;  %v3446_v33 = vmul.f32 %v3422_v45, %v3422_v45  ;;  %v1203_v30 = vsub.f32 2.0, %v1951_v53  ;;  %v1183_v9 = vmul.f32 %v1167_v11, %v1151_v25 }
  0xd6   : > { %4319 = vst [vmem:[#allocation50_spill] sm:$0xff] %v3430_v38  ;;  %4320 = vst [vmem:[#allocation51_spill] sm:$0xff] %v3434_v8  ;;  %v1184_v38 = vmul.f32 %v1168_v32, %v1152_v31  ;;  %v1204_v24 = vsub.f32 2.0, %v1952_v63  ;;  %v1218_v2 = vmax.f32 %v1202_v42, 0.0  ;;  %v1231_v8 = vsub.f32 0.5, %v3133_v12 }
  0xd7   : > { %4321 = vst [vmem:[#allocation52_spill] sm:$0xff] %v3438_v10  ;;  %4322 = vst [vmem:[#allocation53_spill] sm:$0xff] %v3442_v59  ;;  %v1232_v1 = vsub.f32 0.5, %v3136_v46  ;;  %v1247_v29 = vmul.f32 %v1215_v51, %v1215_v51  ;;  %v1248_v10 = vmul.f32 %v1216_v13, %v1216_v13  ;;  %v1185_v23 = vmul.f32 %v1169_v6, %v1153_v17  ;;  %v4325_v17 = vld [vmem:[#allocation48_spill] sm:$0xff] }
  0xd8   : > { %4323 = vst [vmem:[#allocation54_spill] sm:$0xff] %v3446_v33  ;;  %v1186_v43 = vmul.f32 %v1170_v3, %v1154_v18  ;;  %v1187_v54 = vmul.f32 %v1171_v34, %v1155_v21  ;;  %v1188_v59 = vmul.f32 %v1172_v47, %v1156_v19  ;;  %v1205_v41 = vsub.f32 2.0, %v1953_v26  ;;  %v4326_v21 = vld [vmem:[#allocation9_spill] sm:$0xff] }
  0xd9   : > { %v1219_v56 = vmax.f32 %v1203_v30, 0.0  ;;  %v1233_v33 = vsub.f32 0.5, %v3139_v57  ;;  %v1249_v53 = vmul.f32 %v1217_v20, %v1217_v20  ;;  %v1189_v39 = vmul.f32 %v1173_v5, %v3359_v37 }
  0xda   : > { %v3453_v32 = vmul.f32 %v1174_v48, %v3362_v58  ;;  %v1206_v42 = vsub.f32 2.0, %v1954_v22  ;;  %v1220_v12 = vmax.f32 %v1204_v24, 0.0  ;;  %v1234_v46 = vsub.f32 0.5, %v3144_v52  ;;  %v4329_v48 = vld [vmem:[#allocation5_spill] sm:$0xff] }
  0xdb   : > { %v1250_v11 = vmul.f32 %v1218_v2, %v1218_v2  ;;  %v1263_v13 = vmul.f32 %v1247_v29, %v1231_v8  ;;  %v1264_v51 = vmul.f32 %v1248_v10, %v1232_v1  ;;  %v3457_v34 = vmul.f32 %v1175_v55, %v3366_v50  ;;  %v4330_v30 = vld [vmem:[#allocation17_spill] sm:$0xff] }
  0xdc   : > { %v1207_v3 = vsub.f32 2.0, %v3395_v28  ;;  %v1208_v57 = vsub.f32 2.0, %v3398_v7  ;;  %v1209_v20 = vsub.f32 2.0, %v3401_v61  ;;  %v1221_v5 = vmax.f32 %v1205_v41, 0.0 }
  0xdd   : > { %v1235_v63 = vsub.f32 0.5, %v3147_v27  ;;  %v1251_v26 = vmul.f32 %v1219_v56, %v1219_v56  ;;  %v1265_v22 = vmul.f32 %v1249_v53, %v1233_v33  ;;  %v1222_v24 = vmax.f32 %v1206_v42, 0.0  ;;  %v4331_v53 = vld [vmem:[#allocation32_spill] sm:$0xff] }
  0xde   : > { %v1280_v52 = vadd.f32 %v3222_v36, %v3217_v40  ;;  %v1298_v29 = vadd.f32 %v3312_v44, %v3309_v15  ;;  %v1316_v50 = vadd.f32 %v1184_v38, %v1183_v9  ;;  %v1236_v1 = vsub.f32 0.5, %v3150_v16 }
  0xdf   : > { %v1252_v28 = vmul.f32 %v1220_v12, %v1220_v12  ;;  %v1266_v2 = vmul.f32 %v1250_v11, %v1234_v46  ;;  %v1334_v8 = vadd.f32 %v1264_v51, %v1263_v13  ;;  %v1223_v7 = vmax.f32 %v1207_v3, 0.0  ;;  %v4332_v11 = vld [vmem:[#allocation15_spill] sm:$0xff] }
  0xe0   : > { %v1281_v61 = vadd.f32 %v3227_v49, %v1280_v52  ;;  %v1299_v27 = vadd.f32 %v3315_v0, %v1298_v29  ;;  %v1317_v56 = vadd.f32 %v1316_v50, %v1185_v23  ;;  %v1237_v41 = vsub.f32 0.5, %v3153_v4  ;;  %v4324_v0 = vld [vmem:[#allocation7_spill] sm:$0xff] }
  0xe1   : > { %v1253_v33 = vmul.f32 %v1221_v5, %v1221_v5  ;;  %v1267_v6 = vmul.f32 %v1251_v26, %v1235_v63  ;;  %v1335_v40 = vadd.f32 %v1334_v8, %v1265_v22  ;;  %v1210_v36 = vsub.f32 2.0, %v3404_v62  ;;  %v4334_v51 = vld [vmem:[#allocation31_spill] sm:$0xff]  ;;  %v4336_v26 = vld [vmem:[#allocation36_spill] sm:$0xff] }
  0xe2   : > { %v1282_v9 = vadd.f32 %v3232_v60, %v1281_v61  ;;  %v1300_v16 = vadd.f32 %v3318_v14, %v1299_v27  ;;  %v1318_v38 = vadd.f32 %v1317_v56, %v1186_v43  ;;  %v1238_v15 = vsub.f32 0.5, %v3156_v35  ;;  %v4327_v60 = vld [vmem:[#allocation35_spill] sm:$0xff]  ;;  %v4328_v14 = vld [vmem:[#allocation33_spill] sm:$0xff] }
  0xe3   : > { %v1254_v44 = vmul.f32 %v1222_v24, %v1222_v24  ;;  %v1268_v25 = vmul.f32 %v1252_v28, %v1236_v1  ;;  %v1336_v49 = vadd.f32 %v1335_v40, %v1266_v2  ;;  %v1224_v31 = vmax.f32 %v1208_v57, 0.0  ;;  %v4335_v57 = vld [vmem:[#allocation16_spill] sm:$0xff]  ;;  %v4337_v50 = vld [vmem:[#allocation3_spill] sm:$0xff] }
  0xe4   : > { %v1283_v23 = vadd.f32 %v4324_v0, %v1282_v9  ;;  %v1301_v4 = vadd.f32 %v4325_v17, %v1300_v16  ;;  %v1319_v18 = vadd.f32 %v1318_v38, %v1187_v54  ;;  %v1239_v19 = vsub.f32 0.5, %v4326_v21  ;;  %v4333_v54 = vld [vmem:[#allocation45_spill] sm:$0xff]  ;;  %v4338_v28 = vld [vmem:[#allocation27_spill] sm:$0xff]  ;;  %v4342_v40 = vld [vmem:[#allocation8_spill] sm:$0xff] }
  0xe5   : > { %v1255_v37 = vmul.f32 %v1223_v7, %v1223_v7  ;;  %v1269_v62 = vmul.f32 %v1253_v33, %v1237_v41  ;;  %v1337_v58 = vadd.f32 %v1336_v49, %v1267_v6  ;;  %v1211_v47 = vsub.f32 2.0, %v4327_v60  ;;  %v4339_v7 = vld [vmem:[#allocation43_spill] sm:$0xff]  ;;  %v4346_v17 = vld [vmem:[#allocation44_spill] sm:$0xff]  ;;  %v4348_v21 = vld [vmem:[#allocation18_spill] sm:$0xff] }
  0xe6   : > { %v1284_v43 = vadd.f32 %v4328_v14, %v1283_v23  ;;  %v1302_v35 = vadd.f32 %v4329_v48, %v1301_v4  ;;  %v1320_v55 = vadd.f32 %v1319_v18, %v1188_v59  ;;  %v1212_v10 = vsub.f32 2.0, %v4330_v30  ;;  %v4341_v33 = vld [vmem:[#allocation39_spill] sm:$0xff]  ;;  %v4345_v23 = vld [vmem:[#allocation12_spill] sm:$0xff]  ;;  %v4347_v4 = vld [vmem:[#allocation38_spill] sm:$0xff] }
  0xe7   : > { %v1213_v42 = vsub.f32 2.0, %v4331_v53  ;;  %v1270_v12 = vmul.f32 %v1254_v44, %v1238_v15  ;;  %v1338_v46 = vadd.f32 %v1337_v58, %v1268_v25  ;;  %vm1117_vm14 = vcmp.eq.f32.partialorder %v4332_v11, -1.0  ;;  %v4350_v58 = vld [vmem:[#allocation2_spill] sm:$0xff]  ;;  %v4352_v14 = vld [vmem:[#allocation29_spill] sm:$0xff]  ;;  %v4361_v11 = vld [vmem:[#allocation52_spill] sm:$0xff] }
  0xe8   : > { %vm1118_vm15 = vcmp.eq.f32.partialorder %v4333_v54, -1.0  ;;  %v1225_v13 = vmax.f32 %v1209_v20, 0.0  ;;  %v1285_v3 = vadd.f32 %v4334_v51, %v1284_v43  ;;  %v1303_v5 = vadd.f32 %v4335_v57, %v1302_v35  ;;  %v4340_v20 = vld [vmem:[#allocation28_spill] sm:$0xff]  ;;  %v4351_v60 = vld [vmem:[#allocation46_spill] sm:$0xff]  ;;  %v4354_v51 = vld [vmem:[#allocation23_spill] sm:$0xff] }
  0xe9   : > { %v1321_v63 = vadd.f32 %v1320_v55, %v1189_v39  ;;  %v1240_v22 = vsub.f32 0.5, %v4336_v26  ;;  %v1256_v24 = vmul.f32 %v1224_v31, %v1224_v31  ;;  %v1271_v59 = vmul.f32 %v1255_v37, %v1239_v19  ;;  %v4344_v31 = vld [vmem:[#allocation47_spill] sm:$0xff]  ;;  %v4349_v37 = vld [vmem:[#allocation37_spill] sm:$0xff]  ;;  %v4364_v54 = vld [vmem:[#allocation34_spill] sm:$0xff] }
  0xea   : > { %v1339_v52 = vadd.f32 %v1338_v46, %v1269_v62  ;;  %v1214_v29 = vsub.f32 2.0, %v3422_v45  ;;  %v1286_v1 = vadd.f32 %v4337_v50, %v1285_v3  ;;  %v1304_v2 = vadd.f32 %v4338_v28, %v1303_v5  ;;  %v4343_v45 = vld [vmem:[#allocation26_spill] sm:$0xff]  ;;  %v4356_v26 = vld [vmem:[#allocation13_spill] sm:$0xff]  ;;  %v4360_v28 = vld [vmem:[#allocation19_spill] sm:$0xff] }
  0xeb   : > { %v1322_v8 = vadd.f32 %v1321_v63, %v3453_v32  ;;  %v1192_v61 = vmul.f32 %v4340_v20, %v4339_v7  ;;  %v1226_v27 = vmax.f32 %v1210_v36, 0.0  ;;  %v1227_v56 = vmax.f32 %v1211_v47, 0.0  ;;  %v4353_v46 = vld [vmem:[#allocation10_spill] sm:$0xff]  ;;  %v4363_v7 = vld [vmem:[#allocation53_spill] sm:$0xff] }
  0xec   : > { %v1340_v41 = vadd.f32 %v1339_v52, %v1270_v12  ;;  %v1228_v39 = vmax.f32 %v1212_v10, 0.0  ;;  %v1287_v6 = vadd.f32 %v4341_v33, %v1286_v1  ;;  %v1305_v9 = vadd.f32 %v4342_v40, %v1304_v2  ;;  %v4359_v52 = vld [vmem:[#allocation51_spill] sm:$0xff]  ;;  %v2001_v50 = vld [vmem:[%s2167_s20 + $0x180] sm:$0xff] }
  0xed   : > { %v1323_v16 = vadd.f32 %v1322_v8, %v3457_v34  ;;  %v1241_v38 = vsub.f32 0.5, %v4343_v45  ;;  %v1257_v15 = vmul.f32 %v1225_v13, %v1225_v13  ;;  %v1272_v44 = vmul.f32 %v1256_v24, %v1240_v22  ;;  %v4357_v22 = vld [vmem:[#allocation50_spill] sm:$0xff]  ;;  %v2002_v1 = vld [vmem:[%s2167_s20 + $0x188] sm:$0xff] }
  0xee   : > { %v1341_v25 = vadd.f32 %v1340_v41, %v1271_v59  ;;  %v1229_v49 = vmax.f32 %v1213_v42, 0.0  ;;  %v1230_v32 = vmax.f32 %v1214_v29, 0.0  ;;  %v1288_v0 = vadd.f32 %v4344_v31, %v1287_v6  ;;  %v4358_v59 = vld [vmem:[#allocation24_spill] sm:$0xff]  ;;  %v4362_v8 = vld [vmem:[#allocation30_spill] sm:$0xff]  ;;  %v2006_v45 = vld [vmem:[%s2167_s20 + $0x1a8] sm:$0xff] }
  0xef   : > { %v1306_v36 = vadd.f32 %v4345_v23, %v1305_v9  ;;  %v1193_v18 = vmul.f32 %v4347_v4, %v4346_v17  ;;  %v1242_v19 = vsub.f32 0.5, %v4348_v21  ;;  %v1243_v62 = vsub.f32 0.5, %v4349_v37  ;;  %v2003_v41 = vld [vmem:[%s2167_s20 + $0x190] sm:$0xff]  ;;  %v2005_v33 = vld [vmem:[%s2167_s20 + $0x1a0] sm:$0xff]  ;;  %v4367_v31 = vld [vmem:[#allocation41_spill] sm:$0xff] }
  0xf0   : > { %v1244_v34 = vsub.f32 0.5, %v4350_v58  ;;  %v1245_v47 = vsub.f32 0.5, %v4351_v60  ;;  %v1246_v43 = vsub.f32 0.5, %v4352_v14  ;;  %v1258_v48 = vmul.f32 %v1226_v27, %v1226_v27  ;;  %v2009_v23 = vld [vmem:[%s2167_s20 + $0x1c0] sm:$0xff]  ;;  %v2011_v17 = vld [vmem:[%s2167_s20 + $0x1d0] sm:$0xff]  ;;  %v2012_v4 = vld [vmem:[%s2167_s20 + $0x1d8] sm:$0xff] }
  0xf1   : > { %v1324_v35 = vadd.f32 %v1323_v16, %v1192_v61  ;;  %v1259_v55 = vmul.f32 %v1227_v56, %v1227_v56  ;;  %v1260_v30 = vmul.f32 %v1228_v39, %v1228_v39  ;;  %v1273_v10 = vmul.f32 %v1257_v15, %v1241_v38  ;;  %v4365_v61 = vld [vmem:[#allocation54_spill] sm:$0xff]  ;;  %v2004_v39 = vld [vmem:[%s2167_s20 + $0x198] sm:$0xff]  ;;  %v2007_v38 = vld [vmem:[%s2167_s20 + $0x1b0] sm:$0xff] }
  0xf2   : > { %v1342_v53 = vadd.f32 %v1341_v25, %v1272_v44  ;;  %v1261_v42 = vmul.f32 %v1229_v49, %v1229_v49  ;;  %v1262_v12 = vmul.f32 %v1230_v32, %v1230_v32  ;;  %v1289_v13 = vadd.f32 %v4353_v46, %v1288_v0  ;;  %v2008_v15 = vld [vmem:[%s2167_s20 + $0x1b8] sm:$0xff]  ;;  %v2015_v37 = vld [vmem:[%s2167_s20 + $0x1f0] sm:$0xff] }
  0xf3   : > { %v1307_v3 = vadd.f32 %v4354_v51, %v1306_v36  ;;  %v4355_v57 = vmov 0.0   ;;  %v1194_v24 = vmul.f32 %v4357_v22, %v4356_v26  ;;  %v1195_v29 = vmul.f32 %v4359_v52, %v4358_v59  ;;  %v4366_v49 = vld [vmem:[#allocation21_spill] sm:$0xff]  ;;  %v2010_v36 = vld [vmem:[%s2167_s20 + $0x1c8] sm:$0xff] }
  0xf4   : > { %v3512_v5 = vsel %vm1117_vm14, 1.0, %v4355_v57  ;;  %v3517_v63 = vsel %vm1118_vm15, 1.0, %v4355_v57  ;;  %v1196_v2 = vmul.f32 %v4361_v11, %v4360_v28  ;;  %v3529_v20 = vmul.f32 %v4363_v7, %v4362_v8 }
  0xf5   : > { %v3533_v27 = vmul.f32 %v4365_v61, %v4364_v54  ;;  %v1325_v56 = vadd.f32 %v1324_v35, %v1193_v18  ;;  %v1274_v6 = vmul.f32 %v1258_v48, %v1242_v19  ;;  %v1275_v40 = vmul.f32 %v1259_v55, %v1243_v62  ;;  %v2013_v18 = vld [vmem:[%s2167_s20 + $0x1e0] sm:$0xff]  ;;  %v2014_v19 = vld [vmem:[%s2167_s20 + $0x1e8] sm:$0xff]  ;;  %v2016_v62 = vld [vmem:[%s2167_s20 + $0x1f8] sm:$0xff] }
  0xf6   : > { %v1276_v9 = vmul.f32 %v1260_v30, %v1244_v34  ;;  %v1343_v16 = vadd.f32 %v1342_v53, %v1273_v10  ;;  %v3541_v44 = vmul.f32 %v1261_v42, %v1245_v47  ;;  %v3543_v25 = vmul.f32 %v1262_v12, %v1246_v43  ;;  %v4368_v34 = vld [vmem:[#allocation4_spill] sm:$0xff]  ;;  %v4369_v47 = vld [vmem:[#allocation49_spill] sm:$0xff]  ;;  %v4370_v12 = vld [vmem:[#allocation11_spill] sm:$0xff] }
  0xf7   : > { %v1290_v32 = vadd.f32 %v4366_v49, %v1289_v13  ;;  %v1308_v0 = vadd.f32 %v4367_v31, %v1307_v3  ;;  %vm1385_vm0 = vcmp.eq.f32.partialorder %v2001_v50, 255.0  ;;  %vm1386_vm1 = vcmp.eq.f32.partialorder %v2002_v1, 255.0  ;;  %v4371_v13 = vld [vmem:[#allocation42_spill] sm:$0xff] }
  0xf8   : > { %vm1387_vm2 = vcmp.eq.f32.partialorder %v2003_v41, 255.0  ;;  %vm1388_vm3 = vcmp.eq.f32.partialorder %v2004_v39, 255.0  ;;  %v1326_v21 = vadd.f32 %v1325_v56, %v1194_v24  ;;  %vm1389_vm4 = vcmp.eq.f32.partialorder %v2005_v33, 255.0 }
  0xf9   : > { %vm1390_vm5 = vcmp.eq.f32.partialorder %v2006_v45, 255.0  ;;  %vm1391_vm6 = vcmp.eq.f32.partialorder %v2007_v38, 255.0  ;;  %v1344_v58 = vadd.f32 %v1343_v16, %v1274_v6  ;;  %vm1392_vm7 = vcmp.eq.f32.partialorder %v2008_v15, 255.0 }
  0xfa   : > { %vm1393_vm8 = vcmp.eq.f32.partialorder %v2009_v23, 255.0  ;;  %vm1394_vm9 = vcmp.eq.f32.partialorder %v2010_v36, 255.0  ;;  %v1291_v60 = vadd.f32 %v4368_v34, %v1290_v32  ;;  %v1309_v14 = vadd.f32 %v4369_v47, %v1308_v0 }
  0xfb   : > { %vm1395_vm10 = vcmp.eq.f32.partialorder %v2011_v17, 255.0  ;;  %vm1396_vm11 = vcmp.eq.f32.partialorder %v2012_v4, 255.0  ;;  %vm1397_vm12 = vcmp.eq.f32.partialorder %v2013_v18, 255.0  ;;  %vm1398_vm13 = vcmp.eq.f32.partialorder %v2014_v19, 255.0 }
  0xfc   : > { %vm1399_vm14 = vcmp.eq.f32.partialorder %v2015_v37, 255.0  ;;  %vm1400_vm15 = vcmp.eq.f32.partialorder %v2016_v62, 255.0  ;;  %v1327_v43 = vadd.f32 %v1326_v21, %v1195_v29  ;;  %v3558_v48 = vsel %vm1385_vm0, 1.0, %v2001_v50 }
  0xfd   : > { %v3561_v35 = vsel %vm1386_vm1, 1.0, %v2002_v1  ;;  %v3564_v55 = vsel %vm1387_vm2, 1.0, %v2003_v41  ;;  %v1345_v30 = vadd.f32 %v1344_v58, %v1275_v40  ;;  %v3567_v10 = vsel %vm1388_vm3, 1.0, %v2004_v39 }
  0xfe   : > { %v3570_v53 = vsel %vm1389_vm4, 1.0, %v2005_v33  ;;  %v3573_v42 = vsel %vm1390_vm5, 1.0, %v2006_v45  ;;  %v1292_v46 = vadd.f32 %v4370_v12, %v1291_v60  ;;  %v1310_v51 = vadd.f32 %v4371_v13, %v1309_v14 }
  0xff   : > { %v3578_v3 = vsel %vm1391_vm6, 1.0, %v2007_v38  ;;  %v3581_v26 = vsel %vm1392_vm7, 1.0, %v2008_v15  ;;  %v3584_v22 = vsel %vm1393_vm8, 1.0, %v2009_v23  ;;  %v3587_v24 = vsel %vm1394_vm9, 1.0, %v2010_v36 }
 0x100   : > { %v3590_v59 = vsel %vm1395_vm10, 1.0, %v2011_v17  ;;  %v3593_v52 = vsel %vm1396_vm11, 1.0, %v2012_v4  ;;  %v1328_v29 = vadd.f32 %v1327_v43, %v1196_v2  ;;  %v3596_v50 = vsel %vm1397_vm12, 1.0, %v2013_v18  ;;  %v4374_v2 = vld [vmem:[#allocation22_spill] sm:$0xff]  ;;  %v4389_v4 = vld [vmem:[#allocation20_spill] sm:$0xff] }
 0x101   : > { %v3599_v1 = vsel %vm1398_vm13, 1.0, %v2014_v19  ;;  %v3602_v28 = vsel %vm1399_vm14, 1.0, %v2015_v37  ;;  %v1346_v11 = vadd.f32 %v1345_v30, %v1276_v9  ;;  %v3605_v8 = vsel %vm1400_vm15, 1.0, %v2016_v62 }
 0x102   : > { %4372 = vst [vmem:[#allocation7_spill] sm:$0xff] %v3602_v28  ;;  %4373 = vst [vmem:[#allocation48_spill] sm:$0xff] %v3605_v8  ;;  %v3608_v7 = vmul.f32 0.5, %v3558_v48  ;;  %v3611_v54 = vmul.f32 0.5, %v3561_v35  ;;  %v1293_v61 = vadd.f32 %v4374_v2, %v1292_v46  ;;  %v1311_v56 = vadd.f32 %v3512_v5, %v1310_v51 }
 0x103   : > { %v3616_v41 = vmul.f32 0.5, %v3564_v55  ;;  %v3619_v39 = vmul.f32 0.5, %v3567_v10  ;;  %v3622_v33 = vmul.f32 0.5, %v3570_v53  ;;  %v3625_v6 = vmul.f32 0.5, %v3573_v42 }
 0x104   : > { %v3628_v40 = vmul.f32 0.5, %v3578_v3  ;;  %v3631_v9 = vmul.f32 0.5, %v3581_v26  ;;  %v1329_v5 = vadd.f32 %v1328_v29, %v3529_v20  ;;  %v3635_v16 = vmul.f32 0.5, %v3584_v22  ;;  %v4384_v20 = vld [vmem:[#allocation40_spill] sm:$0xff] }
 0x105   : > { %4375 = vst [vmem:[#allocation9_spill] sm:$0xff] %v3625_v6  ;;  %v3638_v45 = vmul.f32 0.5, %v3587_v24  ;;  %v3641_v38 = vmul.f32 0.5, %v3590_v59  ;;  %v1347_v15 = vadd.f32 %v1346_v11, %v3541_v44  ;;  %v3645_v49 = vmul.f32 0.5, %v3593_v52 }
 0x106   : > { %4376 = vst [vmem:[#allocation35_spill] sm:$0xff] %v3628_v40  ;;  %4377 = vst [vmem:[#allocation33_spill] sm:$0xff] %v3631_v9  ;;  %v3648_v32 = vmul.f32 0.5, %v3596_v50  ;;  %v3651_v31 = vmul.f32 0.5, %v3599_v1  ;;  %v1294_v0 = vadd.f32 %v4384_v20, %v1293_v61  ;;  %v1312_v23 = vadd.f32 %v3517_v63, %v1311_v56  ;;  %v2017_v20 = vld [vmem:[%s2162_s17 + $0x180] sm:$0xff] }
 0x107   : > { %4378 = vst [vmem:[#allocation5_spill] sm:$0xff] %v3635_v16  ;;  %4379 = vst [vmem:[#allocation17_spill] sm:$0xff] %v3638_v45  ;;  %v3656_v36 = vmul.f32 0.5, %v3602_v28  ;;  %v3659_v17 = vmul.f32 0.5, %v3605_v8  ;;  %vm1433_vm0 = vcmp.eq.f32.partialorder %v3558_v48, 1.0  ;;  %vm1434_vm1 = vcmp.eq.f32.partialorder %v3561_v35, 1.0 }
 0x108   : > { %4380 = vst [vmem:[#allocation32_spill] sm:$0xff] %v3641_v38  ;;  %4381 = vst [vmem:[#allocation15_spill] sm:$0xff] %v3645_v49  ;;  %vm1435_vm2 = vcmp.eq.f32.partialorder %v3564_v55, 1.0  ;;  %vm1436_vm3 = vcmp.eq.f32.partialorder %v3567_v10, 1.0  ;;  %v3666_v44 = vadd.f32 %v1329_v5, %v3533_v27  ;;  %vm1437_vm4 = vcmp.eq.f32.partialorder %v3570_v53, 1.0  ;;  %v4391_v27 = vld [vmem:[#allocation6_spill] sm:$0xff] }
 0x109   : > { %4382 = vst [vmem:[#allocation45_spill] sm:$0xff] %v3648_v32  ;;  %4383 = vst [vmem:[#allocation31_spill] sm:$0xff] %v3651_v31  ;;  %vm1438_vm5 = vcmp.eq.f32.partialorder %v3573_v42, 1.0  ;;  %vm1439_vm6 = vcmp.eq.f32.partialorder %v3578_v3, 1.0  ;;  %v3672_v63 = vadd.f32 %v1347_v15, %v3543_v25  ;;  %vm1440_vm7 = vcmp.eq.f32.partialorder %v3581_v26, 1.0 }
 0x10a   : > { %4385 = vst [vmem:[#allocation16_spill] sm:$0xff] %v3656_v36  ;;  %4386 = vst [vmem:[#allocation36_spill] sm:$0xff] %v3659_v17  ;;  %vm1441_vm8 = vcmp.eq.f32.partialorder %v3584_v22, 1.0  ;;  %vm1442_vm9 = vcmp.eq.f32.partialorder %v3587_v24, 1.0  ;;  %v3678_v18 = vadd.f32 %v1294_v0, %v4389_v4  ;;  %v3681_v21 = vadd.f32 %v1312_v23, %v4391_v27  ;;  %v2018_v0 = vld [vmem:[%s2162_s17 + $0x188] sm:$0xff] }
 0x10b   : > { %4387 = vst [vmem:[#allocation3_spill] sm:$0xff] %v3666_v44  ;;  %4388 = vst [vmem:[#allocation27_spill] sm:$0xff] %v3672_v63  ;;  %vm1443_vm10 = vcmp.eq.f32.partialorder %v3590_v59, 1.0  ;;  %vm1444_vm11 = vcmp.eq.f32.partialorder %v3593_v52, 1.0  ;;  %vm1445_vm12 = vcmp.eq.f32.partialorder %v3596_v50, 1.0  ;;  %vm1446_vm13 = vcmp.eq.f32.partialorder %v3599_v1, 1.0 }
 0x10c   : > { %4390 = vst [vmem:[#allocation43_spill] sm:$0xff] %v3678_v18  ;;  %4392 = vst [vmem:[#allocation28_spill] sm:$0xff] %v3681_v21  ;;  %v3690_v25 = vsel %vm1433_vm0, 1.0, %v4355_v57  ;;  %v3695_v19 = vsel %vm1434_vm1, 1.0, %v4355_v57  ;;  %v3700_v37 = vsel %vm1435_vm2, 1.0, %v4355_v57  ;;  %v3705_v62 = vsel %vm1436_vm3, 1.0, %v4355_v57 }
 0x10d   : > { %4393 = vst [vmem:[#allocation39_spill] sm:$0xff] %v3700_v37  ;;  %4394 = vst [vmem:[#allocation8_spill] sm:$0xff] %v3705_v62  ;;  %v3710_v58 = vsel %vm1437_vm4, 1.0, %v4355_v57  ;;  %v3715_v34 = vsel %vm1438_vm5, 1.0, %v4355_v57  ;;  %v3720_v60 = vsel %vm1439_vm6, 1.0, %v4355_v57  ;;  %v3725_v47 = vsel %vm1440_vm7, 1.0, %v4355_v57 }
 0x10e   : > { %4395 = vst [vmem:[#allocation26_spill] sm:$0xff] %v3710_v58  ;;  %4396 = vst [vmem:[#allocation47_spill] sm:$0xff] %v3715_v34  ;;  %v3730_v14 = vsel %vm1441_vm8, 1.0, %v4355_v57  ;;  %v3735_v43 = vsel %vm1442_vm9, 1.0, %v4355_v57  ;;  %v3738_v30 = vsel %vm1443_vm10, 1.0, %v4355_v57  ;;  %v3741_v12 = vsel %vm1444_vm11, 1.0, %v4355_v57 }
 0x10f   : > { %4397 = vst [vmem:[#allocation12_spill] sm:$0xff] %v3720_v60  ;;  %4398 = vst [vmem:[#allocation44_spill] sm:$0xff] %v3725_v47  ;;  %v3744_v46 = vsel %vm1445_vm12, 1.0, %v4355_v57  ;;  %v3747_v13 = vsel %vm1446_vm13, 1.0, %v4355_v57  ;;  %vm1481_vm14 = vcmp.eq.f32.partialorder %v3558_v48, -1.0  ;;  %vm1482_vm15 = vcmp.eq.f32.partialorder %v3561_v35, -1.0 }
 0x110   : > { %4399 = vst [vmem:[#allocation38_spill] sm:$0xff] %v3730_v14  ;;  %4400 = vst [vmem:[#allocation18_spill] sm:$0xff] %v3735_v43  ;;  %vm1483_vm0 = vcmp.eq.f32.partialorder %v3564_v55, -1.0  ;;  %vm1484_vm1 = vcmp.eq.f32.partialorder %v3567_v10, -1.0  ;;  %vm1485_vm2 = vcmp.eq.f32.partialorder %v3570_v53, -1.0  ;;  %vm1486_vm3 = vcmp.eq.f32.partialorder %v3573_v42, -1.0 }
 0x111   : > { %4401 = vst [vmem:[#allocation37_spill] sm:$0xff] %v3738_v30  ;;  %4402 = vst [vmem:[#allocation2_spill] sm:$0xff] %v3741_v12  ;;  %vm1487_vm4 = vcmp.eq.f32.partialorder %v3578_v3, -1.0  ;;  %vm1488_vm5 = vcmp.eq.f32.partialorder %v3581_v26, -1.0  ;;  %vm1489_vm6 = vcmp.eq.f32.partialorder %v3584_v22, -1.0  ;;  %vm1490_vm7 = vcmp.eq.f32.partialorder %v3587_v24, -1.0 }
 0x112   : > { %4403 = vst [vmem:[#allocation46_spill] sm:$0xff] %v3744_v46  ;;  %4404 = vst [vmem:[#allocation29_spill] sm:$0xff] %v3747_v13  ;;  %vm1491_vm8 = vcmp.eq.f32.partialorder %v3590_v59, -1.0  ;;  %vm1492_vm9 = vcmp.eq.f32.partialorder %v3593_v52, -1.0  ;;  %vm1493_vm10 = vcmp.eq.f32.partialorder %v3596_v50, -1.0  ;;  %vm1494_vm11 = vcmp.eq.f32.partialorder %v3599_v1, -1.0 }
 0x113   : > { %v3764_v48 = vsel %vm1481_vm14, 1.0, %v4355_v57  ;;  %v3767_v35 = vsel %vm1482_vm15, 1.0, %v4355_v57  ;;  %v3770_v55 = vsel %vm1483_vm0, 1.0, %v4355_v57  ;;  %v3773_v10 = vsel %vm1484_vm1, 1.0, %v4355_v57  ;;  %v2019_v18 = vld [vmem:[%s2162_s17 + $0x190] sm:$0xff]  ;;  %v2020_v63 = vld [vmem:[%s2162_s17 + $0x198] sm:$0xff] }
 0x114   : > { %4405 = vst [vmem:[#allocation10_spill] sm:$0xff] %v3770_v55  ;;  %4406 = vst [vmem:[#allocation23_spill] sm:$0xff] %v3773_v10  ;;  %v3776_v53 = vsel %vm1485_vm2, 1.0, %v4355_v57  ;;  %v3779_v42 = vsel %vm1486_vm3, 1.0, %v4355_v57  ;;  %v3782_v51 = vsel %vm1487_vm4, 1.0, %v4355_v57  ;;  %v3785_v3 = vsel %vm1488_vm5, 1.0, %v4355_v57 }
 0x115   : > { %4407 = vst [vmem:[#allocation13_spill] sm:$0xff] %v3776_v53  ;;  %4408 = vst [vmem:[#allocation50_spill] sm:$0xff] %v3779_v42  ;;  %v3788_v26 = vsel %vm1489_vm6, 1.0, %v4355_v57  ;;  %v3791_v22 = vsel %vm1490_vm7, 1.0, %v4355_v57  ;;  %v3794_v24 = vsel %vm1491_vm8, 1.0, %v4355_v57  ;;  %v3797_v59 = vsel %vm1492_vm9, 1.0, %v4355_v57 }
 0x116   : > { %4409 = vst [vmem:[#allocation24_spill] sm:$0xff] %v3782_v51  ;;  %4410 = vst [vmem:[#allocation51_spill] sm:$0xff] %v3785_v3  ;;  %v3800_v52 = vsel %vm1493_vm10, 1.0, %v4355_v57  ;;  %v3803_v29 = vsel %vm1494_vm11, 1.0, %v4355_v57  ;;  %v1529_v50 = vadd.f32 0.5, %v3608_v7  ;;  %v1530_v1 = vadd.f32 0.5, %v3611_v54 }
 0x117   : > { %4411 = vst [vmem:[#allocation19_spill] sm:$0xff] %v3788_v26  ;;  %4412 = vst [vmem:[#allocation52_spill] sm:$0xff] %v3791_v22  ;;  %v1531_v11 = vadd.f32 0.5, %v3616_v41  ;;  %v1532_v2 = vadd.f32 0.5, %v3619_v39  ;;  %v1533_v61 = vadd.f32 0.5, %v3622_v33  ;;  %v1534_v56 = vadd.f32 0.5, %v3625_v6 }
 0x118   : > { %4413 = vst [vmem:[#allocation30_spill] sm:$0xff] %v3794_v24  ;;  %4414 = vst [vmem:[#allocation53_spill] sm:$0xff] %v3797_v59  ;;  %v1535_v5 = vadd.f32 0.5, %v3628_v40  ;;  %v1536_v15 = vadd.f32 0.5, %v3631_v9  ;;  %v1537_v23 = vadd.f32 0.5, %v3635_v16  ;;  %v1538_v4 = vadd.f32 0.5, %v3638_v45 }
 0x119   : > { %4415 = vst [vmem:[#allocation34_spill] sm:$0xff] %v3800_v52  ;;  %4416 = vst [vmem:[#allocation54_spill] sm:$0xff] %v3803_v29  ;;  %v1539_v27 = vadd.f32 0.5, %v3641_v38  ;;  %v1540_v21 = vadd.f32 0.5, %v3645_v49  ;;  %v3822_v44 = vadd.f32 0.5, %v3648_v32  ;;  %v3825_v29 = vadd.f32 0.5, %v3651_v31 }
 0x11a   : > { %v3828_v13 = vadd.f32 0.5, %v3656_v36  ;;  %v3831_v57 = vadd.f32 0.5, %v3659_v17  ;;  %v2021_v52 = vld [vmem:[%s2162_s17 + $0x1a0] sm:$0xff]  ;;  %v2022_v46 = vld [vmem:[%s2162_s17 + $0x1a8] sm:$0xff]  ;;  %v3836_v59 = vld [vmem:[%s2162_s17 + $0x1b0] sm:$0xff]  ;;  %v1545_v12 = vmul.f32 %v2017_v20, %v2017_v20  ;;  %v1546_v24 = vmul.f32 %v2018_v0, %v2018_v0 }
 0x11b   : > { %4417 = vst [vmem:[#allocation21_spill] sm:$0xff] %v3822_v44  ;;  %4418 = vst [vmem:[#allocation41_spill] sm:$0xff] %v3825_v29  ;;  %v1547_v30 = vmul.f32 %v2019_v18, %v2019_v18  ;;  %v1548_v44 = vmul.f32 %v2020_v63, %v2020_v63  ;;  %v3839_v29 = vld [vmem:[%s2162_s17 + $0x1b8] sm:$0xff]  ;;  %v3845_v36 = vld [vmem:[%s2162_s17 + $0x1c8] sm:$0xff]  ;;  %v1550_v17 = vmul.f32 %v2022_v46, %v2022_v46  ;;  %v1577_v31 = vsub.f32 2.0, %v2017_v20 }
 0x11c   : > { %4419 = vst [vmem:[#allocation4_spill] sm:$0xff] %v3828_v13  ;;  %4420 = vst [vmem:[#allocation49_spill] sm:$0xff] %v3831_v57  ;;  %v3842_v13 = vld [vmem:[%s2162_s17 + $0x1c0] sm:$0xff]  ;;  %v1549_v57 = vmul.f32 %v2021_v52, %v2021_v52  ;;  %v1578_v22 = vsub.f32 2.0, %v2018_v0  ;;  %v3848_v43 = vld [vmem:[%s2162_s17 + $0x1d0] sm:$0xff]  ;;  %v1551_v14 = vmul.f32 %v3836_v59, %v3836_v59  ;;  %v1552_v8 = vmul.f32 %v3839_v29, %v3839_v29 }
 0x11d   : > { %v3851_v32 = vld [vmem:[%s2162_s17 + $0x1d8] sm:$0xff]  ;;  %v3854_v26 = vld [vmem:[%s2162_s17 + $0x1e0] sm:$0xff]  ;;  %v1553_v49 = vmul.f32 %v3842_v13, %v3842_v13  ;;  %v1554_v3 = vmul.f32 %v3845_v36, %v3845_v36  ;;  %v3865_v20 = vld [vmem:[%s2162_s17 + $0x1e8] sm:$0xff]  ;;  %v1555_v28 = vmul.f32 %v3848_v43, %v3848_v43  ;;  %v1579_v60 = vsub.f32 2.0, %v2019_v18 }
 0x11e   : > { %v3868_v0 = vld [vmem:[%s2162_s17 + $0x1f0] sm:$0xff]  ;;  %v3871_v47 = vld [vmem:[%s2162_s17 + $0x1f8] sm:$0xff]  ;;  %v1556_v38 = vmul.f32 %v3851_v32, %v3851_v32  ;;  %v3879_v51 = vmul.f32 %v3854_v26, %v3854_v26  ;;  %v3883_v45 = vmul.f32 %v3865_v20, %v3865_v20  ;;  %v1580_v16 = vsub.f32 2.0, %v2020_v63 }
 0x11f   : > { %v3887_v42 = vmul.f32 %v3868_v0, %v3868_v0  ;;  %v3891_v34 = vmul.f32 %v3871_v47, %v3871_v47  ;;  %v1561_v53 = vmul.f32 %v1545_v12, %v1529_v50  ;;  %v1562_v58 = vmul.f32 %v1546_v24, %v1530_v1 }
 0x120   : > { %4421 = vst [vmem:[#allocation11_spill] sm:$0xff] %v3879_v51  ;;  %4422 = vst [vmem:[#allocation42_spill] sm:$0xff] %v3883_v45  ;;  %v1593_v9 = vmax.f32 %v1577_v31, 0.0  ;;  %v1594_v10 = vmax.f32 %v1578_v22, 0.0  ;;  %v1563_v62 = vmul.f32 %v1547_v30, %v1531_v11  ;;  %v1564_v51 = vmul.f32 %v1548_v44, %v1532_v2 }
 0x121   : > { %4423 = vst [vmem:[#allocation22_spill] sm:$0xff] %v3887_v42  ;;  %4424 = vst [vmem:[#allocation40_spill] sm:$0xff] %v3891_v34  ;;  %v3893_v18 = vmul.f32 %v1549_v57, %v1533_v61  ;;  %v3895_v40 = vmul.f32 %v1550_v17, %v1534_v56  ;;  %v3897_v45 = vmul.f32 %v1551_v14, %v1535_v5  ;;  %v1581_v42 = vsub.f32 2.0, %v2021_v52  ;;  %v4426_v56 = vld [vmem:[#allocation39_spill] sm:$0xff] }
 0x122   : > { %v3899_v55 = vmul.f32 %v1552_v8, %v1536_v15  ;;  %v1595_v37 = vmax.f32 %v1579_v60, 0.0  ;;  %v3901_v6 = vmul.f32 %v1553_v49, %v1537_v23  ;;  %v3903_v34 = vmul.f32 %v1554_v3, %v1538_v4  ;;  %v4427_v15 = vld [vmem:[#allocation10_spill] sm:$0xff]  ;;  %v4428_v4 = vld [vmem:[#allocation35_spill] sm:$0xff] }
 0x123   : > { %v1582_v63 = vsub.f32 2.0, %v2022_v46  ;;  %v1596_v12 = vmax.f32 %v1580_v16, 0.0  ;;  %v1609_v31 = vsub.f32 0.5, %v3608_v7  ;;  %v1610_v44 = vsub.f32 0.5, %v3611_v54 }
 0x124   : > { %v1625_v57 = vmul.f32 %v1593_v9, %v1593_v9  ;;  %v1626_v30 = vmul.f32 %v1594_v10, %v1594_v10  ;;  %v3907_v17 = vmul.f32 %v1555_v28, %v1539_v27  ;;  %v3909_v14 = vmul.f32 %v1556_v38, %v1540_v21 }
 0x125   : > { %v1583_v8 = vsub.f32 2.0, %v3836_v59  ;;  %v1584_v60 = vsub.f32 2.0, %v3839_v29  ;;  %v1585_v49 = vsub.f32 2.0, %v3842_v13  ;;  %v1597_v3 = vmax.f32 %v1581_v42, 0.0 }
 0x126   : > { %v1611_v46 = vsub.f32 0.5, %v3616_v41  ;;  %v1627_v16 = vmul.f32 %v1595_v37, %v1595_v37  ;;  %v1586_v7 = vsub.f32 2.0, %v3845_v36  ;;  %v1587_v54 = vsub.f32 2.0, %v3848_v43 }
 0x127   : > { %v1588_v9 = vsub.f32 2.0, %v3851_v32  ;;  %v1598_v28 = vmax.f32 %v1582_v63, 0.0  ;;  %v1612_v38 = vsub.f32 0.5, %v3619_v39  ;;  %v1628_v21 = vmul.f32 %v1596_v12, %v1596_v12  ;;  %v4429_v12 = vld [vmem:[#allocation8_spill] sm:$0xff] }
 0x128   : > { %v1641_v10 = vmul.f32 %v1625_v57, %v1609_v31  ;;  %v1642_v22 = vmul.f32 %v1626_v30, %v1610_v44  ;;  %v1589_v24 = vsub.f32 2.0, %v3854_v26  ;;  %v1590_v13 = vsub.f32 2.0, %v3865_v20  ;;  %v4425_v26 = vld [vmem:[#allocation9_spill] sm:$0xff] }
 0x129   : > { %v1591_v42 = vsub.f32 2.0, %v3868_v0  ;;  %v1592_v41 = vsub.f32 2.0, %v3871_v47  ;;  %v1599_v37 = vmax.f32 %v1583_v8, 0.0  ;;  %v1613_v36 = vsub.f32 0.5, %v3622_v33  ;;  %v4431_v31 = vld [vmem:[#allocation33_spill] sm:$0xff] }
 0x12a   : > { %v1629_v43 = vmul.f32 %v1597_v3, %v1597_v3  ;;  %v1643_v59 = vmul.f32 %v1627_v16, %v1611_v46  ;;  %v1600_v32 = vmax.f32 %v1584_v60, 0.0  ;;  %v1658_v39 = vadd.f32 %v3695_v19, %v3690_v25 }
 0x12b   : > { %v1676_v52 = vadd.f32 %v3767_v35, %v3764_v48  ;;  %v1694_v29 = vadd.f32 %v1562_v58, %v1561_v53  ;;  %v1614_v50 = vsub.f32 0.5, %v4425_v26  ;;  %v1630_v1 = vmul.f32 %v1598_v28, %v1598_v28  ;;  %v4430_v58 = vld [vmem:[#allocation23_spill] sm:$0xff]  ;;  %v4434_v28 = vld [vmem:[#allocation5_spill] sm:$0xff] }
 0x12c   : > { %v1644_v11 = vmul.f32 %v1628_v21, %v1612_v38  ;;  %v1712_v2 = vadd.f32 %v1642_v22, %v1641_v10  ;;  %v1601_v61 = vmax.f32 %v1585_v49, 0.0  ;;  %v1659_v5 = vadd.f32 %v4426_v56, %v1658_v39  ;;  %v4432_v49 = vld [vmem:[#allocation26_spill] sm:$0xff] }
 0x12d   : > { %v1677_v33 = vadd.f32 %v4427_v15, %v1676_v52  ;;  %v1695_v23 = vadd.f32 %v1694_v29, %v1563_v62  ;;  %v1615_v27 = vsub.f32 0.5, %v4428_v4  ;;  %v1631_v20 = vmul.f32 %v1599_v37, %v1599_v37  ;;  %v4433_v62 = vld [vmem:[#allocation13_spill] sm:$0xff]  ;;  %v4435_v37 = vld [vmem:[#allocation47_spill] sm:$0xff] }
 0x12e   : > { %v1645_v63 = vmul.f32 %v1629_v43, %v1613_v36  ;;  %v1713_v25 = vadd.f32 %v1712_v2, %v1643_v59  ;;  %v1602_v19 = vmax.f32 %v1586_v7, 0.0  ;;  %v1660_v48 = vadd.f32 %v4429_v12, %v1659_v5  ;;  %v4436_v36 = vld [vmem:[#allocation50_spill] sm:$0xff] }
 0x12f   : > { %v1678_v35 = vadd.f32 %v4430_v58, %v1677_v33  ;;  %v1696_v53 = vadd.f32 %v1695_v23, %v1564_v51  ;;  %v1616_v44 = vsub.f32 0.5, %v4431_v31  ;;  %v1632_v57 = vmul.f32 %v1600_v32, %v1600_v32  ;;  %v4437_v32 = vld [vmem:[#allocation17_spill] sm:$0xff]  ;;  %v4441_v33 = vld [vmem:[#allocation7_spill] sm:$0xff]  ;;  %v4442_v23 = vld [vmem:[#allocation44_spill] sm:$0xff] }
 0x130   : > { %v1646_v30 = vmul.f32 %v1630_v1, %v1614_v50  ;;  %v1714_v8 = vadd.f32 %v1713_v25, %v1644_v11  ;;  %v1603_v60 = vmax.f32 %v1587_v54, 0.0  ;;  %v1661_v3 = vadd.f32 %v4432_v49, %v1660_v48  ;;  %v4438_v50 = vld [vmem:[#allocation12_spill] sm:$0xff] }
 0x131   : > { %v1679_v46 = vadd.f32 %v4433_v62, %v1678_v35  ;;  %v1697_v16 = vadd.f32 %v1696_v53, %v3893_v18  ;;  %v1617_v38 = vsub.f32 0.5, %v4434_v28  ;;  %v1633_v7 = vmul.f32 %v1601_v61, %v1601_v61  ;;  %v4439_v1 = vld [vmem:[#allocation24_spill] sm:$0xff]  ;;  %v4446_v35 = vld [vmem:[#allocation38_spill] sm:$0xff]  ;;  %v4447_v53 = vld [vmem:[#allocation19_spill] sm:$0xff] }
 0x132   : > { %v1647_v21 = vmul.f32 %v1631_v20, %v1615_v27  ;;  %v1715_v10 = vadd.f32 %v1714_v8, %v1645_v63  ;;  %v1604_v22 = vmax.f32 %v1588_v9, 0.0  ;;  %v1662_v51 = vadd.f32 %v4435_v37, %v1661_v3  ;;  %v4440_v61 = vld [vmem:[#allocation32_spill] sm:$0xff]  ;;  %v4443_v27 = vld [vmem:[#allocation51_spill] sm:$0xff]  ;;  %v4449_v3 = vld [vmem:[#allocation18_spill] sm:$0xff] }
 0x133   : > { %v1680_v43 = vadd.f32 %v4436_v36, %v1679_v46  ;;  %v1698_v59 = vadd.f32 %v1697_v16, %v3895_v40  ;;  %v1618_v54 = vsub.f32 0.5, %v4437_v32  ;;  %v1634_v39 = vmul.f32 %v1602_v19, %v1602_v19  ;;  %v4444_v63 = vld [vmem:[#allocation15_spill] sm:$0xff]  ;;  %v4445_v48 = vld [vmem:[#allocation48_spill] sm:$0xff]  ;;  %v4454_v37 = vld [vmem:[#allocation37_spill] sm:$0xff] }
 0x134   : > { %v1648_v52 = vmul.f32 %v1632_v57, %v1616_v44  ;;  %v1716_v29 = vadd.f32 %v1715_v10, %v1646_v30  ;;  %v1605_v26 = vmax.f32 %v1589_v24, 0.0  ;;  %v1663_v18 = vadd.f32 %v4438_v50, %v1662_v51  ;;  %v4448_v57 = vld [vmem:[#allocation45_spill] sm:$0xff]  ;;  %v4450_v46 = vld [vmem:[#allocation52_spill] sm:$0xff]  ;;  %v4453_v10 = vld [vmem:[#allocation11_spill] sm:$0xff] }
 0x135   : > { %v1681_v11 = vadd.f32 %v4439_v1, %v1680_v43  ;;  %v1699_v2 = vadd.f32 %v1698_v59, %v3897_v45  ;;  %v1619_v9 = vsub.f32 0.5, %v4440_v61  ;;  %v1635_v56 = vmul.f32 %v1603_v60, %v1603_v60  ;;  %v4455_v36 = vld [vmem:[#allocation30_spill] sm:$0xff] }
 0x136   : > { %v1649_v5 = vmul.f32 %v1633_v7, %v1617_v38  ;;  %v1717_v15 = vadd.f32 %v1716_v29, %v1647_v21  ;;  %vm1447_vm12 = vcmp.eq.f32.partialorder %v4441_v33, 1.0  ;;  %vm1495_vm13 = vcmp.eq.f32.partialorder %v4441_v33, -1.0 }
 0x137   : > { %v1606_v40 = vmax.f32 %v1590_v13, 0.0  ;;  %v1664_v4 = vadd.f32 %v4442_v23, %v1663_v18  ;;  %v1682_v24 = vadd.f32 %v4443_v27, %v1681_v11  ;;  %v1700_v20 = vadd.f32 %v1699_v2, %v3899_v55  ;;  %v4460_v18 = vld [vmem:[#allocation53_spill] sm:$0xff]  ;;  %v4461_v2 = vld [vmem:[#allocation36_spill] sm:$0xff]  ;;  %v4464_v23 = vld [vmem:[#allocation46_spill] sm:$0xff] }
 0x138   : > { %v1620_v25 = vsub.f32 0.5, %v4444_v63  ;;  %v1636_v19 = vmul.f32 %v1604_v22, %v1604_v22  ;;  %v1650_v45 = vmul.f32 %v1634_v39, %v1618_v54  ;;  %v1718_v12 = vadd.f32 %v1717_v15, %v1648_v52  ;;  %v4458_v52 = vld [vmem:[#allocation42_spill] sm:$0xff] }
 0x139   : > { %vm1448_vm14 = vcmp.eq.f32.partialorder %v4445_v48, 1.0  ;;  %vm1496_vm15 = vcmp.eq.f32.partialorder %v4445_v48, -1.0  ;;  %v1607_v58 = vmax.f32 %v1591_v42, 0.0  ;;  %v1665_v13 = vadd.f32 %v4446_v35, %v1664_v4  ;;  %v4451_v42 = vld [vmem:[#allocation31_spill] sm:$0xff]  ;;  %v4463_v15 = vld [vmem:[#allocation22_spill] sm:$0xff]  ;;  %v4476_v48 = vld [vmem:[#allocation28_spill] sm:$0xff] }
 0x13a   : > { %v1683_v31 = vadd.f32 %v4447_v53, %v1682_v24  ;;  %v1701_v44 = vadd.f32 %v1700_v20, %v3901_v6  ;;  %v1621_v55 = vsub.f32 0.5, %v4448_v57  ;;  %v1637_v30 = vmul.f32 %v1605_v26, %v1605_v26  ;;  %v4452_v6 = vld [vmem:[#allocation21_spill] sm:$0xff]  ;;  %v4459_v26 = vld [vmem:[#allocation2_spill] sm:$0xff] }
 0x13b   : > { %v1651_v8 = vmul.f32 %v1635_v56, %v1619_v9  ;;  %v1719_v60 = vadd.f32 %v1718_v12, %v1649_v5  ;;  %v1608_v49 = vmax.f32 %v1592_v41, 0.0  ;;  %v1666_v62 = vadd.f32 %v4449_v3, %v1665_v13  ;;  %v4456_v41 = vld [vmem:[#allocation16_spill] sm:$0xff]  ;;  %v4465_v27 = vld [vmem:[#allocation34_spill] sm:$0xff]  ;;  %v4467_v12 = vld [vmem:[#allocation49_spill] sm:$0xff] }
 0x13c   : > { %v1684_v16 = vadd.f32 %v4450_v46, %v1683_v31  ;;  %v1702_v0 = vadd.f32 %v1701_v44, %v3903_v34  ;;  %v1622_v28 = vsub.f32 0.5, %v4451_v42  ;;  %v1638_v38 = vmul.f32 %v1606_v40, %v1606_v40  ;;  %v4457_v34 = vld [vmem:[#allocation41_spill] sm:$0xff]  ;;  %v4470_v31 = vld [vmem:[#allocation54_spill] sm:$0xff]  ;;  %v4474_v42 = vld [vmem:[#allocation27_spill] sm:$0xff] }
 0x13d   : > { %v1652_v7 = vmul.f32 %v1636_v19, %v1620_v25  ;;  %v1720_v21 = vadd.f32 %v1719_v60, %v1650_v45  ;;  %v1573_v22 = vmul.f32 %v4453_v10, %v4452_v6  ;;  %v1667_v51 = vadd.f32 %v4454_v37, %v1666_v62  ;;  %v4469_v13 = vld [vmem:[#allocation29_spill] sm:$0xff]  ;;  %v4471_v60 = vld [vmem:[#allocation14_spill] sm:$0xff] }
 0x13e   : > { %v1685_v43 = vadd.f32 %v4455_v36, %v1684_v16  ;;  %v1703_v47 = vadd.f32 %v1702_v0, %v3907_v17  ;;  %v1623_v59 = vsub.f32 0.5, %v4456_v41  ;;  %v1639_v32 = vmul.f32 %v1607_v58, %v1607_v58  ;;  %v4462_v17 = vld [vmem:[#allocation4_spill] sm:$0xff]  ;;  %v4473_v0 = vld [vmem:[#allocation25_spill] sm:$0xff] }
 0x13f   : > { %v1653_v54 = vmul.f32 %v1637_v30, %v1621_v55  ;;  %v1721_v39 = vadd.f32 %v1720_v21, %v1651_v8  ;;  %v1574_v29 = vmul.f32 %v4458_v52, %v4457_v34  ;;  %v1668_v50 = vadd.f32 %v4459_v26, %v1667_v51  ;;  %v4468_v58 = vld [vmem:[#allocation40_spill] sm:$0xff] }
 0x140   : > { %v1686_v1 = vadd.f32 %v4460_v18, %v1685_v43  ;;  %v1704_v11 = vadd.f32 %v1703_v47, %v3909_v14  ;;  %v1624_v61 = vsub.f32 0.5, %v4461_v2  ;;  %v1640_v9 = vmul.f32 %v1608_v49, %v1608_v49  ;;  %v4472_v49 = vld [vmem:[#allocation3_spill] sm:$0xff] }
 0x141   : > { %v1654_v56 = vmul.f32 %v1638_v38, %v1622_v28  ;;  %v1722_v5 = vadd.f32 %v1721_v39, %v1652_v7  ;;  %v1575_v40 = vmul.f32 %v4463_v15, %v4462_v17  ;;  %v1669_v4 = vadd.f32 %v4464_v23, %v1668_v50 }
 0x142   : > { %v1687_v24 = vadd.f32 %v4465_v27, %v1686_v1  ;;  %v1705_v20 = vadd.f32 %v1704_v11, %v1573_v22  ;;  %v4466_v63 = vmov 0.0   ;;  %v1655_v19 = vmul.f32 %v1639_v32, %v1623_v59  ;;  %v4475_v22 = vld [vmem:[#allocation43_spill] sm:$0xff] }
 0x143   : > { %v2047_v25 = vsel %vm1447_vm12, 1.0, %v4466_v63  ;;  %v2063_v14 = vsel %vm1495_vm13, 1.0, %v4466_v63  ;;  %v1723_v45 = vadd.f32 %v1722_v5, %v1653_v54  ;;  %v1576_v35 = vmul.f32 %v4468_v58, %v4467_v12 }
 0x144   : > { %v1670_v53 = vadd.f32 %v4469_v13, %v1669_v4  ;;  %v1688_v44 = vadd.f32 %v4470_v31, %v1687_v24  ;;  %v1706_v57 = vadd.f32 %v1705_v20, %v1574_v29  ;;  %v2048_v55 = vsel %vm1448_vm14, 1.0, %v4466_v63 }
 0x145   : > { %v2064_v30 = vsel %vm1496_vm15, 1.0, %v4466_v63  ;;  %v1656_v33 = vmul.f32 %v1640_v9, %v1624_v61  ;;  %v1724_v8 = vadd.f32 %v1723_v45, %v1654_v56  ;;  %v1331_v3 = vadd.f32 %v4472_v49, %v4471_v60 }
 0x146   : > { %v1671_v62 = vadd.f32 %v2047_v25, %v1670_v53  ;;  %v1689_v46 = vadd.f32 %v2063_v14, %v1688_v44  ;;  %v1707_v16 = vadd.f32 %v1706_v57, %v1575_v40  ;;  %v1349_v28 = vadd.f32 %v4474_v42, %v4473_v0 }
 0x147   : > { %v1725_v38 = vadd.f32 %v1724_v8, %v1655_v19 }
 0x148   : > { %v1672_v7 = vadd.f32 %v2048_v55, %v1671_v62  ;;  %v1690_v21 = vadd.f32 %v2064_v30, %v1689_v46  ;;  %v1708_v6 = vadd.f32 %v1707_v16, %v1576_v35 }
 0x149   : > { %v1726_v10 = vadd.f32 %v1725_v38, %v1656_v33 }
 0x14a   : > { %v1673_v37 = vadd.f32 %v1672_v7, %v4475_v22  ;;  %v1691_v51 = vadd.f32 %v1690_v21, %v4476_v48  ;;  %v1709_v36 = vadd.f32 %v1708_v6, %v1331_v3 }
 0x14b   : > { %v1727_v43 = vadd.f32 %v1726_v10, %v1349_v28 }
 0x14c   : > { %1674 = vst [vmem:[%s4028_s2] sm:$0xff] %v1673_v37  ;;  %2066 = vst [vmem:[%s4028_s2 + $0x8] sm:$0xff] %v1691_v51 }
 0x14d   : > { %2068 = vst [vmem:[%s4028_s2 + $0x10] sm:$0xff] %v1709_v36  ;;  %2070 = vst [vmem:[%s4028_s2 + $0x18] sm:$0xff] %v1727_v43 }
 0x14e PF: > { %s12_s11 = sadd.s32 1, %s2122_s11   ;;  %s4477_s9 = smov %s2118_s10 }
 0x14f   : > { %p9_p6 = scmp.ge.s32.totalorder %s12_s11, 5   ;;  %s4478_s10 = smov %s4480_s12 }
 0x151   :  { %11 = sbr.rel (!%p9_p6) target bundleno = 2 (0x2), region = 74 }

</bundles_post_ra>
